<compile_context>
chip_gen: v5e
topology: v5e:2x2
jax: 0.10.0
libtpu: 0.0.40
codegen_flags: <defaults>
</compile_context>

<pallas_src>
import jax
import jax.numpy as jnp
import numpy as np
from jax import lax
from jax.experimental import pallas as pl
from jax.experimental.pallas import tpu as pltpu

K_SMALL = 3 * 8 * 8 * 85        # 16320 features per scale after pooling to 8x8
K_TOTAL = 3 * K_SMALL           # 48960 = nn.Linear in_features
K_PAD = 16384                   # per-scale K padded to a lane-aligned multiple of 128
K_TOT_PAD = 3 * K_PAD           # 49152 = concatenated, padded K
K_STEPS = 2                     # two large K-chunks (DMA/compute overlap, minimal steps)
TK = K_TOT_PAD // K_STEPS       # 24576
BN_EPS = 1e-5

assert TK % 128 == 0 and K_TOT_PAD % K_STEPS == 0


# ------------------------------------------------------------------------- Pallas kernel
def fused_linear_bn_kernel(x_ref, wt_ref, b_ref, gamma_ref, beta_ref, out_ref):
    """One K-chunk of Linear (+ fused bias & BatchNorm1d on the last chunk).

    x_ref     : (B, TK)        bf16  concatenated pooled-activation chunk
    wt_ref    : (T, TK)        bf16  transposed (lane-major) Linear-weight chunk
    b/gamma/beta_ref : (1, T)  f32   Linear bias, BN affine params
    out_ref   : (B, T)         f32   VMEM-resident accumulator / final output
    """
    k = pl.program_id(0)

    @pl.when(k == 0)
    def _init():
        out_ref[...] = jnp.zeros_like(out_ref)

    out_ref[...] += lax.dot_general(
        x_ref[...], wt_ref[...],
        dimension_numbers=(((1,), (1,)), ((), ())),   # contract both lane (K) axes
        preferred_element_type=jnp.float32)

    @pl.when(k == pl.num_programs(0) - 1)
    def _finalize():
        y = out_ref[...] + b_ref[...]
        mean = jnp.mean(y, axis=0, keepdims=True)          # training-mode batch stats
        var = jnp.mean((y - mean) ** 2, axis=0, keepdims=True)
        out_ref[...] = (y - mean) * lax.rsqrt(var + BN_EPS) * gamma_ref[...] + beta_ref[...]


# ---------------------------------------------------------------------------------- glue
def _pool_natural(x, win):
    """MaxPool2d(win, win) over (H, W) of the natural (B, A, H, W, L) layout.

    No transpose: the flattened K-order is (A, H//win, W//win, L); the Linear weight rows
    are permuted once at init to match.
    """
    B, A, H, W, L = x.shape
    x = x.reshape(B, A, H // win, win, W // win, win, L)
    return jnp.max(x, axis=(3, 5)).reshape(B, -1)


def _to_slab(flat):
    """(B, K_SMALL) f32 -> (B, K_PAD) bf16 (pad lanes are inert: padded weight rows are 0)."""
    return jnp.pad(flat.astype(jnp.bfloat16), ((0, 0), (0, K_PAD - K_SMALL)))


def init_params(key, target_size):
    """Torch-equivalent Linear/BN init.

    The torch (anchor, label, hp, wp) weight-row order of the medium/large segments is
    permuted to the kernel's natural (anchor, hp, wp, label) order, each segment is
    zero-padded to K_PAD rows, the segments are concatenated, and the result is stored
    TRANSPOSED (T, 3*K_PAD) in bf16 so the 128-aligned K axis is the lane axis.
    """
    kw, kb = jax.random.split(key)
    bound = 1.0 / np.sqrt(K_TOTAL)
    W = jax.random.uniform(kw, (K_TOTAL, target_size), jnp.float32, -bound, bound)
    b = jax.random.uniform(kb, (target_size,), jnp.float32, -bound, bound)

    def permute_rows(w):   # torch (a, l, hp, wp) row order -> kernel (a, hp, wp, l)
        return jnp.transpose(w.reshape(3, 85, 8, 8, target_size),
                             (0, 2, 3, 1, 4)).reshape(K_SMALL, target_size)

    def pad_rows(w):
        return jnp.pad(w, ((0, K_PAD - K_SMALL), (0, 0)))

    ws = pad_rows(W[:K_SMALL])                             # small: torch order == natural order
    wm = pad_rows(permute_rows(W[K_SMALL:2 * K_SMALL]))
    wl = pad_rows(permute_rows(W[2 * K_SMALL:]))
    wt = jnp.concatenate([ws, wm, wl], axis=0).T.astype(jnp.bfloat16)   # (T, K_TOT_PAD)

    b2 = b.reshape(1, target_size)
    gamma = jnp.ones((1, target_size), jnp.float32)        # BatchNorm1d default affine init
    beta = jnp.zeros((1, target_size), jnp.float32)

    kernel_params = (wt, b2, gamma, beta)
    ref_params = (W, b2, gamma, beta)                      # torch-ordered f32 copy for the reference
    return kernel_params, ref_params


@jax.jit
def encoder_yolo_forward(small_act, medium_act, large_act, params):
    wt, b, gamma, beta = params
    B = small_act.shape[0]
    T = b.shape[-1]

    # Host prep: natural-layout pooling + tiny bf16 cast/pad + one concat (XLA-fused).
    s = _to_slab(small_act.reshape(B, -1))
    m = _to_slab(_pool_natural(medium_act, 2))
    l = _to_slab(_pool_natural(large_act, 4))   # MaxPool2d(2,2) twice == one 4x4/stride-4 pool
    x = jnp.concatenate([s, m, l], axis=1)      # (B, K_TOT_PAD) bf16

    small_spec = lambda: pl.BlockSpec((1, T), lambda k: (0, 0))

    return pl.pallas_call(
        fused_linear_bn_kernel,
        out_shape=jax.ShapeDtypeStruct((B, T), jnp.float32),
        grid_spec=pltpu.PrefetchScalarGridSpec(
            num_scalar_prefetch=0,
            grid=(K_STEPS,),
            in_specs=[pl.BlockSpec((B, TK), lambda k: (0, k)),
                      pl.BlockSpec((T, TK), lambda k: (0, k)),
                      small_spec(), small_spec(), small_spec()],
            out_specs=pl.BlockSpec((B, T), lambda k: (0, 0)),
        ),
        compiler_params=pltpu.CompilerParams(
            dimension_semantics=("arbitrary",),
        ),
    )(x, wt, b, gamma, beta)


# ------------------------------------------------------------------- pure-JAX reference
def reference_forward(small_act, medium_act, large_act, ref_params):
    """Re-implements the torch forward exactly (permute + chained 2x2 pools + concat),
    with the Linear evaluated at the same bf16-input / f32-accumulate precision the
    kernel intentionally uses."""
    W, b, gamma, beta = ref_params
    B = small_act.shape[0]

    s = small_act.reshape(B, -1)

    _, C, H, Wd, L = medium_act.shape
    m = jnp.transpose(medium_act, (0, 1, 4, 2, 3)).reshape(B, C * L, H, Wd)
    m = m.reshape(B, C * L, H // 2, 2, Wd // 2, 2).max(axis=(3, 5)).reshape(B, -1)

    _, C, H, Wd, L = large_act.shape
    l = jnp.transpose(large_act, (0, 1, 4, 2, 3)).reshape(B, C * L, H, Wd)
    l = l.reshape(B, C * L, H // 2, 2, Wd // 2, 2).max(axis=(3, 5))
    l = l.reshape(B, C * L, H // 4, 2, Wd // 4, 2).max(axis=(3, 5)).reshape(B, -1)

    act = jnp.concatenate([s, m, l], axis=1)
    y = jnp.dot(act.astype(jnp.bfloat16), W.astype(jnp.bfloat16),
                preferred_element_type=jnp.float32) + b
    mu = jnp.mean(y, axis=0, keepdims=True)
    var = jnp.mean((y - mu) ** 2, axis=0, keepdims=True)
    return (y - mu) / jnp.sqrt(var + BN_EPS) * gamma + beta


# ----------------------------------------------------------------------------------- main
if __name__ == "__main__":
    B, T = 4, 32
    key = jax.random.PRNGKey(0)
    k1, k2, k3, kp = jax.random.split(key, 4)

    # Synthetic stand-ins for the hooked Detect-head activations (image 256 -> 8/16/32 grids)
    small_act = jax.random.normal(k1, (B, 3, 8, 8, 85), jnp.float32)
    medium_act = jax.random.normal(k2, (B, 3, 16, 16, 85), jnp.float32)
    large_act = jax.random.normal(k3, (B, 3, 32, 32, 85), jnp.float32)

    kernel_params, ref_params = init_params(kp, T)

    out = encoder_yolo_forward(small_act, medium_act, large_act, kernel_params)
    out = jax.block_until_ready(out)

    ref = reference_forward(small_act, medium_act, large_act, ref_params)
    assert out.shape == (B, T) and out.dtype == jnp.float32
    np.testing.assert_allclose(np.asarray(out), np.asarray(ref), rtol=1e-3, atol=1e-3)
    print("KERNEL_OK")
</pallas_src>

<mosaic_0001>
module attributes {stable_mosaic.version = 11 : i64} {
  func.func @fused_linear_bn_kernel(%arg0: i32, %arg1: memref<4x24576xbf16, #tpu.memory_space<vmem>>, %arg2: memref<32x24576xbf16, #tpu.memory_space<vmem>>, %arg3: memref<1x32xf32, #tpu.memory_space<vmem>>, %arg4: memref<1x32xf32, #tpu.memory_space<vmem>>, %arg5: memref<1x32xf32, #tpu.memory_space<vmem>>, %arg6: memref<4x32xf32, #tpu.memory_space<vmem>>) attributes {dimension_semantics = [#tpu.dimension_semantics<arbitrary>], iteration_bounds = array<i64: 2>, scalar_prefetch = 0 : i64, scratch_operands = 0 : i64, tpu.core_type = #tpu.core_type<tc>, window_params = [{transform_indices = @transform_0, window_bounds = array<i64: 4, 24576>}, {transform_indices = @transform_1, window_bounds = array<i64: 32, 24576>}, {pipeline_mode = #tpu.pipeline_mode<synchronous>, transform_indices = @transform_2, window_bounds = array<i64: 1, 32>}, {pipeline_mode = #tpu.pipeline_mode<synchronous>, transform_indices = @transform_3, window_bounds = array<i64: 1, 32>}, {pipeline_mode = #tpu.pipeline_mode<synchronous>, transform_indices = @transform_4, window_bounds = array<i64: 1, 32>}, {pipeline_mode = #tpu.pipeline_mode<synchronous>, transform_indices = @transform_5, window_bounds = array<i64: 4, 32>}]} {
    %c0_i32 = arith.constant 0 : i32
    %0 = arith.cmpi eq, %arg0, %c0_i32 : i32
    %1 = arith.extui %0 : i1 to i32
    %c0_i32_0 = arith.constant 0 : i32
    %2 = arith.cmpi ne, %1, %c0_i32_0 : i32
    scf.if %2 {
      %cst_9 = arith.constant 0.000000e+00 : f32
      %12 = vector.broadcast %cst_9 : f32 to vector<4x32xf32>
      %c0_10 = arith.constant 0 : index
      %c0_11 = arith.constant 0 : index
      %13 = vector.load %arg6[%c0_10, %c0_11] : memref<4x32xf32, #tpu.memory_space<vmem>>, vector<4x32xf32>
      tpu.vector_store %arg6[%c0_10, %c0_11], %12 {strides = array<i32>} : memref<4x32xf32, #tpu.memory_space<vmem>>, vector<4x32xf32>,
    } else {
    }
    %c0 = arith.constant 0 : index
    %c0_1 = arith.constant 0 : index
    %3 = vector.load %arg6[%c0, %c0_1] : memref<4x32xf32, #tpu.memory_space<vmem>>, vector<4x32xf32>
    %c0_2 = arith.constant 0 : index
    %c0_3 = arith.constant 0 : index
    %4 = vector.load %arg1[%c0_2, %c0_3] : memref<4x24576xbf16, #tpu.memory_space<vmem>>, vector<4x24576xbf16>
    %c0_4 = arith.constant 0 : index
    %c0_5 = arith.constant 0 : index
    %5 = vector.load %arg2[%c0_4, %c0_5] : memref<32x24576xbf16, #tpu.memory_space<vmem>>, vector<32x24576xbf16>
    %cst = arith.constant dense<0.000000e+00> : vector<4x32xf32>
    %6 = tpu.matmul %4, %5, %cst {dimension_numbers = #tpu.dot_dimension_numbers<[1], [1], [0], [0], [0, 0, 1, 0], [], []>} : vector<4x24576xbf16>, vector<32x24576xbf16>, vector<4x32xf32> -> vector<4x32xf32>
    %7 = arith.addf %3, %6 : vector<4x32xf32>
    %c0_6 = arith.constant 0 : index
    %c0_7 = arith.constant 0 : index
    %8 = vector.load %arg6[%c0_6, %c0_7] : memref<4x32xf32, #tpu.memory_space<vmem>>, vector<4x32xf32>
    tpu.vector_store %arg6[%c0_6, %c0_7], %7 {strides = array<i32>} : memref<4x32xf32, #tpu.memory_space<vmem>>, vector<4x32xf32>,
    %c1_i32 = arith.constant 1 : i32
    %9 = arith.cmpi eq, %arg0, %c1_i32 : i32
    %10 = arith.extui %9 : i1 to i32
    %c0_i32_8 = arith.constant 0 : i32
    %11 = arith.cmpi ne, %10, %c0_i32_8 : i32
    scf.if %11 {
      %c0_9 = arith.constant 0 : index
      %c0_10 = arith.constant 0 : index
      %12 = vector.load %arg6[%c0_9, %c0_10] : memref<4x32xf32, #tpu.memory_space<vmem>>, vector<4x32xf32>
      %c0_11 = arith.constant 0 : index
      %c0_12 = arith.constant 0 : index
      %13 = vector.load %arg3[%c0_11, %c0_12] : memref<1x32xf32, #tpu.memory_space<vmem>>, vector<1x32xf32>
      %14 = vector.broadcast %13 : vector<1x32xf32> to vector<4x32xf32>
      %15 = arith.addf %12, %14 : vector<4x32xf32>
      %cst_13 = arith.constant dense<0.000000e+00> : vector<32xf32>
      %16 = vector.multi_reduction <add>, %15, %cst_13 [0] : vector<4x32xf32> to vector<32xf32>
      %17 = vector.shape_cast %16 : vector<32xf32> to vector<1x32xf32>
      %cst_14 = arith.constant 4.000000e+00 : f32
      %18 = vector.broadcast %cst_14 : f32 to vector<1x32xf32>
      %19 = arith.divf %17, %18 : vector<1x32xf32>
      %20 = vector.broadcast %19 : vector<1x32xf32> to vector<4x32xf32>
      %21 = arith.subf %15, %20 : vector<4x32xf32>
      %22 = arith.mulf %21, %21 : vector<4x32xf32>
      %cst_15 = arith.constant dense<0.000000e+00> : vector<32xf32>
      %23 = vector.multi_reduction <add>, %22, %cst_15 [0] : vector<4x32xf32> to vector<32xf32>
      %24 = vector.shape_cast %23 : vector<32xf32> to vector<1x32xf32>
      %cst_16 = arith.constant 4.000000e+00 : f32
      %25 = vector.broadcast %cst_16 : f32 to vector<1x32xf32>
      %26 = arith.divf %24, %25 : vector<1x32xf32>
      %27 = vector.broadcast %19 : vector<1x32xf32> to vector<4x32xf32>
      %28 = arith.subf %15, %27 : vector<4x32xf32>
      %cst_17 = arith.constant 9.99999974E-6 : f32
      %29 = vector.broadcast %cst_17 : f32 to vector<1x32xf32>
      %30 = arith.addf %26, %29 : vector<1x32xf32>
      %31 = math.rsqrt %30 : vector<1x32xf32>
      %32 = vector.broadcast %31 : vector<1x32xf32> to vector<4x32xf32>
      %33 = arith.mulf %28, %32 : vector<4x32xf32>
      %c0_18 = arith.constant 0 : index
      %c0_19 = arith.constant 0 : index
      %34 = vector.load %arg4[%c0_18, %c0_19] : memref<1x32xf32, #tpu.memory_space<vmem>>, vector<1x32xf32>
      %35 = vector.broadcast %34 : vector<1x32xf32> to vector<4x32xf32>
      %36 = arith.mulf %33, %35 : vector<4x32xf32>
      %c0_20 = arith.constant 0 : index
      %c0_21 = arith.constant 0 : index
      %37 = vector.load %arg5[%c0_20, %c0_21] : memref<1x32xf32, #tpu.memory_space<vmem>>, vector<1x32xf32>
      %38 = vector.broadcast %37 : vector<1x32xf32> to vector<4x32xf32>
      %39 = arith.addf %36, %38 : vector<4x32xf32>
      %c0_22 = arith.constant 0 : index
      %c0_23 = arith.constant 0 : index
      %40 = vector.load %arg6[%c0_22, %c0_23] : memref<4x32xf32, #tpu.memory_space<vmem>>, vector<4x32xf32>
      tpu.vector_store %arg6[%c0_22, %c0_23], %39 {strides = array<i32>} : memref<4x32xf32, #tpu.memory_space<vmem>>, vector<4x32xf32>,
    } else {
    }
    return
  }
  func.func @transform_0(%arg0: i32) -> (i32, i32) {
    %c0_i32 = arith.constant 0 : i32
    %c0_i32_0 = arith.constant 0 : i32
    return %c0_i32, %arg0 : i32, i32
  }
  func.func @transform_1(%arg0: i32) -> (i32, i32) {
    %c0_i32 = arith.constant 0 : i32
    %c0_i32_0 = arith.constant 0 : i32
    return %c0_i32, %arg0 : i32, i32
  }
  func.func @transform_2(%arg0: i32) -> (i32, i32) {
    %c0_i32 = arith.constant 0 : i32
    %c0_i32_0 = arith.constant 0 : i32
    %c0_i32_1 = arith.constant 0 : i32
    return %c0_i32, %c0_i32_0 : i32, i32
  }
  func.func @transform_3(%arg0: i32) -> (i32, i32) {
    %c0_i32 = arith.constant 0 : i32
    %c0_i32_0 = arith.constant 0 : i32
    %c0_i32_1 = arith.constant 0 : i32
    return %c0_i32, %c0_i32_0 : i32, i32
  }
  func.func @transform_4(%arg0: i32) -> (i32, i32) {
    %c0_i32 = arith.constant 0 : i32
    %c0_i32_0 = arith.constant 0 : i32
    %c0_i32_1 = arith.constant 0 : i32
    return %c0_i32, %c0_i32_0 : i32, i32
  }
  func.func @transform_5(%arg0: i32) -> (i32, i32) {
    %c0_i32 = arith.constant 0 : i32
    %c0_i32_0 = arith.constant 0 : i32
    %c0_i32_1 = arith.constant 0 : i32
    return %c0_i32, %c0_i32_0 : i32, i32
  }
}

</mosaic_0001>

<bundles_post_ra>
// kernel: encoder_yolo_forward.1
= control target key start
LH: loop header
LB: loop body
LE: loop exit
PB: predicated region body
PF: predicated region fallthrough
CT: control target
= control target key end

     0   :  { %10 = vsyncpa [#allocation4], 0  ;;  %s8548_s18 = smov 0   ;;  %s8550_s19 = smov 0   ;;  %s10212_s0 = inlined_call_operand.vmem [shape: bf16[4,49152], index: 0, kind: input, shape index: {}]   ;;  %s10213_s1 = inlined_call_operand.vmem [shape: bf16[32,49152], index: 1, kind: input, shape index: {}]   ;;  %s10214_s2 = inlined_call_operand.vmem [shape: f32[1,32], index: 2, kind: input, shape index: {}]   ;;  %s10215_s3 = inlined_call_operand.vmem [shape: f32[1,32], index: 3, kind: input, shape index: {}]   ;;  %s10216_s4 = inlined_call_operand.vmem [shape: f32[1,32], index: 4, kind: input, shape index: {}]   ;;  %s10217_s5 = inlined_call_operand.hbm [shape: f32[4,32], index: 5, kind: output, shape index: {}]  }
   0x1   :  { %s8552_s20 = smov 0  }
   0x2 LB: > { %s8564_s21 = sadd.s32 4294967295, %s8513_s20   ;;  %s8567_s22 = sadd.s32 1, %s8513_s20   ;;  %s8513_s20 = sphi %s8552_s20, %s10220_s20   ;;  %s8509_s19 = sphi %s8550_s19, %s10219_s19   ;;  %s8505_s18 = sphi %s8548_s18, %s10218_s18  }
   0x3   : > { %s46_s23 = ssub.s32 %s8513_s20, %s8567_s22  ;;  %s49_s24 = sadd.s32 1, %s8509_s19 }
   0x4   : > { %p47_p0 = scmp.eq.s32.totalorder %s46_s23, 0  ;;  %p56_p1 = scmp.ne.s32.totalorder %s8509_s19, %s8505_s18 }
   0x5   : > { %p57_p2 = scmp.eq.s32.totalorder %s8513_s20, 0  ;;  %p6486_p4 = scmp.ge.s32.totalorder %s8513_s20, 2 }
   0x6   : > { %s8576_s25 = scalar_select %p47_p0, %s8509_s19, %s49_s24  }
   0x7   : > { %p58_p3 = por %p57_p2, %p56_p1  ;;  %175 = sbr.rel (%p6486_p4) target bundleno = 401 (0x191), region = 28 }
   0xc   : > { %187 = sbr.rel (!%p58_p3) target bundleno = 401 (0x191), region = 36  ;;  %s189_s26 = sand.u32 (%p58_p3), 1, %s8509_s19  }
   0xd   : > { %s8032_s27 = smul.u32 (%p58_p3), 768, %s8513_s20 }
   0xe   : > { %s8417_s28 = smul.u32 (%p58_p3), 3072, %s189_s26 }
   0xf   : > { %s8584_s6 = scalar_lea.vmem (%p58_p3), %s10213_s1, %s8032_s27 }
  0x10   : > { %v207_v0 = vld [vmem:[%s8584_s6] sm:$0xff] (%p58_p3)  ;;  %v209_v1 = vld [vmem:[%s8584_s6 + $0x8] sm:$0xff] (%p58_p3)  ;;  %v211_v2 = vld [vmem:[%s8584_s6 + $0x10] sm:$0xff] (%p58_p3)  ;;  %s8589_s7 = scalar_lea.vmem (%p58_p3), [#allocation2], %s8417_s28 }
  0x11   : > { %208 = vst [vmem:[%s8589_s7] sm:$0xff] %v207_v0  ;;  %v213_v3 = vld [vmem:[%s8584_s6 + $0x18] sm:$0xff]  ;;  %v215_v4 = vld [vmem:[%s8584_s6 + $0x20] sm:$0xff]  ;;  %v217_v5 = vld [vmem:[%s8584_s6 + $0x28] sm:$0xff] }
  0x12   : > { %210 = vst [vmem:[%s8589_s7 + $0x8] sm:$0xff] %v209_v1  ;;  %v219_v6 = vld [vmem:[%s8584_s6 + $0x30] sm:$0xff]  ;;  %v221_v7 = vld [vmem:[%s8584_s6 + $0x38] sm:$0xff]  ;;  %v223_v8 = vld [vmem:[%s8584_s6 + $0x40] sm:$0xff] }
  0x13   : > { %212 = vst [vmem:[%s8589_s7 + $0x10] sm:$0xff] %v211_v2  ;;  %v225_v9 = vld [vmem:[%s8584_s6 + $0x48] sm:$0xff]  ;;  %v227_v10 = vld [vmem:[%s8584_s6 + $0x50] sm:$0xff]  ;;  %v229_v11 = vld [vmem:[%s8584_s6 + $0x58] sm:$0xff] }
  0x14   : > { %214 = vst [vmem:[%s8589_s7 + $0x18] sm:$0xff] %v213_v3  ;;  %v231_v12 = vld [vmem:[%s8584_s6 + $0x60] sm:$0xff]  ;;  %v233_v13 = vld [vmem:[%s8584_s6 + $0x68] sm:$0xff]  ;;  %v235_v14 = vld [vmem:[%s8584_s6 + $0x70] sm:$0xff] }
  0x15   : > { %216 = vst [vmem:[%s8589_s7 + $0x20] sm:$0xff] %v215_v4  ;;  %v237_v15 = vld [vmem:[%s8584_s6 + $0x78] sm:$0xff]  ;;  %v239_v16 = vld [vmem:[%s8584_s6 + $0x80] sm:$0xff]  ;;  %v241_v17 = vld [vmem:[%s8584_s6 + $0x88] sm:$0xff] }
  0x16   : > { %218 = vst [vmem:[%s8589_s7 + $0x28] sm:$0xff] %v217_v5  ;;  %v243_v18 = vld [vmem:[%s8584_s6 + $0x90] sm:$0xff]  ;;  %v245_v19 = vld [vmem:[%s8584_s6 + $0x98] sm:$0xff]  ;;  %v247_v20 = vld [vmem:[%s8584_s6 + $0xa0] sm:$0xff] }
  0x17   : > { %220 = vst [vmem:[%s8589_s7 + $0x30] sm:$0xff] %v219_v6  ;;  %v249_v21 = vld [vmem:[%s8584_s6 + $0xa8] sm:$0xff]  ;;  %v251_v22 = vld [vmem:[%s8584_s6 + $0xb0] sm:$0xff]  ;;  %v253_v23 = vld [vmem:[%s8584_s6 + $0xb8] sm:$0xff] }
  0x18   : > { %222 = vst [vmem:[%s8589_s7 + $0x38] sm:$0xff] %v221_v7  ;;  %v255_v24 = vld [vmem:[%s8584_s6 + $0xc0] sm:$0xff]  ;;  %v257_v25 = vld [vmem:[%s8584_s6 + $0xc8] sm:$0xff]  ;;  %v259_v26 = vld [vmem:[%s8584_s6 + $0xd0] sm:$0xff] }
  0x19   : > { %224 = vst [vmem:[%s8589_s7 + $0x40] sm:$0xff] %v223_v8  ;;  %v261_v27 = vld [vmem:[%s8584_s6 + $0xd8] sm:$0xff]  ;;  %v263_v28 = vld [vmem:[%s8584_s6 + $0xe0] sm:$0xff]  ;;  %v265_v29 = vld [vmem:[%s8584_s6 + $0xe8] sm:$0xff] }
  0x1a   : > { %226 = vst [vmem:[%s8589_s7 + $0x48] sm:$0xff] %v225_v9  ;;  %v267_v30 = vld [vmem:[%s8584_s6 + $0xf0] sm:$0xff]  ;;  %v269_v31 = vld [vmem:[%s8584_s6 + $0xf8] sm:$0xff]  ;;  %v271_v32 = vld [vmem:[%s8584_s6 + $0x100] sm:$0xff] }
  0x1b   : > { %228 = vst [vmem:[%s8589_s7 + $0x50] sm:$0xff] %v227_v10  ;;  %v273_v33 = vld [vmem:[%s8584_s6 + $0x108] sm:$0xff]  ;;  %v275_v34 = vld [vmem:[%s8584_s6 + $0x110] sm:$0xff]  ;;  %v277_v35 = vld [vmem:[%s8584_s6 + $0x118] sm:$0xff] }
  0x1c   : > { %230 = vst [vmem:[%s8589_s7 + $0x58] sm:$0xff] %v229_v11  ;;  %v279_v36 = vld [vmem:[%s8584_s6 + $0x120] sm:$0xff]  ;;  %v281_v37 = vld [vmem:[%s8584_s6 + $0x128] sm:$0xff]  ;;  %v283_v38 = vld [vmem:[%s8584_s6 + $0x130] sm:$0xff] }
  0x1d   : > { %232 = vst [vmem:[%s8589_s7 + $0x60] sm:$0xff] %v231_v12  ;;  %v285_v39 = vld [vmem:[%s8584_s6 + $0x138] sm:$0xff]  ;;  %v287_v40 = vld [vmem:[%s8584_s6 + $0x140] sm:$0xff]  ;;  %v289_v41 = vld [vmem:[%s8584_s6 + $0x148] sm:$0xff] }
  0x1e   : > { %234 = vst [vmem:[%s8589_s7 + $0x68] sm:$0xff] %v233_v13  ;;  %v291_v42 = vld [vmem:[%s8584_s6 + $0x150] sm:$0xff]  ;;  %v293_v43 = vld [vmem:[%s8584_s6 + $0x158] sm:$0xff]  ;;  %v295_v44 = vld [vmem:[%s8584_s6 + $0x160] sm:$0xff] }
  0x1f   : > { %236 = vst [vmem:[%s8589_s7 + $0x70] sm:$0xff] %v235_v14  ;;  %v297_v45 = vld [vmem:[%s8584_s6 + $0x168] sm:$0xff]  ;;  %v299_v46 = vld [vmem:[%s8584_s6 + $0x170] sm:$0xff]  ;;  %v301_v47 = vld [vmem:[%s8584_s6 + $0x178] sm:$0xff] }
  0x20   : > { %238 = vst [vmem:[%s8589_s7 + $0x78] sm:$0xff] %v237_v15  ;;  %v303_v48 = vld [vmem:[%s8584_s6 + $0x180] sm:$0xff]  ;;  %v305_v49 = vld [vmem:[%s8584_s6 + $0x188] sm:$0xff]  ;;  %v307_v50 = vld [vmem:[%s8584_s6 + $0x190] sm:$0xff] }
  0x21   : > { %240 = vst [vmem:[%s8589_s7 + $0x80] sm:$0xff] %v239_v16  ;;  %v309_v51 = vld [vmem:[%s8584_s6 + $0x198] sm:$0xff]  ;;  %v311_v52 = vld [vmem:[%s8584_s6 + $0x1a0] sm:$0xff]  ;;  %v313_v53 = vld [vmem:[%s8584_s6 + $0x1a8] sm:$0xff] }
  0x22   : > { %242 = vst [vmem:[%s8589_s7 + $0x88] sm:$0xff] %v241_v17  ;;  %v315_v54 = vld [vmem:[%s8584_s6 + $0x1b0] sm:$0xff]  ;;  %v317_v55 = vld [vmem:[%s8584_s6 + $0x1b8] sm:$0xff]  ;;  %v319_v56 = vld [vmem:[%s8584_s6 + $0x1c0] sm:$0xff] }
  0x23   : > { %244 = vst [vmem:[%s8589_s7 + $0x90] sm:$0xff] %v243_v18  ;;  %v321_v57 = vld [vmem:[%s8584_s6 + $0x1c8] sm:$0xff]  ;;  %v323_v58 = vld [vmem:[%s8584_s6 + $0x1d0] sm:$0xff]  ;;  %v325_v59 = vld [vmem:[%s8584_s6 + $0x1d8] sm:$0xff] }
  0x24   : > { %246 = vst [vmem:[%s8589_s7 + $0x98] sm:$0xff] %v245_v19  ;;  %v327_v60 = vld [vmem:[%s8584_s6 + $0x1e0] sm:$0xff]  ;;  %v329_v61 = vld [vmem:[%s8584_s6 + $0x1e8] sm:$0xff]  ;;  %v331_v62 = vld [vmem:[%s8584_s6 + $0x1f0] sm:$0xff] }
  0x25   : > { %248 = vst [vmem:[%s8589_s7 + $0xa0] sm:$0xff] %v247_v20  ;;  %v333_v63 = vld [vmem:[%s8584_s6 + $0x1f8] sm:$0xff]  ;;  %v335_v0 = vld [vmem:[%s8584_s6 + $0x200] sm:$0xff]  ;;  %v337_v1 = vld [vmem:[%s8584_s6 + $0x208] sm:$0xff] }
  0x26   : > { %250 = vst [vmem:[%s8589_s7 + $0xa8] sm:$0xff] %v249_v21  ;;  %v339_v2 = vld [vmem:[%s8584_s6 + $0x210] sm:$0xff]  ;;  %v341_v3 = vld [vmem:[%s8584_s6 + $0x218] sm:$0xff]  ;;  %v343_v4 = vld [vmem:[%s8584_s6 + $0x220] sm:$0xff] }
  0x27   : > { %252 = vst [vmem:[%s8589_s7 + $0xb0] sm:$0xff] %v251_v22  ;;  %v345_v5 = vld [vmem:[%s8584_s6 + $0x228] sm:$0xff]  ;;  %v347_v6 = vld [vmem:[%s8584_s6 + $0x230] sm:$0xff]  ;;  %v349_v7 = vld [vmem:[%s8584_s6 + $0x238] sm:$0xff] }
  0x28   : > { %254 = vst [vmem:[%s8589_s7 + $0xb8] sm:$0xff] %v253_v23  ;;  %v351_v8 = vld [vmem:[%s8584_s6 + $0x240] sm:$0xff]  ;;  %v353_v9 = vld [vmem:[%s8584_s6 + $0x248] sm:$0xff]  ;;  %v355_v10 = vld [vmem:[%s8584_s6 + $0x250] sm:$0xff] }
  0x29   : > { %256 = vst [vmem:[%s8589_s7 + $0xc0] sm:$0xff] %v255_v24  ;;  %v357_v11 = vld [vmem:[%s8584_s6 + $0x258] sm:$0xff]  ;;  %v359_v12 = vld [vmem:[%s8584_s6 + $0x260] sm:$0xff]  ;;  %v361_v13 = vld [vmem:[%s8584_s6 + $0x268] sm:$0xff] }
  0x2a   : > { %258 = vst [vmem:[%s8589_s7 + $0xc8] sm:$0xff] %v257_v25  ;;  %v363_v14 = vld [vmem:[%s8584_s6 + $0x270] sm:$0xff]  ;;  %v365_v15 = vld [vmem:[%s8584_s6 + $0x278] sm:$0xff]  ;;  %v367_v16 = vld [vmem:[%s8584_s6 + $0x280] sm:$0xff] }
  0x2b   : > { %260 = vst [vmem:[%s8589_s7 + $0xd0] sm:$0xff] %v259_v26  ;;  %v369_v17 = vld [vmem:[%s8584_s6 + $0x288] sm:$0xff]  ;;  %v371_v18 = vld [vmem:[%s8584_s6 + $0x290] sm:$0xff]  ;;  %v373_v19 = vld [vmem:[%s8584_s6 + $0x298] sm:$0xff] }
  0x2c   : > { %262 = vst [vmem:[%s8589_s7 + $0xd8] sm:$0xff] %v261_v27  ;;  %v375_v20 = vld [vmem:[%s8584_s6 + $0x2a0] sm:$0xff]  ;;  %v377_v21 = vld [vmem:[%s8584_s6 + $0x2a8] sm:$0xff]  ;;  %v379_v22 = vld [vmem:[%s8584_s6 + $0x2b0] sm:$0xff] }
  0x2d   : > { %264 = vst [vmem:[%s8589_s7 + $0xe0] sm:$0xff] %v263_v28  ;;  %v381_v23 = vld [vmem:[%s8584_s6 + $0x2b8] sm:$0xff]  ;;  %v383_v24 = vld [vmem:[%s8584_s6 + $0x2c0] sm:$0xff]  ;;  %v385_v25 = vld [vmem:[%s8584_s6 + $0x2c8] sm:$0xff] }
  0x2e   : > { %266 = vst [vmem:[%s8589_s7 + $0xe8] sm:$0xff] %v265_v29  ;;  %v387_v26 = vld [vmem:[%s8584_s6 + $0x2d0] sm:$0xff]  ;;  %v389_v27 = vld [vmem:[%s8584_s6 + $0x2d8] sm:$0xff]  ;;  %v391_v28 = vld [vmem:[%s8584_s6 + $0x2e0] sm:$0xff] }
  0x2f   : > { %268 = vst [vmem:[%s8589_s7 + $0xf0] sm:$0xff] %v267_v30  ;;  %v393_v29 = vld [vmem:[%s8584_s6 + $0x2e8] sm:$0xff]  ;;  %v395_v30 = vld [vmem:[%s8584_s6 + $0x2f0] sm:$0xff] }
  0x30   : > { %270 = vst [vmem:[%s8589_s7 + $0xf8] sm:$0xff] %v269_v31  ;;  %v397_v31 = vld [vmem:[%s8584_s6 + $0x2f8] sm:$0xff] }
  0x31   : > { %272 = vst [vmem:[%s8589_s7 + $0x100] sm:$0xff] %v271_v32  ;;  %v399_v32 = vld [vmem:[%s8584_s6 + $0x600] sm:$0xff] }
  0x32   : > { %274 = vst [vmem:[%s8589_s7 + $0x108] sm:$0xff] %v273_v33  ;;  %v401_v33 = vld [vmem:[%s8584_s6 + $0x608] sm:$0xff] }
  0x33   : > { %276 = vst [vmem:[%s8589_s7 + $0x110] sm:$0xff] %v275_v34  ;;  %v403_v34 = vld [vmem:[%s8584_s6 + $0x610] sm:$0xff] }
  0x34   : > { %278 = vst [vmem:[%s8589_s7 + $0x118] sm:$0xff] %v277_v35  ;;  %v405_v35 = vld [vmem:[%s8584_s6 + $0x618] sm:$0xff] }
  0x35   : > { %280 = vst [vmem:[%s8589_s7 + $0x120] sm:$0xff] %v279_v36  ;;  %v407_v36 = vld [vmem:[%s8584_s6 + $0x620] sm:$0xff] }
  0x36   : > { %282 = vst [vmem:[%s8589_s7 + $0x128] sm:$0xff] %v281_v37  ;;  %v409_v37 = vld [vmem:[%s8584_s6 + $0x628] sm:$0xff] }
  0x37   : > { %284 = vst [vmem:[%s8589_s7 + $0x130] sm:$0xff] %v283_v38  ;;  %v411_v38 = vld [vmem:[%s8584_s6 + $0x630] sm:$0xff] }
  0x38   : > { %286 = vst [vmem:[%s8589_s7 + $0x138] sm:$0xff] %v285_v39  ;;  %v413_v39 = vld [vmem:[%s8584_s6 + $0x638] sm:$0xff] }
  0x39   : > { %288 = vst [vmem:[%s8589_s7 + $0x140] sm:$0xff] %v287_v40  ;;  %v415_v40 = vld [vmem:[%s8584_s6 + $0x640] sm:$0xff] }
  0x3a   : > { %290 = vst [vmem:[%s8589_s7 + $0x148] sm:$0xff] %v289_v41  ;;  %v417_v41 = vld [vmem:[%s8584_s6 + $0x648] sm:$0xff] }
  0x3b   : > { %292 = vst [vmem:[%s8589_s7 + $0x150] sm:$0xff] %v291_v42  ;;  %v419_v42 = vld [vmem:[%s8584_s6 + $0x650] sm:$0xff] }
  0x3c   : > { %294 = vst [vmem:[%s8589_s7 + $0x158] sm:$0xff] %v293_v43  ;;  %v421_v43 = vld [vmem:[%s8584_s6 + $0x658] sm:$0xff] }
  0x3d   : > { %296 = vst [vmem:[%s8589_s7 + $0x160] sm:$0xff] %v295_v44  ;;  %v423_v44 = vld [vmem:[%s8584_s6 + $0x660] sm:$0xff] }
  0x3e   : > { %298 = vst [vmem:[%s8589_s7 + $0x168] sm:$0xff] %v297_v45  ;;  %v425_v45 = vld [vmem:[%s8584_s6 + $0x668] sm:$0xff] }
  0x3f   : > { %300 = vst [vmem:[%s8589_s7 + $0x170] sm:$0xff] %v299_v46  ;;  %v427_v46 = vld [vmem:[%s8584_s6 + $0x670] sm:$0xff] }
  0x40   : > { %302 = vst [vmem:[%s8589_s7 + $0x178] sm:$0xff] %v301_v47  ;;  %v429_v47 = vld [vmem:[%s8584_s6 + $0x678] sm:$0xff] }
  0x41   : > { %304 = vst [vmem:[%s8589_s7 + $0x180] sm:$0xff] %v303_v48  ;;  %v431_v48 = vld [vmem:[%s8584_s6 + $0x680] sm:$0xff] }
  0x42   : > { %306 = vst [vmem:[%s8589_s7 + $0x188] sm:$0xff] %v305_v49  ;;  %v433_v49 = vld [vmem:[%s8584_s6 + $0x688] sm:$0xff] }
  0x43   : > { %308 = vst [vmem:[%s8589_s7 + $0x190] sm:$0xff] %v307_v50  ;;  %v435_v50 = vld [vmem:[%s8584_s6 + $0x690] sm:$0xff] }
  0x44   : > { %310 = vst [vmem:[%s8589_s7 + $0x198] sm:$0xff] %v309_v51  ;;  %v437_v51 = vld [vmem:[%s8584_s6 + $0x698] sm:$0xff] }
  0x45   : > { %312 = vst [vmem:[%s8589_s7 + $0x1a0] sm:$0xff] %v311_v52  ;;  %v439_v52 = vld [vmem:[%s8584_s6 + $0x6a0] sm:$0xff] }
  0x46   : > { %314 = vst [vmem:[%s8589_s7 + $0x1a8] sm:$0xff] %v313_v53  ;;  %v441_v53 = vld [vmem:[%s8584_s6 + $0x6a8] sm:$0xff] }
  0x47   : > { %316 = vst [vmem:[%s8589_s7 + $0x1b0] sm:$0xff] %v315_v54  ;;  %v443_v54 = vld [vmem:[%s8584_s6 + $0x6b0] sm:$0xff] }
  0x48   : > { %318 = vst [vmem:[%s8589_s7 + $0x1b8] sm:$0xff] %v317_v55  ;;  %v445_v55 = vld [vmem:[%s8584_s6 + $0x6b8] sm:$0xff] }
  0x49   : > { %320 = vst [vmem:[%s8589_s7 + $0x1c0] sm:$0xff] %v319_v56  ;;  %v447_v56 = vld [vmem:[%s8584_s6 + $0x6c0] sm:$0xff] }
  0x4a   : > { %322 = vst [vmem:[%s8589_s7 + $0x1c8] sm:$0xff] %v321_v57  ;;  %v449_v57 = vld [vmem:[%s8584_s6 + $0x6c8] sm:$0xff] }
  0x4b   : > { %324 = vst [vmem:[%s8589_s7 + $0x1d0] sm:$0xff] %v323_v58  ;;  %v451_v58 = vld [vmem:[%s8584_s6 + $0x6d0] sm:$0xff] }
  0x4c   : > { %326 = vst [vmem:[%s8589_s7 + $0x1d8] sm:$0xff] %v325_v59  ;;  %v453_v59 = vld [vmem:[%s8584_s6 + $0x6d8] sm:$0xff] }
  0x4d   : > { %328 = vst [vmem:[%s8589_s7 + $0x1e0] sm:$0xff] %v327_v60  ;;  %v455_v60 = vld [vmem:[%s8584_s6 + $0x6e0] sm:$0xff] }
  0x4e   : > { %330 = vst [vmem:[%s8589_s7 + $0x1e8] sm:$0xff] %v329_v61  ;;  %v457_v61 = vld [vmem:[%s8584_s6 + $0x6e8] sm:$0xff] }
  0x4f   : > { %332 = vst [vmem:[%s8589_s7 + $0x1f0] sm:$0xff] %v331_v62  ;;  %v459_v62 = vld [vmem:[%s8584_s6 + $0x6f0] sm:$0xff] }
  0x50   : > { %334 = vst [vmem:[%s8589_s7 + $0x1f8] sm:$0xff] %v333_v63  ;;  %v461_v63 = vld [vmem:[%s8584_s6 + $0x6f8] sm:$0xff] }
  0x51   : > { %336 = vst [vmem:[%s8589_s7 + $0x200] sm:$0xff] %v335_v0  ;;  %v463_v0 = vld [vmem:[%s8584_s6 + $0x700] sm:$0xff] }
  0x52   : > { %338 = vst [vmem:[%s8589_s7 + $0x208] sm:$0xff] %v337_v1  ;;  %v465_v1 = vld [vmem:[%s8584_s6 + $0x708] sm:$0xff] }
  0x53   : > { %340 = vst [vmem:[%s8589_s7 + $0x210] sm:$0xff] %v339_v2  ;;  %v467_v2 = vld [vmem:[%s8584_s6 + $0x710] sm:$0xff] }
  0x54   : > { %342 = vst [vmem:[%s8589_s7 + $0x218] sm:$0xff] %v341_v3  ;;  %v469_v3 = vld [vmem:[%s8584_s6 + $0x718] sm:$0xff] }
  0x55   : > { %344 = vst [vmem:[%s8589_s7 + $0x220] sm:$0xff] %v343_v4  ;;  %v471_v4 = vld [vmem:[%s8584_s6 + $0x720] sm:$0xff] }
  0x56   : > { %346 = vst [vmem:[%s8589_s7 + $0x228] sm:$0xff] %v345_v5  ;;  %v473_v5 = vld [vmem:[%s8584_s6 + $0x728] sm:$0xff] }
  0x57   : > { %348 = vst [vmem:[%s8589_s7 + $0x230] sm:$0xff] %v347_v6  ;;  %v475_v6 = vld [vmem:[%s8584_s6 + $0x730] sm:$0xff] }
  0x58   : > { %350 = vst [vmem:[%s8589_s7 + $0x238] sm:$0xff] %v349_v7  ;;  %v477_v7 = vld [vmem:[%s8584_s6 + $0x738] sm:$0xff] }
  0x59   : > { %352 = vst [vmem:[%s8589_s7 + $0x240] sm:$0xff] %v351_v8  ;;  %v479_v8 = vld [vmem:[%s8584_s6 + $0x740] sm:$0xff] }
  0x5a   : > { %354 = vst [vmem:[%s8589_s7 + $0x248] sm:$0xff] %v353_v9  ;;  %v481_v9 = vld [vmem:[%s8584_s6 + $0x748] sm:$0xff] }
  0x5b   : > { %356 = vst [vmem:[%s8589_s7 + $0x250] sm:$0xff] %v355_v10  ;;  %v483_v10 = vld [vmem:[%s8584_s6 + $0x750] sm:$0xff] }
  0x5c   : > { %358 = vst [vmem:[%s8589_s7 + $0x258] sm:$0xff] %v357_v11  ;;  %v485_v11 = vld [vmem:[%s8584_s6 + $0x758] sm:$0xff] }
  0x5d   : > { %360 = vst [vmem:[%s8589_s7 + $0x260] sm:$0xff] %v359_v12  ;;  %v487_v12 = vld [vmem:[%s8584_s6 + $0x760] sm:$0xff] }
  0x5e   : > { %362 = vst [vmem:[%s8589_s7 + $0x268] sm:$0xff] %v361_v13  ;;  %v489_v13 = vld [vmem:[%s8584_s6 + $0x768] sm:$0xff] }
  0x5f   : > { %364 = vst [vmem:[%s8589_s7 + $0x270] sm:$0xff] %v363_v14  ;;  %v491_v14 = vld [vmem:[%s8584_s6 + $0x770] sm:$0xff] }
  0x60   : > { %366 = vst [vmem:[%s8589_s7 + $0x278] sm:$0xff] %v365_v15  ;;  %v493_v15 = vld [vmem:[%s8584_s6 + $0x778] sm:$0xff] }
  0x61   : > { %368 = vst [vmem:[%s8589_s7 + $0x280] sm:$0xff] %v367_v16  ;;  %v495_v16 = vld [vmem:[%s8584_s6 + $0x780] sm:$0xff] }
  0x62   : > { %370 = vst [vmem:[%s8589_s7 + $0x288] sm:$0xff] %v369_v17  ;;  %v497_v17 = vld [vmem:[%s8584_s6 + $0x788] sm:$0xff] }
  0x63   : > { %372 = vst [vmem:[%s8589_s7 + $0x290] sm:$0xff] %v371_v18  ;;  %v499_v18 = vld [vmem:[%s8584_s6 + $0x790] sm:$0xff] }
  0x64   : > { %374 = vst [vmem:[%s8589_s7 + $0x298] sm:$0xff] %v373_v19  ;;  %v501_v19 = vld [vmem:[%s8584_s6 + $0x798] sm:$0xff] }
  0x65   : > { %376 = vst [vmem:[%s8589_s7 + $0x2a0] sm:$0xff] %v375_v20  ;;  %v503_v20 = vld [vmem:[%s8584_s6 + $0x7a0] sm:$0xff] }
  0x66   : > { %378 = vst [vmem:[%s8589_s7 + $0x2a8] sm:$0xff] %v377_v21  ;;  %v505_v21 = vld [vmem:[%s8584_s6 + $0x7a8] sm:$0xff] }
  0x67   : > { %380 = vst [vmem:[%s8589_s7 + $0x2b0] sm:$0xff] %v379_v22  ;;  %v507_v22 = vld [vmem:[%s8584_s6 + $0x7b0] sm:$0xff] }
  0x68   : > { %382 = vst [vmem:[%s8589_s7 + $0x2b8] sm:$0xff] %v381_v23  ;;  %v509_v23 = vld [vmem:[%s8584_s6 + $0x7b8] sm:$0xff] }
  0x69   : > { %384 = vst [vmem:[%s8589_s7 + $0x2c0] sm:$0xff] %v383_v24  ;;  %v511_v24 = vld [vmem:[%s8584_s6 + $0x7c0] sm:$0xff] }
  0x6a   : > { %386 = vst [vmem:[%s8589_s7 + $0x2c8] sm:$0xff] %v385_v25  ;;  %v513_v25 = vld [vmem:[%s8584_s6 + $0x7c8] sm:$0xff] }
  0x6b   : > { %388 = vst [vmem:[%s8589_s7 + $0x2d0] sm:$0xff] %v387_v26  ;;  %v515_v26 = vld [vmem:[%s8584_s6 + $0x7d0] sm:$0xff] }
  0x6c   : > { %390 = vst [vmem:[%s8589_s7 + $0x2d8] sm:$0xff] %v389_v27  ;;  %v517_v27 = vld [vmem:[%s8584_s6 + $0x7d8] sm:$0xff] }
  0x6d   : > { %392 = vst [vmem:[%s8589_s7 + $0x2e0] sm:$0xff] %v391_v28  ;;  %v519_v28 = vld [vmem:[%s8584_s6 + $0x7e0] sm:$0xff] }
  0x6e   : > { %394 = vst [vmem:[%s8589_s7 + $0x2e8] sm:$0xff] %v393_v29  ;;  %v521_v29 = vld [vmem:[%s8584_s6 + $0x7e8] sm:$0xff] }
  0x6f   : > { %396 = vst [vmem:[%s8589_s7 + $0x2f0] sm:$0xff] %v395_v30  ;;  %v523_v30 = vld [vmem:[%s8584_s6 + $0x7f0] sm:$0xff] }
  0x70   : > { %398 = vst [vmem:[%s8589_s7 + $0x2f8] sm:$0xff] %v397_v31  ;;  %v525_v31 = vld [vmem:[%s8584_s6 + $0x7f8] sm:$0xff] }
  0x71   : > { %400 = vst [vmem:[%s8589_s7 + $0x300] sm:$0xff] %v399_v32  ;;  %v527_v32 = vld [vmem:[%s8584_s6 + $0x800] sm:$0xff] }
  0x72   : > { %402 = vst [vmem:[%s8589_s7 + $0x308] sm:$0xff] %v401_v33  ;;  %v529_v33 = vld [vmem:[%s8584_s6 + $0x808] sm:$0xff] }
  0x73   : > { %404 = vst [vmem:[%s8589_s7 + $0x310] sm:$0xff] %v403_v34  ;;  %v531_v34 = vld [vmem:[%s8584_s6 + $0x810] sm:$0xff] }
  0x74   : > { %406 = vst [vmem:[%s8589_s7 + $0x318] sm:$0xff] %v405_v35  ;;  %v533_v35 = vld [vmem:[%s8584_s6 + $0x818] sm:$0xff] }
  0x75   : > { %408 = vst [vmem:[%s8589_s7 + $0x320] sm:$0xff] %v407_v36  ;;  %v535_v36 = vld [vmem:[%s8584_s6 + $0x820] sm:$0xff] }
  0x76   : > { %410 = vst [vmem:[%s8589_s7 + $0x328] sm:$0xff] %v409_v37  ;;  %v537_v37 = vld [vmem:[%s8584_s6 + $0x828] sm:$0xff] }
  0x77   : > { %412 = vst [vmem:[%s8589_s7 + $0x330] sm:$0xff] %v411_v38  ;;  %v539_v38 = vld [vmem:[%s8584_s6 + $0x830] sm:$0xff] }
  0x78   : > { %414 = vst [vmem:[%s8589_s7 + $0x338] sm:$0xff] %v413_v39  ;;  %v541_v39 = vld [vmem:[%s8584_s6 + $0x838] sm:$0xff] }
  0x79   : > { %416 = vst [vmem:[%s8589_s7 + $0x340] sm:$0xff] %v415_v40  ;;  %v543_v40 = vld [vmem:[%s8584_s6 + $0x840] sm:$0xff] }
  0x7a   : > { %418 = vst [vmem:[%s8589_s7 + $0x348] sm:$0xff] %v417_v41  ;;  %v545_v41 = vld [vmem:[%s8584_s6 + $0x848] sm:$0xff] }
  0x7b   : > { %420 = vst [vmem:[%s8589_s7 + $0x350] sm:$0xff] %v419_v42  ;;  %v547_v42 = vld [vmem:[%s8584_s6 + $0x850] sm:$0xff] }
  0x7c   : > { %422 = vst [vmem:[%s8589_s7 + $0x358] sm:$0xff] %v421_v43  ;;  %v549_v43 = vld [vmem:[%s8584_s6 + $0x858] sm:$0xff] }
  0x7d   : > { %424 = vst [vmem:[%s8589_s7 + $0x360] sm:$0xff] %v423_v44  ;;  %v551_v44 = vld [vmem:[%s8584_s6 + $0x860] sm:$0xff] }
  0x7e   : > { %426 = vst [vmem:[%s8589_s7 + $0x368] sm:$0xff] %v425_v45  ;;  %v553_v45 = vld [vmem:[%s8584_s6 + $0x868] sm:$0xff] }
  0x7f   : > { %428 = vst [vmem:[%s8589_s7 + $0x370] sm:$0xff] %v427_v46  ;;  %v555_v46 = vld [vmem:[%s8584_s6 + $0x870] sm:$0xff] }
  0x80   : > { %430 = vst [vmem:[%s8589_s7 + $0x378] sm:$0xff] %v429_v47  ;;  %v557_v47 = vld [vmem:[%s8584_s6 + $0x878] sm:$0xff] }
  0x81   : > { %432 = vst [vmem:[%s8589_s7 + $0x380] sm:$0xff] %v431_v48  ;;  %v559_v48 = vld [vmem:[%s8584_s6 + $0x880] sm:$0xff] }
  0x82   : > { %434 = vst [vmem:[%s8589_s7 + $0x388] sm:$0xff] %v433_v49  ;;  %v561_v49 = vld [vmem:[%s8584_s6 + $0x888] sm:$0xff] }
  0x83   : > { %436 = vst [vmem:[%s8589_s7 + $0x390] sm:$0xff] %v435_v50  ;;  %v563_v50 = vld [vmem:[%s8584_s6 + $0x890] sm:$0xff] }
  0x84   : > { %438 = vst [vmem:[%s8589_s7 + $0x398] sm:$0xff] %v437_v51  ;;  %v565_v51 = vld [vmem:[%s8584_s6 + $0x898] sm:$0xff] }
  0x85   : > { %440 = vst [vmem:[%s8589_s7 + $0x3a0] sm:$0xff] %v439_v52  ;;  %v567_v52 = vld [vmem:[%s8584_s6 + $0x8a0] sm:$0xff] }
  0x86   : > { %442 = vst [vmem:[%s8589_s7 + $0x3a8] sm:$0xff] %v441_v53  ;;  %v569_v53 = vld [vmem:[%s8584_s6 + $0x8a8] sm:$0xff] }
  0x87   : > { %444 = vst [vmem:[%s8589_s7 + $0x3b0] sm:$0xff] %v443_v54  ;;  %v571_v54 = vld [vmem:[%s8584_s6 + $0x8b0] sm:$0xff] }
  0x88   : > { %446 = vst [vmem:[%s8589_s7 + $0x3b8] sm:$0xff] %v445_v55  ;;  %v573_v55 = vld [vmem:[%s8584_s6 + $0x8b8] sm:$0xff] }
  0x89   : > { %448 = vst [vmem:[%s8589_s7 + $0x3c0] sm:$0xff] %v447_v56  ;;  %v575_v56 = vld [vmem:[%s8584_s6 + $0x8c0] sm:$0xff] }
  0x8a   : > { %450 = vst [vmem:[%s8589_s7 + $0x3c8] sm:$0xff] %v449_v57  ;;  %v577_v57 = vld [vmem:[%s8584_s6 + $0x8c8] sm:$0xff] }
  0x8b   : > { %452 = vst [vmem:[%s8589_s7 + $0x3d0] sm:$0xff] %v451_v58  ;;  %v579_v58 = vld [vmem:[%s8584_s6 + $0x8d0] sm:$0xff] }
  0x8c   : > { %454 = vst [vmem:[%s8589_s7 + $0x3d8] sm:$0xff] %v453_v59  ;;  %v581_v59 = vld [vmem:[%s8584_s6 + $0x8d8] sm:$0xff] }
  0x8d   : > { %456 = vst [vmem:[%s8589_s7 + $0x3e0] sm:$0xff] %v455_v60  ;;  %v583_v60 = vld [vmem:[%s8584_s6 + $0x8e0] sm:$0xff] }
  0x8e   : > { %458 = vst [vmem:[%s8589_s7 + $0x3e8] sm:$0xff] %v457_v61  ;;  %v585_v61 = vld [vmem:[%s8584_s6 + $0x8e8] sm:$0xff] }
  0x8f   : > { %460 = vst [vmem:[%s8589_s7 + $0x3f0] sm:$0xff] %v459_v62  ;;  %v587_v62 = vld [vmem:[%s8584_s6 + $0x8f0] sm:$0xff] }
  0x90   : > { %462 = vst [vmem:[%s8589_s7 + $0x3f8] sm:$0xff] %v461_v63  ;;  %v589_v63 = vld [vmem:[%s8584_s6 + $0x8f8] sm:$0xff] }
  0x91   : > { %464 = vst [vmem:[%s8589_s7 + $0x400] sm:$0xff] %v463_v0  ;;  %v591_v0 = vld [vmem:[%s8584_s6 + $0xc00] sm:$0xff] }
  0x92   : > { %466 = vst [vmem:[%s8589_s7 + $0x408] sm:$0xff] %v465_v1  ;;  %v593_v1 = vld [vmem:[%s8584_s6 + $0xc08] sm:$0xff] }
  0x93   : > { %468 = vst [vmem:[%s8589_s7 + $0x410] sm:$0xff] %v467_v2  ;;  %v595_v2 = vld [vmem:[%s8584_s6 + $0xc10] sm:$0xff] }
  0x94   : > { %470 = vst [vmem:[%s8589_s7 + $0x418] sm:$0xff] %v469_v3  ;;  %v597_v3 = vld [vmem:[%s8584_s6 + $0xc18] sm:$0xff] }
  0x95   : > { %472 = vst [vmem:[%s8589_s7 + $0x420] sm:$0xff] %v471_v4  ;;  %v599_v4 = vld [vmem:[%s8584_s6 + $0xc20] sm:$0xff] }
  0x96   : > { %474 = vst [vmem:[%s8589_s7 + $0x428] sm:$0xff] %v473_v5  ;;  %v601_v5 = vld [vmem:[%s8584_s6 + $0xc28] sm:$0xff] }
  0x97   : > { %476 = vst [vmem:[%s8589_s7 + $0x430] sm:$0xff] %v475_v6  ;;  %v603_v6 = vld [vmem:[%s8584_s6 + $0xc30] sm:$0xff] }
  0x98   : > { %478 = vst [vmem:[%s8589_s7 + $0x438] sm:$0xff] %v477_v7  ;;  %v605_v7 = vld [vmem:[%s8584_s6 + $0xc38] sm:$0xff] }
  0x99   : > { %480 = vst [vmem:[%s8589_s7 + $0x440] sm:$0xff] %v479_v8  ;;  %v607_v8 = vld [vmem:[%s8584_s6 + $0xc40] sm:$0xff] }
  0x9a   : > { %482 = vst [vmem:[%s8589_s7 + $0x448] sm:$0xff] %v481_v9  ;;  %v609_v9 = vld [vmem:[%s8584_s6 + $0xc48] sm:$0xff] }
  0x9b   : > { %484 = vst [vmem:[%s8589_s7 + $0x450] sm:$0xff] %v483_v10  ;;  %v611_v10 = vld [vmem:[%s8584_s6 + $0xc50] sm:$0xff] }
  0x9c   : > { %486 = vst [vmem:[%s8589_s7 + $0x458] sm:$0xff] %v485_v11  ;;  %v613_v11 = vld [vmem:[%s8584_s6 + $0xc58] sm:$0xff] }
  0x9d   : > { %488 = vst [vmem:[%s8589_s7 + $0x460] sm:$0xff] %v487_v12  ;;  %v615_v12 = vld [vmem:[%s8584_s6 + $0xc60] sm:$0xff] }
  0x9e   : > { %490 = vst [vmem:[%s8589_s7 + $0x468] sm:$0xff] %v489_v13  ;;  %v617_v13 = vld [vmem:[%s8584_s6 + $0xc68] sm:$0xff] }
  0x9f   : > { %492 = vst [vmem:[%s8589_s7 + $0x470] sm:$0xff] %v491_v14  ;;  %v619_v14 = vld [vmem:[%s8584_s6 + $0xc70] sm:$0xff] }
  0xa0   : > { %494 = vst [vmem:[%s8589_s7 + $0x478] sm:$0xff] %v493_v15  ;;  %v621_v15 = vld [vmem:[%s8584_s6 + $0xc78] sm:$0xff] }
  0xa1   : > { %496 = vst [vmem:[%s8589_s7 + $0x480] sm:$0xff] %v495_v16  ;;  %v623_v16 = vld [vmem:[%s8584_s6 + $0xc80] sm:$0xff] }
  0xa2   : > { %498 = vst [vmem:[%s8589_s7 + $0x488] sm:$0xff] %v497_v17  ;;  %v625_v17 = vld [vmem:[%s8584_s6 + $0xc88] sm:$0xff] }
  0xa3   : > { %500 = vst [vmem:[%s8589_s7 + $0x490] sm:$0xff] %v499_v18  ;;  %v627_v18 = vld [vmem:[%s8584_s6 + $0xc90] sm:$0xff] }
  0xa4   : > { %502 = vst [vmem:[%s8589_s7 + $0x498] sm:$0xff] %v501_v19  ;;  %v629_v19 = vld [vmem:[%s8584_s6 + $0xc98] sm:$0xff] }
  0xa5   : > { %504 = vst [vmem:[%s8589_s7 + $0x4a0] sm:$0xff] %v503_v20  ;;  %v631_v20 = vld [vmem:[%s8584_s6 + $0xca0] sm:$0xff] }
  0xa6   : > { %506 = vst [vmem:[%s8589_s7 + $0x4a8] sm:$0xff] %v505_v21  ;;  %v633_v21 = vld [vmem:[%s8584_s6 + $0xca8] sm:$0xff] }
  0xa7   : > { %508 = vst [vmem:[%s8589_s7 + $0x4b0] sm:$0xff] %v507_v22  ;;  %v635_v22 = vld [vmem:[%s8584_s6 + $0xcb0] sm:$0xff] }
  0xa8   : > { %510 = vst [vmem:[%s8589_s7 + $0x4b8] sm:$0xff] %v509_v23  ;;  %v637_v23 = vld [vmem:[%s8584_s6 + $0xcb8] sm:$0xff] }
  0xa9   : > { %512 = vst [vmem:[%s8589_s7 + $0x4c0] sm:$0xff] %v511_v24  ;;  %v639_v24 = vld [vmem:[%s8584_s6 + $0xcc0] sm:$0xff] }
  0xaa   : > { %514 = vst [vmem:[%s8589_s7 + $0x4c8] sm:$0xff] %v513_v25  ;;  %v641_v25 = vld [vmem:[%s8584_s6 + $0xcc8] sm:$0xff] }
  0xab   : > { %516 = vst [vmem:[%s8589_s7 + $0x4d0] sm:$0xff] %v515_v26  ;;  %v643_v26 = vld [vmem:[%s8584_s6 + $0xcd0] sm:$0xff] }
  0xac   : > { %518 = vst [vmem:[%s8589_s7 + $0x4d8] sm:$0xff] %v517_v27  ;;  %v645_v27 = vld [vmem:[%s8584_s6 + $0xcd8] sm:$0xff] }
  0xad   : > { %520 = vst [vmem:[%s8589_s7 + $0x4e0] sm:$0xff] %v519_v28  ;;  %v647_v28 = vld [vmem:[%s8584_s6 + $0xce0] sm:$0xff] }
  0xae   : > { %522 = vst [vmem:[%s8589_s7 + $0x4e8] sm:$0xff] %v521_v29  ;;  %v649_v29 = vld [vmem:[%s8584_s6 + $0xce8] sm:$0xff] }
  0xaf   : > { %524 = vst [vmem:[%s8589_s7 + $0x4f0] sm:$0xff] %v523_v30  ;;  %v651_v30 = vld [vmem:[%s8584_s6 + $0xcf0] sm:$0xff] }
  0xb0   : > { %526 = vst [vmem:[%s8589_s7 + $0x4f8] sm:$0xff] %v525_v31  ;;  %v653_v31 = vld [vmem:[%s8584_s6 + $0xcf8] sm:$0xff] }
  0xb1   : > { %528 = vst [vmem:[%s8589_s7 + $0x500] sm:$0xff] %v527_v32  ;;  %v655_v32 = vld [vmem:[%s8584_s6 + $0xd00] sm:$0xff] }
  0xb2   : > { %530 = vst [vmem:[%s8589_s7 + $0x508] sm:$0xff] %v529_v33  ;;  %v657_v33 = vld [vmem:[%s8584_s6 + $0xd08] sm:$0xff] }
  0xb3   : > { %532 = vst [vmem:[%s8589_s7 + $0x510] sm:$0xff] %v531_v34  ;;  %v659_v34 = vld [vmem:[%s8584_s6 + $0xd10] sm:$0xff] }
  0xb4   : > { %534 = vst [vmem:[%s8589_s7 + $0x518] sm:$0xff] %v533_v35  ;;  %v661_v35 = vld [vmem:[%s8584_s6 + $0xd18] sm:$0xff] }
  0xb5   : > { %536 = vst [vmem:[%s8589_s7 + $0x520] sm:$0xff] %v535_v36  ;;  %v663_v36 = vld [vmem:[%s8584_s6 + $0xd20] sm:$0xff] }
  0xb6   : > { %538 = vst [vmem:[%s8589_s7 + $0x528] sm:$0xff] %v537_v37  ;;  %v665_v37 = vld [vmem:[%s8584_s6 + $0xd28] sm:$0xff] }
  0xb7   : > { %540 = vst [vmem:[%s8589_s7 + $0x530] sm:$0xff] %v539_v38  ;;  %v667_v38 = vld [vmem:[%s8584_s6 + $0xd30] sm:$0xff] }
  0xb8   : > { %542 = vst [vmem:[%s8589_s7 + $0x538] sm:$0xff] %v541_v39  ;;  %v669_v39 = vld [vmem:[%s8584_s6 + $0xd38] sm:$0xff] }
  0xb9   : > { %544 = vst [vmem:[%s8589_s7 + $0x540] sm:$0xff] %v543_v40  ;;  %v671_v40 = vld [vmem:[%s8584_s6 + $0xd40] sm:$0xff] }
  0xba   : > { %546 = vst [vmem:[%s8589_s7 + $0x548] sm:$0xff] %v545_v41  ;;  %v673_v41 = vld [vmem:[%s8584_s6 + $0xd48] sm:$0xff] }
  0xbb   : > { %548 = vst [vmem:[%s8589_s7 + $0x550] sm:$0xff] %v547_v42  ;;  %v675_v42 = vld [vmem:[%s8584_s6 + $0xd50] sm:$0xff] }
  0xbc   : > { %550 = vst [vmem:[%s8589_s7 + $0x558] sm:$0xff] %v549_v43  ;;  %v677_v43 = vld [vmem:[%s8584_s6 + $0xd58] sm:$0xff] }
  0xbd   : > { %552 = vst [vmem:[%s8589_s7 + $0x560] sm:$0xff] %v551_v44  ;;  %v679_v44 = vld [vmem:[%s8584_s6 + $0xd60] sm:$0xff] }
  0xbe   : > { %554 = vst [vmem:[%s8589_s7 + $0x568] sm:$0xff] %v553_v45  ;;  %v681_v45 = vld [vmem:[%s8584_s6 + $0xd68] sm:$0xff] }
  0xbf   : > { %556 = vst [vmem:[%s8589_s7 + $0x570] sm:$0xff] %v555_v46  ;;  %v683_v46 = vld [vmem:[%s8584_s6 + $0xd70] sm:$0xff] }
  0xc0   : > { %558 = vst [vmem:[%s8589_s7 + $0x578] sm:$0xff] %v557_v47  ;;  %v685_v47 = vld [vmem:[%s8584_s6 + $0xd78] sm:$0xff] }
  0xc1   : > { %560 = vst [vmem:[%s8589_s7 + $0x580] sm:$0xff] %v559_v48  ;;  %v687_v48 = vld [vmem:[%s8584_s6 + $0xd80] sm:$0xff] }
  0xc2   : > { %562 = vst [vmem:[%s8589_s7 + $0x588] sm:$0xff] %v561_v49  ;;  %v689_v49 = vld [vmem:[%s8584_s6 + $0xd88] sm:$0xff] }
  0xc3   : > { %564 = vst [vmem:[%s8589_s7 + $0x590] sm:$0xff] %v563_v50  ;;  %v691_v50 = vld [vmem:[%s8584_s6 + $0xd90] sm:$0xff] }
  0xc4   : > { %566 = vst [vmem:[%s8589_s7 + $0x598] sm:$0xff] %v565_v51  ;;  %v693_v51 = vld [vmem:[%s8584_s6 + $0xd98] sm:$0xff] }
  0xc5   : > { %568 = vst [vmem:[%s8589_s7 + $0x5a0] sm:$0xff] %v567_v52  ;;  %v695_v52 = vld [vmem:[%s8584_s6 + $0xda0] sm:$0xff] }
  0xc6   : > { %570 = vst [vmem:[%s8589_s7 + $0x5a8] sm:$0xff] %v569_v53  ;;  %v697_v53 = vld [vmem:[%s8584_s6 + $0xda8] sm:$0xff] }
  0xc7   : > { %572 = vst [vmem:[%s8589_s7 + $0x5b0] sm:$0xff] %v571_v54  ;;  %v699_v54 = vld [vmem:[%s8584_s6 + $0xdb0] sm:$0xff] }
  0xc8   : > { %574 = vst [vmem:[%s8589_s7 + $0x5b8] sm:$0xff] %v573_v55  ;;  %v701_v55 = vld [vmem:[%s8584_s6 + $0xdb8] sm:$0xff] }
  0xc9   : > { %576 = vst [vmem:[%s8589_s7 + $0x5c0] sm:$0xff] %v575_v56  ;;  %v703_v56 = vld [vmem:[%s8584_s6 + $0xdc0] sm:$0xff] }
  0xca   : > { %578 = vst [vmem:[%s8589_s7 + $0x5c8] sm:$0xff] %v577_v57  ;;  %v705_v57 = vld [vmem:[%s8584_s6 + $0xdc8] sm:$0xff] }
  0xcb   : > { %580 = vst [vmem:[%s8589_s7 + $0x5d0] sm:$0xff] %v579_v58  ;;  %v707_v58 = vld [vmem:[%s8584_s6 + $0xdd0] sm:$0xff] }
  0xcc   : > { %582 = vst [vmem:[%s8589_s7 + $0x5d8] sm:$0xff] %v581_v59  ;;  %v709_v59 = vld [vmem:[%s8584_s6 + $0xdd8] sm:$0xff] }
  0xcd   : > { %584 = vst [vmem:[%s8589_s7 + $0x5e0] sm:$0xff] %v583_v60  ;;  %v711_v60 = vld [vmem:[%s8584_s6 + $0xde0] sm:$0xff] }
  0xce   : > { %586 = vst [vmem:[%s8589_s7 + $0x5e8] sm:$0xff] %v585_v61  ;;  %v713_v61 = vld [vmem:[%s8584_s6 + $0xde8] sm:$0xff] }
  0xcf   : > { %588 = vst [vmem:[%s8589_s7 + $0x5f0] sm:$0xff] %v587_v62  ;;  %v715_v62 = vld [vmem:[%s8584_s6 + $0xdf0] sm:$0xff] }
  0xd0   : > { %590 = vst [vmem:[%s8589_s7 + $0x5f8] sm:$0xff] %v589_v63  ;;  %v717_v63 = vld [vmem:[%s8584_s6 + $0xdf8] sm:$0xff] }
  0xd1   : > { %592 = vst [vmem:[%s8589_s7 + $0x600] sm:$0xff] %v591_v0  ;;  %v719_v0 = vld [vmem:[%s8584_s6 + $0xe00] sm:$0xff] }
  0xd2   : > { %594 = vst [vmem:[%s8589_s7 + $0x608] sm:$0xff] %v593_v1  ;;  %v721_v1 = vld [vmem:[%s8584_s6 + $0xe08] sm:$0xff] }
  0xd3   : > { %596 = vst [vmem:[%s8589_s7 + $0x610] sm:$0xff] %v595_v2  ;;  %v723_v2 = vld [vmem:[%s8584_s6 + $0xe10] sm:$0xff] }
  0xd4   : > { %598 = vst [vmem:[%s8589_s7 + $0x618] sm:$0xff] %v597_v3  ;;  %v725_v3 = vld [vmem:[%s8584_s6 + $0xe18] sm:$0xff] }
  0xd5   : > { %600 = vst [vmem:[%s8589_s7 + $0x620] sm:$0xff] %v599_v4  ;;  %v727_v4 = vld [vmem:[%s8584_s6 + $0xe20] sm:$0xff] }
  0xd6   : > { %602 = vst [vmem:[%s8589_s7 + $0x628] sm:$0xff] %v601_v5  ;;  %v729_v5 = vld [vmem:[%s8584_s6 + $0xe28] sm:$0xff] }
  0xd7   : > { %604 = vst [vmem:[%s8589_s7 + $0x630] sm:$0xff] %v603_v6  ;;  %v731_v6 = vld [vmem:[%s8584_s6 + $0xe30] sm:$0xff] }
  0xd8   : > { %606 = vst [vmem:[%s8589_s7 + $0x638] sm:$0xff] %v605_v7  ;;  %v733_v7 = vld [vmem:[%s8584_s6 + $0xe38] sm:$0xff] }
  0xd9   : > { %608 = vst [vmem:[%s8589_s7 + $0x640] sm:$0xff] %v607_v8  ;;  %v735_v8 = vld [vmem:[%s8584_s6 + $0xe40] sm:$0xff] }
  0xda   : > { %610 = vst [vmem:[%s8589_s7 + $0x648] sm:$0xff] %v609_v9  ;;  %v737_v9 = vld [vmem:[%s8584_s6 + $0xe48] sm:$0xff] }
  0xdb   : > { %612 = vst [vmem:[%s8589_s7 + $0x650] sm:$0xff] %v611_v10  ;;  %v739_v10 = vld [vmem:[%s8584_s6 + $0xe50] sm:$0xff] }
  0xdc   : > { %614 = vst [vmem:[%s8589_s7 + $0x658] sm:$0xff] %v613_v11  ;;  %v741_v11 = vld [vmem:[%s8584_s6 + $0xe58] sm:$0xff] }
  0xdd   : > { %616 = vst [vmem:[%s8589_s7 + $0x660] sm:$0xff] %v615_v12  ;;  %v743_v12 = vld [vmem:[%s8584_s6 + $0xe60] sm:$0xff] }
  0xde   : > { %618 = vst [vmem:[%s8589_s7 + $0x668] sm:$0xff] %v617_v13  ;;  %v745_v13 = vld [vmem:[%s8584_s6 + $0xe68] sm:$0xff] }
  0xdf   : > { %620 = vst [vmem:[%s8589_s7 + $0x670] sm:$0xff] %v619_v14  ;;  %v747_v14 = vld [vmem:[%s8584_s6 + $0xe70] sm:$0xff] }
  0xe0   : > { %622 = vst [vmem:[%s8589_s7 + $0x678] sm:$0xff] %v621_v15  ;;  %v749_v15 = vld [vmem:[%s8584_s6 + $0xe78] sm:$0xff] }
  0xe1   : > { %624 = vst [vmem:[%s8589_s7 + $0x680] sm:$0xff] %v623_v16  ;;  %v751_v16 = vld [vmem:[%s8584_s6 + $0xe80] sm:$0xff] }
  0xe2   : > { %626 = vst [vmem:[%s8589_s7 + $0x688] sm:$0xff] %v625_v17  ;;  %v753_v17 = vld [vmem:[%s8584_s6 + $0xe88] sm:$0xff] }
  0xe3   : > { %628 = vst [vmem:[%s8589_s7 + $0x690] sm:$0xff] %v627_v18  ;;  %v755_v18 = vld [vmem:[%s8584_s6 + $0xe90] sm:$0xff] }
  0xe4   : > { %630 = vst [vmem:[%s8589_s7 + $0x698] sm:$0xff] %v629_v19  ;;  %v757_v19 = vld [vmem:[%s8584_s6 + $0xe98] sm:$0xff] }
  0xe5   : > { %632 = vst [vmem:[%s8589_s7 + $0x6a0] sm:$0xff] %v631_v20  ;;  %v759_v20 = vld [vmem:[%s8584_s6 + $0xea0] sm:$0xff] }
  0xe6   : > { %634 = vst [vmem:[%s8589_s7 + $0x6a8] sm:$0xff] %v633_v21  ;;  %v761_v21 = vld [vmem:[%s8584_s6 + $0xea8] sm:$0xff] }
  0xe7   : > { %636 = vst [vmem:[%s8589_s7 + $0x6b0] sm:$0xff] %v635_v22  ;;  %v763_v22 = vld [vmem:[%s8584_s6 + $0xeb0] sm:$0xff] }
  0xe8   : > { %638 = vst [vmem:[%s8589_s7 + $0x6b8] sm:$0xff] %v637_v23  ;;  %v765_v23 = vld [vmem:[%s8584_s6 + $0xeb8] sm:$0xff] }
  0xe9   : > { %640 = vst [vmem:[%s8589_s7 + $0x6c0] sm:$0xff] %v639_v24  ;;  %v767_v24 = vld [vmem:[%s8584_s6 + $0xec0] sm:$0xff] }
  0xea   : > { %642 = vst [vmem:[%s8589_s7 + $0x6c8] sm:$0xff] %v641_v25  ;;  %v769_v25 = vld [vmem:[%s8584_s6 + $0xec8] sm:$0xff] }
  0xeb   : > { %644 = vst [vmem:[%s8589_s7 + $0x6d0] sm:$0xff] %v643_v26  ;;  %v771_v26 = vld [vmem:[%s8584_s6 + $0xed0] sm:$0xff] }
  0xec   : > { %646 = vst [vmem:[%s8589_s7 + $0x6d8] sm:$0xff] %v645_v27  ;;  %v773_v27 = vld [vmem:[%s8584_s6 + $0xed8] sm:$0xff] }
  0xed   : > { %648 = vst [vmem:[%s8589_s7 + $0x6e0] sm:$0xff] %v647_v28  ;;  %v775_v28 = vld [vmem:[%s8584_s6 + $0xee0] sm:$0xff] }
  0xee   : > { %650 = vst [vmem:[%s8589_s7 + $0x6e8] sm:$0xff] %v649_v29  ;;  %v777_v29 = vld [vmem:[%s8584_s6 + $0xee8] sm:$0xff] }
  0xef   : > { %652 = vst [vmem:[%s8589_s7 + $0x6f0] sm:$0xff] %v651_v30  ;;  %v779_v30 = vld [vmem:[%s8584_s6 + $0xef0] sm:$0xff] }
  0xf0   : > { %654 = vst [vmem:[%s8589_s7 + $0x6f8] sm:$0xff] %v653_v31  ;;  %v781_v31 = vld [vmem:[%s8584_s6 + $0xef8] sm:$0xff] }
  0xf1   : > { %656 = vst [vmem:[%s8589_s7 + $0x700] sm:$0xff] %v655_v32  ;;  %v783_v32 = vld [vmem:[%s8584_s6 + $0x1200] sm:$0xff] }
  0xf2   : > { %658 = vst [vmem:[%s8589_s7 + $0x708] sm:$0xff] %v657_v33  ;;  %v785_v33 = vld [vmem:[%s8584_s6 + $0x1208] sm:$0xff] }
  0xf3   : > { %660 = vst [vmem:[%s8589_s7 + $0x710] sm:$0xff] %v659_v34  ;;  %v787_v34 = vld [vmem:[%s8584_s6 + $0x1210] sm:$0xff] }
  0xf4   : > { %662 = vst [vmem:[%s8589_s7 + $0x718] sm:$0xff] %v661_v35  ;;  %v789_v35 = vld [vmem:[%s8584_s6 + $0x1218] sm:$0xff] }
  0xf5   : > { %664 = vst [vmem:[%s8589_s7 + $0x720] sm:$0xff] %v663_v36  ;;  %v791_v36 = vld [vmem:[%s8584_s6 + $0x1220] sm:$0xff] }
  0xf6   : > { %666 = vst [vmem:[%s8589_s7 + $0x728] sm:$0xff] %v665_v37  ;;  %v793_v37 = vld [vmem:[%s8584_s6 + $0x1228] sm:$0xff] }
  0xf7   : > { %668 = vst [vmem:[%s8589_s7 + $0x730] sm:$0xff] %v667_v38  ;;  %v795_v38 = vld [vmem:[%s8584_s6 + $0x1230] sm:$0xff] }
  0xf8   : > { %670 = vst [vmem:[%s8589_s7 + $0x738] sm:$0xff] %v669_v39  ;;  %v797_v39 = vld [vmem:[%s8584_s6 + $0x1238] sm:$0xff] }
  0xf9   : > { %672 = vst [vmem:[%s8589_s7 + $0x740] sm:$0xff] %v671_v40  ;;  %v799_v40 = vld [vmem:[%s8584_s6 + $0x1240] sm:$0xff] }
  0xfa   : > { %674 = vst [vmem:[%s8589_s7 + $0x748] sm:$0xff] %v673_v41  ;;  %v801_v41 = vld [vmem:[%s8584_s6 + $0x1248] sm:$0xff] }
  0xfb   : > { %676 = vst [vmem:[%s8589_s7 + $0x750] sm:$0xff] %v675_v42  ;;  %v803_v42 = vld [vmem:[%s8584_s6 + $0x1250] sm:$0xff] }
  0xfc   : > { %678 = vst [vmem:[%s8589_s7 + $0x758] sm:$0xff] %v677_v43  ;;  %v805_v43 = vld [vmem:[%s8584_s6 + $0x1258] sm:$0xff] }
  0xfd   : > { %680 = vst [vmem:[%s8589_s7 + $0x760] sm:$0xff] %v679_v44  ;;  %v807_v44 = vld [vmem:[%s8584_s6 + $0x1260] sm:$0xff] }
  0xfe   : > { %682 = vst [vmem:[%s8589_s7 + $0x768] sm:$0xff] %v681_v45  ;;  %v809_v45 = vld [vmem:[%s8584_s6 + $0x1268] sm:$0xff] }
  0xff   : > { %684 = vst [vmem:[%s8589_s7 + $0x770] sm:$0xff] %v683_v46  ;;  %v811_v46 = vld [vmem:[%s8584_s6 + $0x1270] sm:$0xff] }
 0x100   : > { %686 = vst [vmem:[%s8589_s7 + $0x778] sm:$0xff] %v685_v47  ;;  %v813_v47 = vld [vmem:[%s8584_s6 + $0x1278] sm:$0xff] }
 0x101   : > { %688 = vst [vmem:[%s8589_s7 + $0x780] sm:$0xff] %v687_v48  ;;  %v815_v48 = vld [vmem:[%s8584_s6 + $0x1280] sm:$0xff] }
 0x102   : > { %690 = vst [vmem:[%s8589_s7 + $0x788] sm:$0xff] %v689_v49  ;;  %v817_v49 = vld [vmem:[%s8584_s6 + $0x1288] sm:$0xff] }
 0x103   : > { %692 = vst [vmem:[%s8589_s7 + $0x790] sm:$0xff] %v691_v50  ;;  %v819_v50 = vld [vmem:[%s8584_s6 + $0x1290] sm:$0xff] }
 0x104   : > { %694 = vst [vmem:[%s8589_s7 + $0x798] sm:$0xff] %v693_v51  ;;  %v821_v51 = vld [vmem:[%s8584_s6 + $0x1298] sm:$0xff] }
 0x105   : > { %696 = vst [vmem:[%s8589_s7 + $0x7a0] sm:$0xff] %v695_v52  ;;  %v823_v52 = vld [vmem:[%s8584_s6 + $0x12a0] sm:$0xff] }
 0x106   : > { %698 = vst [vmem:[%s8589_s7 + $0x7a8] sm:$0xff] %v697_v53  ;;  %v825_v53 = vld [vmem:[%s8584_s6 + $0x12a8] sm:$0xff] }
 0x107   : > { %700 = vst [vmem:[%s8589_s7 + $0x7b0] sm:$0xff] %v699_v54  ;;  %v827_v54 = vld [vmem:[%s8584_s6 + $0x12b0] sm:$0xff] }
 0x108   : > { %702 = vst [vmem:[%s8589_s7 + $0x7b8] sm:$0xff] %v701_v55  ;;  %v829_v55 = vld [vmem:[%s8584_s6 + $0x12b8] sm:$0xff] }
 0x109   : > { %704 = vst [vmem:[%s8589_s7 + $0x7c0] sm:$0xff] %v703_v56  ;;  %v831_v56 = vld [vmem:[%s8584_s6 + $0x12c0] sm:$0xff] }
 0x10a   : > { %706 = vst [vmem:[%s8589_s7 + $0x7c8] sm:$0xff] %v705_v57  ;;  %v833_v57 = vld [vmem:[%s8584_s6 + $0x12c8] sm:$0xff] }
 0x10b   : > { %708 = vst [vmem:[%s8589_s7 + $0x7d0] sm:$0xff] %v707_v58  ;;  %v835_v58 = vld [vmem:[%s8584_s6 + $0x12d0] sm:$0xff] }
 0x10c   : > { %710 = vst [vmem:[%s8589_s7 + $0x7d8] sm:$0xff] %v709_v59  ;;  %v837_v59 = vld [vmem:[%s8584_s6 + $0x12d8] sm:$0xff] }
 0x10d   : > { %712 = vst [vmem:[%s8589_s7 + $0x7e0] sm:$0xff] %v711_v60  ;;  %v839_v60 = vld [vmem:[%s8584_s6 + $0x12e0] sm:$0xff] }
 0x10e   : > { %714 = vst [vmem:[%s8589_s7 + $0x7e8] sm:$0xff] %v713_v61  ;;  %v841_v61 = vld [vmem:[%s8584_s6 + $0x12e8] sm:$0xff] }
 0x10f   : > { %716 = vst [vmem:[%s8589_s7 + $0x7f0] sm:$0xff] %v715_v62  ;;  %v843_v62 = vld [vmem:[%s8584_s6 + $0x12f0] sm:$0xff] }
 0x110   : > { %718 = vst [vmem:[%s8589_s7 + $0x7f8] sm:$0xff] %v717_v63  ;;  %v845_v63 = vld [vmem:[%s8584_s6 + $0x12f8] sm:$0xff] }
 0x111   : > { %720 = vst [vmem:[%s8589_s7 + $0x800] sm:$0xff] %v719_v0  ;;  %v847_v0 = vld [vmem:[%s8584_s6 + $0x1300] sm:$0xff] }
 0x112   : > { %722 = vst [vmem:[%s8589_s7 + $0x808] sm:$0xff] %v721_v1  ;;  %v849_v1 = vld [vmem:[%s8584_s6 + $0x1308] sm:$0xff] }
 0x113   : > { %724 = vst [vmem:[%s8589_s7 + $0x810] sm:$0xff] %v723_v2  ;;  %v851_v2 = vld [vmem:[%s8584_s6 + $0x1310] sm:$0xff] }
 0x114   : > { %726 = vst [vmem:[%s8589_s7 + $0x818] sm:$0xff] %v725_v3  ;;  %v853_v3 = vld [vmem:[%s8584_s6 + $0x1318] sm:$0xff] }
 0x115   : > { %728 = vst [vmem:[%s8589_s7 + $0x820] sm:$0xff] %v727_v4  ;;  %v855_v4 = vld [vmem:[%s8584_s6 + $0x1320] sm:$0xff] }
 0x116   : > { %730 = vst [vmem:[%s8589_s7 + $0x828] sm:$0xff] %v729_v5  ;;  %v857_v5 = vld [vmem:[%s8584_s6 + $0x1328] sm:$0xff] }
 0x117   : > { %732 = vst [vmem:[%s8589_s7 + $0x830] sm:$0xff] %v731_v6  ;;  %v859_v6 = vld [vmem:[%s8584_s6 + $0x1330] sm:$0xff] }
 0x118   : > { %734 = vst [vmem:[%s8589_s7 + $0x838] sm:$0xff] %v733_v7  ;;  %v861_v7 = vld [vmem:[%s8584_s6 + $0x1338] sm:$0xff] }
 0x119   : > { %736 = vst [vmem:[%s8589_s7 + $0x840] sm:$0xff] %v735_v8  ;;  %v863_v8 = vld [vmem:[%s8584_s6 + $0x1340] sm:$0xff] }
 0x11a   : > { %738 = vst [vmem:[%s8589_s7 + $0x848] sm:$0xff] %v737_v9  ;;  %v865_v9 = vld [vmem:[%s8584_s6 + $0x1348] sm:$0xff] }
 0x11b   : > { %740 = vst [vmem:[%s8589_s7 + $0x850] sm:$0xff] %v739_v10  ;;  %v867_v10 = vld [vmem:[%s8584_s6 + $0x1350] sm:$0xff] }
 0x11c   : > { %742 = vst [vmem:[%s8589_s7 + $0x858] sm:$0xff] %v741_v11  ;;  %v869_v11 = vld [vmem:[%s8584_s6 + $0x1358] sm:$0xff] }
 0x11d   : > { %744 = vst [vmem:[%s8589_s7 + $0x860] sm:$0xff] %v743_v12  ;;  %v871_v12 = vld [vmem:[%s8584_s6 + $0x1360] sm:$0xff] }
 0x11e   : > { %746 = vst [vmem:[%s8589_s7 + $0x868] sm:$0xff] %v745_v13  ;;  %v873_v13 = vld [vmem:[%s8584_s6 + $0x1368] sm:$0xff] }
 0x11f   : > { %748 = vst [vmem:[%s8589_s7 + $0x870] sm:$0xff] %v747_v14  ;;  %v875_v14 = vld [vmem:[%s8584_s6 + $0x1370] sm:$0xff] }
 0x120   : > { %750 = vst [vmem:[%s8589_s7 + $0x878] sm:$0xff] %v749_v15  ;;  %v877_v15 = vld [vmem:[%s8584_s6 + $0x1378] sm:$0xff] }
 0x121   : > { %752 = vst [vmem:[%s8589_s7 + $0x880] sm:$0xff] %v751_v16  ;;  %v879_v16 = vld [vmem:[%s8584_s6 + $0x1380] sm:$0xff] }
 0x122   : > { %754 = vst [vmem:[%s8589_s7 + $0x888] sm:$0xff] %v753_v17  ;;  %v881_v17 = vld [vmem:[%s8584_s6 + $0x1388] sm:$0xff] }
 0x123   : > { %756 = vst [vmem:[%s8589_s7 + $0x890] sm:$0xff] %v755_v18  ;;  %v883_v18 = vld [vmem:[%s8584_s6 + $0x1390] sm:$0xff] }
 0x124   : > { %758 = vst [vmem:[%s8589_s7 + $0x898] sm:$0xff] %v757_v19  ;;  %v885_v19 = vld [vmem:[%s8584_s6 + $0x1398] sm:$0xff] }
 0x125   : > { %760 = vst [vmem:[%s8589_s7 + $0x8a0] sm:$0xff] %v759_v20  ;;  %v887_v20 = vld [vmem:[%s8584_s6 + $0x13a0] sm:$0xff] }
 0x126   : > { %762 = vst [vmem:[%s8589_s7 + $0x8a8] sm:$0xff] %v761_v21  ;;  %v889_v21 = vld [vmem:[%s8584_s6 + $0x13a8] sm:$0xff] }
 0x127   : > { %764 = vst [vmem:[%s8589_s7 + $0x8b0] sm:$0xff] %v763_v22  ;;  %v891_v22 = vld [vmem:[%s8584_s6 + $0x13b0] sm:$0xff] }
 0x128   : > { %766 = vst [vmem:[%s8589_s7 + $0x8b8] sm:$0xff] %v765_v23  ;;  %v893_v23 = vld [vmem:[%s8584_s6 + $0x13b8] sm:$0xff] }
 0x129   : > { %768 = vst [vmem:[%s8589_s7 + $0x8c0] sm:$0xff] %v767_v24  ;;  %v895_v24 = vld [vmem:[%s8584_s6 + $0x13c0] sm:$0xff] }
 0x12a   : > { %770 = vst [vmem:[%s8589_s7 + $0x8c8] sm:$0xff] %v769_v25  ;;  %v897_v25 = vld [vmem:[%s8584_s6 + $0x13c8] sm:$0xff] }
 0x12b   : > { %772 = vst [vmem:[%s8589_s7 + $0x8d0] sm:$0xff] %v771_v26  ;;  %v899_v26 = vld [vmem:[%s8584_s6 + $0x13d0] sm:$0xff] }
 0x12c   : > { %774 = vst [vmem:[%s8589_s7 + $0x8d8] sm:$0xff] %v773_v27  ;;  %v901_v27 = vld [vmem:[%s8584_s6 + $0x13d8] sm:$0xff] }
 0x12d   : > { %776 = vst [vmem:[%s8589_s7 + $0x8e0] sm:$0xff] %v775_v28  ;;  %v903_v28 = vld [vmem:[%s8584_s6 + $0x13e0] sm:$0xff] }
 0x12e   : > { %778 = vst [vmem:[%s8589_s7 + $0x8e8] sm:$0xff] %v777_v29  ;;  %v905_v29 = vld [vmem:[%s8584_s6 + $0x13e8] sm:$0xff] }
 0x12f   : > { %780 = vst [vmem:[%s8589_s7 + $0x8f0] sm:$0xff] %v779_v30  ;;  %v907_v30 = vld [vmem:[%s8584_s6 + $0x13f0] sm:$0xff] }
 0x130   : > { %782 = vst [vmem:[%s8589_s7 + $0x8f8] sm:$0xff] %v781_v31  ;;  %v909_v31 = vld [vmem:[%s8584_s6 + $0x13f8] sm:$0xff] }
 0x131   : > { %784 = vst [vmem:[%s8589_s7 + $0x900] sm:$0xff] %v783_v32  ;;  %v911_v32 = vld [vmem:[%s8584_s6 + $0x1400] sm:$0xff] }
 0x132   : > { %786 = vst [vmem:[%s8589_s7 + $0x908] sm:$0xff] %v785_v33  ;;  %v913_v33 = vld [vmem:[%s8584_s6 + $0x1408] sm:$0xff] }
 0x133   : > { %788 = vst [vmem:[%s8589_s7 + $0x910] sm:$0xff] %v787_v34  ;;  %v915_v34 = vld [vmem:[%s8584_s6 + $0x1410] sm:$0xff] }
 0x134   : > { %790 = vst [vmem:[%s8589_s7 + $0x918] sm:$0xff] %v789_v35  ;;  %v917_v35 = vld [vmem:[%s8584_s6 + $0x1418] sm:$0xff] }
 0x135   : > { %792 = vst [vmem:[%s8589_s7 + $0x920] sm:$0xff] %v791_v36  ;;  %v919_v36 = vld [vmem:[%s8584_s6 + $0x1420] sm:$0xff] }
 0x136   : > { %794 = vst [vmem:[%s8589_s7 + $0x928] sm:$0xff] %v793_v37  ;;  %v921_v37 = vld [vmem:[%s8584_s6 + $0x1428] sm:$0xff] }
 0x137   : > { %796 = vst [vmem:[%s8589_s7 + $0x930] sm:$0xff] %v795_v38  ;;  %v923_v38 = vld [vmem:[%s8584_s6 + $0x1430] sm:$0xff] }
 0x138   : > { %798 = vst [vmem:[%s8589_s7 + $0x938] sm:$0xff] %v797_v39  ;;  %v925_v39 = vld [vmem:[%s8584_s6 + $0x1438] sm:$0xff] }
 0x139   : > { %800 = vst [vmem:[%s8589_s7 + $0x940] sm:$0xff] %v799_v40  ;;  %v927_v40 = vld [vmem:[%s8584_s6 + $0x1440] sm:$0xff] }
 0x13a   : > { %802 = vst [vmem:[%s8589_s7 + $0x948] sm:$0xff] %v801_v41  ;;  %v929_v41 = vld [vmem:[%s8584_s6 + $0x1448] sm:$0xff] }
 0x13b   : > { %804 = vst [vmem:[%s8589_s7 + $0x950] sm:$0xff] %v803_v42  ;;  %v931_v42 = vld [vmem:[%s8584_s6 + $0x1450] sm:$0xff] }
 0x13c   : > { %806 = vst [vmem:[%s8589_s7 + $0x958] sm:$0xff] %v805_v43  ;;  %v933_v43 = vld [vmem:[%s8584_s6 + $0x1458] sm:$0xff] }
 0x13d   : > { %808 = vst [vmem:[%s8589_s7 + $0x960] sm:$0xff] %v807_v44  ;;  %v935_v44 = vld [vmem:[%s8584_s6 + $0x1460] sm:$0xff] }
 0x13e   : > { %810 = vst [vmem:[%s8589_s7 + $0x968] sm:$0xff] %v809_v45  ;;  %v937_v45 = vld [vmem:[%s8584_s6 + $0x1468] sm:$0xff] }
 0x13f   : > { %812 = vst [vmem:[%s8589_s7 + $0x970] sm:$0xff] %v811_v46  ;;  %v939_v46 = vld [vmem:[%s8584_s6 + $0x1470] sm:$0xff] }
 0x140   : > { %814 = vst [vmem:[%s8589_s7 + $0x978] sm:$0xff] %v813_v47  ;;  %v941_v47 = vld [vmem:[%s8584_s6 + $0x1478] sm:$0xff] }
 0x141   : > { %816 = vst [vmem:[%s8589_s7 + $0x980] sm:$0xff] %v815_v48  ;;  %v943_v48 = vld [vmem:[%s8584_s6 + $0x1480] sm:$0xff] }
 0x142   : > { %818 = vst [vmem:[%s8589_s7 + $0x988] sm:$0xff] %v817_v49  ;;  %v945_v49 = vld [vmem:[%s8584_s6 + $0x1488] sm:$0xff] }
 0x143   : > { %820 = vst [vmem:[%s8589_s7 + $0x990] sm:$0xff] %v819_v50  ;;  %v947_v50 = vld [vmem:[%s8584_s6 + $0x1490] sm:$0xff] }
 0x144   : > { %822 = vst [vmem:[%s8589_s7 + $0x998] sm:$0xff] %v821_v51  ;;  %v949_v51 = vld [vmem:[%s8584_s6 + $0x1498] sm:$0xff] }
 0x145   : > { %824 = vst [vmem:[%s8589_s7 + $0x9a0] sm:$0xff] %v823_v52  ;;  %v951_v52 = vld [vmem:[%s8584_s6 + $0x14a0] sm:$0xff] }
 0x146   : > { %826 = vst [vmem:[%s8589_s7 + $0x9a8] sm:$0xff] %v825_v53  ;;  %v953_v53 = vld [vmem:[%s8584_s6 + $0x14a8] sm:$0xff] }
 0x147   : > { %828 = vst [vmem:[%s8589_s7 + $0x9b0] sm:$0xff] %v827_v54  ;;  %v955_v54 = vld [vmem:[%s8584_s6 + $0x14b0] sm:$0xff] }
 0x148   : > { %830 = vst [vmem:[%s8589_s7 + $0x9b8] sm:$0xff] %v829_v55  ;;  %v957_v55 = vld [vmem:[%s8584_s6 + $0x14b8] sm:$0xff] }
 0x149   : > { %832 = vst [vmem:[%s8589_s7 + $0x9c0] sm:$0xff] %v831_v56  ;;  %v959_v56 = vld [vmem:[%s8584_s6 + $0x14c0] sm:$0xff] }
 0x14a   : > { %834 = vst [vmem:[%s8589_s7 + $0x9c8] sm:$0xff] %v833_v57  ;;  %v961_v57 = vld [vmem:[%s8584_s6 + $0x14c8] sm:$0xff] }
 0x14b   : > { %836 = vst [vmem:[%s8589_s7 + $0x9d0] sm:$0xff] %v835_v58  ;;  %v963_v58 = vld [vmem:[%s8584_s6 + $0x14d0] sm:$0xff] }
 0x14c   : > { %838 = vst [vmem:[%s8589_s7 + $0x9d8] sm:$0xff] %v837_v59  ;;  %v965_v59 = vld [vmem:[%s8584_s6 + $0x14d8] sm:$0xff] }
 0x14d   : > { %840 = vst [vmem:[%s8589_s7 + $0x9e0] sm:$0xff] %v839_v60  ;;  %v967_v60 = vld [vmem:[%s8584_s6 + $0x14e0] sm:$0xff] }
 0x14e   : > { %842 = vst [vmem:[%s8589_s7 + $0x9e8] sm:$0xff] %v841_v61  ;;  %v969_v61 = vld [vmem:[%s8584_s6 + $0x14e8] sm:$0xff] }
 0x14f   : > { %844 = vst [vmem:[%s8589_s7 + $0x9f0] sm:$0xff] %v843_v62  ;;  %v971_v62 = vld [vmem:[%s8584_s6 + $0x14f0] sm:$0xff] }
 0x150   : > { %846 = vst [vmem:[%s8589_s7 + $0x9f8] sm:$0xff] %v845_v63  ;;  %v973_v63 = vld [vmem:[%s8584_s6 + $0x14f8] sm:$0xff] }
 0x151   : > { %848 = vst [vmem:[%s8589_s7 + $0xa00] sm:$0xff] %v847_v0 }
 0x152   : > { %850 = vst [vmem:[%s8589_s7 + $0xa08] sm:$0xff] %v849_v1 }
 0x153   : > { %852 = vst [vmem:[%s8589_s7 + $0xa10] sm:$0xff] %v851_v2 }
 0x154   : > { %854 = vst [vmem:[%s8589_s7 + $0xa18] sm:$0xff] %v853_v3 }
 0x155   : > { %856 = vst [vmem:[%s8589_s7 + $0xa20] sm:$0xff] %v855_v4 }
 0x156   : > { %858 = vst [vmem:[%s8589_s7 + $0xa28] sm:$0xff] %v857_v5 }
 0x157   : > { %860 = vst [vmem:[%s8589_s7 + $0xa30] sm:$0xff] %v859_v6 }
 0x158   : > { %862 = vst [vmem:[%s8589_s7 + $0xa38] sm:$0xff] %v861_v7 }
 0x159   : > { %864 = vst [vmem:[%s8589_s7 + $0xa40] sm:$0xff] %v863_v8 }
 0x15a   : > { %866 = vst [vmem:[%s8589_s7 + $0xa48] sm:$0xff] %v865_v9 }
 0x15b   : > { %868 = vst [vmem:[%s8589_s7 + $0xa50] sm:$0xff] %v867_v10 }
 0x15c   : > { %870 = vst [vmem:[%s8589_s7 + $0xa58] sm:$0xff] %v869_v11 }
 0x15d   : > { %872 = vst [vmem:[%s8589_s7 + $0xa60] sm:$0xff] %v871_v12 }
 0x15e   : > { %874 = vst [vmem:[%s8589_s7 + $0xa68] sm:$0xff] %v873_v13 }
 0x15f   : > { %876 = vst [vmem:[%s8589_s7 + $0xa70] sm:$0xff] %v875_v14 }
 0x160   : > { %878 = vst [vmem:[%s8589_s7 + $0xa78] sm:$0xff] %v877_v15 }
 0x161   : > { %880 = vst [vmem:[%s8589_s7 + $0xa80] sm:$0xff] %v879_v16 }
 0x162   : > { %882 = vst [vmem:[%s8589_s7 + $0xa88] sm:$0xff] %v881_v17 }
 0x163   : > { %884 = vst [vmem:[%s8589_s7 + $0xa90] sm:$0xff] %v883_v18 }
 0x164   : > { %886 = vst [vmem:[%s8589_s7 + $0xa98] sm:$0xff] %v885_v19 }
 0x165   : > { %888 = vst [vmem:[%s8589_s7 + $0xaa0] sm:$0xff] %v887_v20 }
 0x166   : > { %890 = vst [vmem:[%s8589_s7 + $0xaa8] sm:$0xff] %v889_v21 }
 0x167   : > { %892 = vst [vmem:[%s8589_s7 + $0xab0] sm:$0xff] %v891_v22 }
 0x168   : > { %894 = vst [vmem:[%s8589_s7 + $0xab8] sm:$0xff] %v893_v23 }
 0x169   : > { %896 = vst [vmem:[%s8589_s7 + $0xac0] sm:$0xff] %v895_v24 }
 0x16a   : > { %898 = vst [vmem:[%s8589_s7 + $0xac8] sm:$0xff] %v897_v25 }
 0x16b   : > { %900 = vst [vmem:[%s8589_s7 + $0xad0] sm:$0xff] %v899_v26 }
 0x16c   : > { %902 = vst [vmem:[%s8589_s7 + $0xad8] sm:$0xff] %v901_v27 }
 0x16d   : > { %904 = vst [vmem:[%s8589_s7 + $0xae0] sm:$0xff] %v903_v28 }
 0x16e   : > { %906 = vst [vmem:[%s8589_s7 + $0xae8] sm:$0xff] %v905_v29 }
 0x16f   : > { %908 = vst [vmem:[%s8589_s7 + $0xaf0] sm:$0xff] %v907_v30 }
 0x170   : > { %910 = vst [vmem:[%s8589_s7 + $0xaf8] sm:$0xff] %v909_v31 }
 0x171   : > { %912 = vst [vmem:[%s8589_s7 + $0xb00] sm:$0xff] %v911_v32 }
 0x172   : > { %914 = vst [vmem:[%s8589_s7 + $0xb08] sm:$0xff] %v913_v33 }
 0x173   : > { %916 = vst [vmem:[%s8589_s7 + $0xb10] sm:$0xff] %v915_v34 }
 0x174   : > { %918 = vst [vmem:[%s8589_s7 + $0xb18] sm:$0xff] %v917_v35 }
 0x175   : > { %920 = vst [vmem:[%s8589_s7 + $0xb20] sm:$0xff] %v919_v36 }
 0x176   : > { %922 = vst [vmem:[%s8589_s7 + $0xb28] sm:$0xff] %v921_v37 }
 0x177   : > { %924 = vst [vmem:[%s8589_s7 + $0xb30] sm:$0xff] %v923_v38 }
 0x178   : > { %926 = vst [vmem:[%s8589_s7 + $0xb38] sm:$0xff] %v925_v39 }
 0x179   : > { %928 = vst [vmem:[%s8589_s7 + $0xb40] sm:$0xff] %v927_v40 }
 0x17a   : > { %930 = vst [vmem:[%s8589_s7 + $0xb48] sm:$0xff] %v929_v41 }
 0x17b   : > { %932 = vst [vmem:[%s8589_s7 + $0xb50] sm:$0xff] %v931_v42 }
 0x17c   : > { %934 = vst [vmem:[%s8589_s7 + $0xb58] sm:$0xff] %v933_v43 }
 0x17d   : > { %936 = vst [vmem:[%s8589_s7 + $0xb60] sm:$0xff] %v935_v44 }
 0x17e   : > { %938 = vst [vmem:[%s8589_s7 + $0xb68] sm:$0xff] %v937_v45 }
 0x17f   : > { %940 = vst [vmem:[%s8589_s7 + $0xb70] sm:$0xff] %v939_v46 }
 0x180   : > { %942 = vst [vmem:[%s8589_s7 + $0xb78] sm:$0xff] %v941_v47 }
 0x181   : > { %944 = vst [vmem:[%s8589_s7 + $0xb80] sm:$0xff] %v943_v48 }
 0x182   : > { %946 = vst [vmem:[%s8589_s7 + $0xb88] sm:$0xff] %v945_v49 }
 0x183   : > { %948 = vst [vmem:[%s8589_s7 + $0xb90] sm:$0xff] %v947_v50 }
 0x184   : > { %950 = vst [vmem:[%s8589_s7 + $0xb98] sm:$0xff] %v949_v51 }
 0x185   : > { %952 = vst [vmem:[%s8589_s7 + $0xba0] sm:$0xff] %v951_v52 }
 0x186   : > { %954 = vst [vmem:[%s8589_s7 + $0xba8] sm:$0xff] %v953_v53 }
 0x187   : > { %956 = vst [vmem:[%s8589_s7 + $0xbb0] sm:$0xff] %v955_v54 }
 0x188   : > { %958 = vst [vmem:[%s8589_s7 + $0xbb8] sm:$0xff] %v957_v55 }
 0x189   : > { %960 = vst [vmem:[%s8589_s7 + $0xbc0] sm:$0xff] %v959_v56 }
 0x18a   : > { %962 = vst [vmem:[%s8589_s7 + $0xbc8] sm:$0xff] %v961_v57 }
 0x18b   : > { %964 = vst [vmem:[%s8589_s7 + $0xbd0] sm:$0xff] %v963_v58 }
 0x18c   : > { %966 = vst [vmem:[%s8589_s7 + $0xbd8] sm:$0xff] %v965_v59 }
 0x18d   : > { %968 = vst [vmem:[%s8589_s7 + $0xbe0] sm:$0xff] %v967_v60 }
 0x18e   : > { %970 = vst [vmem:[%s8589_s7 + $0xbe8] sm:$0xff] %v969_v61 }
 0x18f   : > { %972 = vst [vmem:[%s8589_s7 + $0xbf0] sm:$0xff] %v971_v62 }
 0x190   : > { %974 = vst [vmem:[%s8589_s7 + $0xbf8] sm:$0xff] %v973_v63 }
 0x191 PF: > { %p6488_p5 = scmp.ge.s32.totalorder %s8513_s20, 1  ;;  %p979_p6 = scmp.lt.s32.totalorder %s8513_s20, 3 }
 0x193   : > { %p980_p7 = pnand %p6488_p5, %p979_p6 }
 0x194   : > { %s986_s8 = sand.u32 (!%p980_p7), 1, %s8505_s18   ;;  %s1013_s9 = smul.u32 (!%p980_p7), 192, %s8564_s21 }
 0x195   : > { %983 = sbr.rel (%p980_p7) target bundleno = 1405 (0x57d), region = 59  ;;  %p6490_p9 = scmp.ne.s32.totalorder (!%p980_p7), %s8564_s21, 0 }
 0x196   : > { %s8418_s10 = smul.u32 (!%p980_p7), 3072, %s986_s8  ;;  %p1014_p8 = scmp.lt.s32.totalorder (!%p980_p7), %s1013_s9, 383 }
 0x198   : > { %s9365_s15 = scalar_lea.vmem (!%p980_p7), [#allocation2], %s8418_s10 }
 0x19a   : > { %s10222_s9 = smov (!%p1014_p8, %s1013_s9), 383  ;;  %1024 = sbr.rel (%p6490_p9) target bundleno = 417 (0x1a1), region = 67 }
 0x19b   : > { %s6489_s11 = sshll.u32 %s10222_s9, 1 }
 0x19c   : > { %s9363_s14 = scalar_lea.vmem %s10212_s0, %s6489_s11 }
 0x19f   : > { %vm1025_vm0 = vcmask 257024   ;;  %v8515_v0 = vmov 0.0  }
 0x1a0   : > { %1026 = vst.msk [vmem:[#allocation3] sm:$0xf] %vm1025_vm0, %v8515_v0 }
 0x1a1 PF: > { %v7261_v1 = vld [vmem:[%s9365_s15 + $0x600] sm:$0xf]  ;;  %v8225_v3 = vld [vmem:[%s9365_s15 + $0x604] sm:$0xf]  ;;  %v7269_v6 = vld [vmem:[%s9365_s15 + $0x608] sm:$0xf] }
 0x1a2   : > { %v8321_v2 = vld [vmem:[%s9365_s15 + $0x8fc] sm:$0xf0]  ;;  %v7263_v5 = vld [vmem:[%s9365_s15 + $0x900] sm:$0xf0]  ;;  %v8322_v7 = vld [vmem:[%s9365_s15 + $0x904] sm:$0xf0] }
 0x1a3   : > { %v7262_v4 = vor.u32 %v8321_v2, %v7261_v1  ;;  %v7266_v8 = vor.u32 %v8225_v3, %v7263_v5  ;;  %v7270_v9 = vor.u32 %v8322_v7, %v7269_v6  ;;  %v8226_v10 = vld [vmem:[%s9365_s15 + $0x60c] sm:$0xf]  ;;  %v6493_v12 = vld [vmem:[%s9365_s15] sm:$0xf]  ;;  %v8033_v15 = vld [vmem:[%s9365_s15 + $0x4] sm:$0xf] }
 0x1a4   : > { %v7271_v11 = vld [vmem:[%s9365_s15 + $0x908] sm:$0xf0]  ;;  %v8129_v14 = vld [vmem:[%s9365_s15 + $0x2fc] sm:$0xf0]  ;;  %v6495_v16 = vld [vmem:[%s9365_s15 + $0x300] sm:$0xf0] }
 0x1a5   : > { %3867 = vmatpush.bf16.xpose.msra.mxu0 %v7262_v4  ;;  %v7274_v13 = vor.u32 %v8226_v10, %v7271_v11  ;;  %3880 = vmatpush.bf16.xpose.msra.mxu1 %v7266_v8  ;;  %v6501_v17 = vld [vmem:[%s9365_s15 + $0x8] sm:$0xf]  ;;  %v8034_v19 = vld [vmem:[%s9365_s15 + $0xc] sm:$0xf]  ;;  %v1028_v21 = vld [vmem:[%s9363_s14] sm:$0xff]  ;;  %v6494_v25 = vor.u32 %v8129_v14, %v6493_v12  ;;  %v6498_v29 = vor.u32 %v8033_v15, %v6495_v16  ;;  %vm6358_vm1 = vcmask 257024  }
 0x1a6   : > { %3893 = vmatpush.bf16.xpose.msra.mxu2 %v7270_v9  ;;  %v8130_v18 = vld [vmem:[%s9365_s15 + $0x304] sm:$0xf0]  ;;  %v6503_v20 = vld [vmem:[%s9365_s15 + $0x308] sm:$0xf0]  ;;  %v7285_v22 = vld [vmem:[%s9365_s15 + $0x618] sm:$0xf] }
 0x1a7   : > { %3906 = vmatpush.bf16.xpose.msra.mxu3 %v7274_v13  ;;  %1461 = vst [vmem:[#allocation1] ss:$4 sm:$0xff] %v1028_v21  ;;  %v8324_v23 = vld [vmem:[%s9365_s15 + $0x914] sm:$0xf0]  ;;  %v8228_v24 = vld [vmem:[%s9365_s15 + $0x61c] sm:$0xf]  ;;  %v6502_v30 = vor.u32 %v8130_v18, %v6501_v17  ;;  %v6506_v33 = vor.u32 %v8034_v19, %v6503_v20 }
 0x1a8   : > { %v7287_v26 = vld [vmem:[%s9365_s15 + $0x918] sm:$0xf0]  ;;  %v7277_v27 = vld [vmem:[%s9365_s15 + $0x610] sm:$0xf]  ;;  %v8227_v31 = vld [vmem:[%s9365_s15 + $0x614] sm:$0xf]  ;;  %v7286_v34 = vor.u32 %v8324_v23, %v7285_v22 }
 0x1a9   : > { %v8323_v28 = vld [vmem:[%s9365_s15 + $0x90c] sm:$0xf0]  ;;  %v7279_v32 = vld [vmem:[%s9365_s15 + $0x910] sm:$0xf0]  ;;  %v7290_v35 = vor.u32 %v8228_v24, %v7287_v26  ;;  %v1029_v38 = vld [vmem:[%s9363_s14 + $0x8] sm:$0xff]  ;;  %p8027_p10 = scmp.ne.s32.totalorder %s8564_s21, 1 }
 0x1aa   : > { %v7278_v36 = vor.u32 %v8323_v28, %v7277_v27  ;;  %v7282_v37 = vor.u32 %v8227_v31, %v7279_v32  ;;  %v6517_v39 = vld [vmem:[%s9365_s15 + $0x18] sm:$0xf]  ;;  %1464 = vst [vmem:[#allocation1 + $0x20] ss:$4 sm:$0xff] %v1029_v38  ;;  %v8036_v41 = vld [vmem:[%s9365_s15 + $0x1c] sm:$0xf] }
 0x1ab   : > { %v8132_v40 = vld [vmem:[%s9365_s15 + $0x314] sm:$0xf0]  ;;  %v6519_v42 = vld [vmem:[%s9365_s15 + $0x318] sm:$0xf0]  ;;  %v6509_v43 = vld [vmem:[%s9365_s15 + $0x10] sm:$0xf] }
 0x1ac   : > { %v8131_v44 = vld [vmem:[%s9365_s15 + $0x30c] sm:$0xf0]  ;;  %v8035_v45 = vld [vmem:[%s9365_s15 + $0x14] sm:$0xf]  ;;  %v7301_v47 = vld [vmem:[%s9365_s15 + $0x628] sm:$0xf]  ;;  %v6518_v54 = vor.u32 %v8132_v40, %v6517_v39  ;;  %v6522_v58 = vor.u32 %v8036_v41, %v6519_v42 }
 0x1ad   : > { %3868 = vmatpush.bf16.xpose.msra.mxu0 %v6494_v25  ;;  %3881 = vmatpush.bf16.xpose.msra.mxu1 %v6498_v29  ;;  %v6511_v46 = vld [vmem:[%s9365_s15 + $0x310] sm:$0xf0]  ;;  %v8326_v48 = vld [vmem:[%s9365_s15 + $0x924] sm:$0xf0]  ;;  %v8230_v51 = vld [vmem:[%s9365_s15 + $0x62c] sm:$0xf]  ;;  %v6510_v59 = vor.u32 %v8131_v44, %v6509_v43 }
 0x1ae   : > { %3894 = vmatpush.bf16.xpose.msra.mxu2 %v6502_v30  ;;  %v1465_v49 = vld.sshfl [vmem:[#allocation1] sm:$0xff pattern:$0x73625140]  ;;  %v1466_v50 = vld.sshfl [vmem:[#allocation1 + $0x8] sm:$0xff pattern:$0x73625140]  ;;  %v6514_v62 = vor.u32 %v8035_v45, %v6511_v46  ;;  %v7302_v63 = vor.u32 %v8326_v48, %v7301_v47 }
 0x1af   : > { %3907 = vmatpush.bf16.xpose.msra.mxu3 %v6506_v33  ;;  %v1467_v52 = vld.sshfl [vmem:[#allocation1 + $0x10] sm:$0xff pattern:$0x73625140]  ;;  %v1468_v53 = vld.sshfl [vmem:[#allocation1 + $0x18] sm:$0xff pattern:$0x73625140] }
 0x1b0   : > { %v7303_v55 = vld [vmem:[%s9365_s15 + $0x928] sm:$0xf0]  ;;  %v7293_v56 = vld [vmem:[%s9365_s15 + $0x620] sm:$0xf]  ;;  %v8229_v60 = vld [vmem:[%s9365_s15 + $0x624] sm:$0xf] }
 0x1b1   : > { %v8325_v57 = vld [vmem:[%s9365_s15 + $0x91c] sm:$0xf0]  ;;  %v7295_v61 = vld [vmem:[%s9365_s15 + $0x920] sm:$0xf0]  ;;  %v7306_v0 = vor.u32 %v8230_v51, %v7303_v55  ;;  %v1030_v3 = vld [vmem:[%s9363_s14 + $0x10] sm:$0xff] }
 0x1b2   : > { %v7294_v1 = vor.u32 %v8325_v57, %v7293_v56  ;;  %v7298_v2 = vor.u32 %v8229_v60, %v7295_v61  ;;  %v6533_v4 = vld [vmem:[%s9365_s15 + $0x28] sm:$0xf]  ;;  %1474 = vst [vmem:[#allocation1] ss:$4 sm:$0xff] %v1030_v3  ;;  %v8038_v6 = vld [vmem:[%s9365_s15 + $0x2c] sm:$0xf] }
 0x1b3   : > { %v8134_v5 = vld [vmem:[%s9365_s15 + $0x324] sm:$0xf0]  ;;  %v6535_v7 = vld [vmem:[%s9365_s15 + $0x328] sm:$0xf0]  ;;  %v6525_v8 = vld [vmem:[%s9365_s15 + $0x20] sm:$0xf] }
 0x1b4   : > { %3869 = vmatmul.bf16.vlgmr.msra.gmra.mxu0 %v1465_v49  ;;  %3882 = vmatmul.bf16.vlgmr.msra.gmra.mxu1 %v1466_v50  ;;  %v8133_v9 = vld [vmem:[%s9365_s15 + $0x31c] sm:$0xf0]  ;;  %v8037_v10 = vld [vmem:[%s9365_s15 + $0x24] sm:$0xf]  ;;  %v6534_v16 = vor.u32 %v8134_v5, %v6533_v4  ;;  %v1031_v17 = vld [vmem:[%s9363_s14 + $0x18] sm:$0xff]  ;;  %v6538_v18 = vor.u32 %v8038_v6, %v6535_v7 }
 0x1b5   : > { %3919 = vmatpush.bf16.xpose.msrb.mxu0 %v7278_v36  ;;  %3932 = vmatpush.bf16.xpose.msrb.mxu1 %v7282_v37  ;;  %v1469_v11 = vld.sshfl [vmem:[#allocation1 + $0x20] sm:$0xff pattern:$0x73625140]  ;;  %v1470_v12 = vld.sshfl [vmem:[#allocation1 + $0x28] sm:$0xff pattern:$0x73625140]  ;;  %v6526_v19 = vor.u32 %v8133_v9, %v6525_v8 }
 0x1b6   : > { %3945 = vmatpush.bf16.xpose.msrb.mxu2 %v7286_v34  ;;  %3908 = vmatmul.bf16.vlgmr.msra.gmra.mxu3 %v1468_v53  ;;  %v1471_v13 = vld.sshfl [vmem:[#allocation1 + $0x30] sm:$0xff pattern:$0x73625140]  ;;  %v6527_v14 = vld [vmem:[%s9365_s15 + $0x320] sm:$0xf0]  ;;  %v1032_v48 = vld [vmem:[%s9363_s14 + $0x20] sm:$0xff] }
 0x1b7   : > { %3958 = vmatpush.bf16.xpose.msrb.mxu3 %v7290_v35  ;;  %3895 = vmatmul.bf16.vlgmr.msra.gmra.mxu2 %v1467_v52  ;;  %v1472_v15 = vld.sshfl [vmem:[#allocation1 + $0x38] sm:$0xff pattern:$0x73625140]  ;;  %v6530_v20 = vor.u32 %v8037_v10, %v6527_v14  ;;  %v7317_v21 = vld [vmem:[%s9365_s15 + $0x638] sm:$0xf] }
 0x1b8   : > { %1476 = vst [vmem:[#allocation1 + $0x20] ss:$4 sm:$0xff] %v1031_v17  ;;  %v8328_v22 = vld [vmem:[%s9365_s15 + $0x934] sm:$0xf0]  ;;  %v8232_v23 = vld [vmem:[%s9365_s15 + $0x63c] sm:$0xf] }
 0x1b9   : > { %v7319_v24 = vld [vmem:[%s9365_s15 + $0x938] sm:$0xf0]  ;;  %v7309_v25 = vld [vmem:[%s9365_s15 + $0x630] sm:$0xf]  ;;  %v8231_v27 = vld [vmem:[%s9365_s15 + $0x634] sm:$0xf]  ;;  %v7318_v29 = vor.u32 %v8328_v22, %v7317_v21 }
 0x1ba   : > { %v8327_v26 = vld [vmem:[%s9365_s15 + $0x92c] sm:$0xf0]  ;;  %v7311_v28 = vld [vmem:[%s9365_s15 + $0x930] sm:$0xf0]  ;;  %v7322_v30 = vor.u32 %v8232_v23, %v7319_v24  ;;  %v6549_v33 = vld [vmem:[%s9365_s15 + $0x38] sm:$0xf] }
 0x1bb   : > { %v7310_v31 = vor.u32 %v8327_v26, %v7309_v25  ;;  %v7314_v32 = vor.u32 %v8231_v27, %v7311_v28  ;;  %v8136_v34 = vld [vmem:[%s9365_s15 + $0x334] sm:$0xf0]  ;;  %v8040_v35 = vld [vmem:[%s9365_s15 + $0x3c] sm:$0xf]  ;;  %v6541_v37 = vld [vmem:[%s9365_s15 + $0x30] sm:$0xf] }
 0x1bc   : > { %v6551_v36 = vld [vmem:[%s9365_s15 + $0x338] sm:$0xf0]  ;;  %v8135_v38 = vld [vmem:[%s9365_s15 + $0x32c] sm:$0xf0]  ;;  %v8039_v39 = vld [vmem:[%s9365_s15 + $0x34] sm:$0xf]  ;;  %v6550_v44 = vor.u32 %v8136_v34, %v6549_v33 }
 0x1bd   : > { %3920 = vmatpush.bf16.xpose.msrb.mxu0 %v6510_v59  ;;  %3933 = vmatpush.bf16.xpose.msrb.mxu1 %v6514_v62  ;;  %v1477_v40 = vld.sshfl [vmem:[#allocation1] sm:$0xff pattern:$0x73625140]  ;;  %v6543_v41 = vld [vmem:[%s9365_s15 + $0x330] sm:$0xf0]  ;;  %v6554_v46 = vor.u32 %v8040_v35, %v6551_v36  ;;  %v6542_v47 = vor.u32 %v8135_v38, %v6541_v37 }
 0x1be   : > { %3946 = vmatpush.bf16.xpose.msrb.mxu2 %v6518_v54  ;;  %v1478_v42 = vld.sshfl [vmem:[#allocation1 + $0x8] sm:$0xff pattern:$0x73625140]  ;;  %v1479_v43 = vld.sshfl [vmem:[#allocation1 + $0x10] sm:$0xff pattern:$0x73625140]  ;;  %v6546_v49 = vor.u32 %v8039_v39, %v6543_v41 }
 0x1bf   : > { %3959 = vmatpush.bf16.xpose.msrb.mxu3 %v6522_v58  ;;  %v1480_v45 = vld.sshfl [vmem:[#allocation1 + $0x18] sm:$0xff pattern:$0x73625140]  ;;  %v7333_v50 = vld [vmem:[%s9365_s15 + $0x648] sm:$0xf] }
 0x1c0   : > { %1486 = vst [vmem:[#allocation1] ss:$4 sm:$0xff] %v1032_v48  ;;  %v8330_v51 = vld [vmem:[%s9365_s15 + $0x944] sm:$0xf0]  ;;  %v8234_v52 = vld [vmem:[%s9365_s15 + $0x64c] sm:$0xf] }
 0x1c1   : > { %v7335_v53 = vld [vmem:[%s9365_s15 + $0x948] sm:$0xf0]  ;;  %v7325_v54 = vld [vmem:[%s9365_s15 + $0x640] sm:$0xf]  ;;  %v8233_v56 = vld [vmem:[%s9365_s15 + $0x644] sm:$0xf]  ;;  %v7334_v58 = vor.u32 %v8330_v51, %v7333_v50 }
 0x1c2   : > { %v8329_v55 = vld [vmem:[%s9365_s15 + $0x93c] sm:$0xf0]  ;;  %v7327_v57 = vld [vmem:[%s9365_s15 + $0x940] sm:$0xf0]  ;;  %v7338_v59 = vor.u32 %v8234_v52, %v7335_v53  ;;  %v6565_v62 = vld [vmem:[%s9365_s15 + $0x48] sm:$0xf] }
 0x1c3   : > { %v7326_v60 = vor.u32 %v8329_v55, %v7325_v54  ;;  %v7330_v61 = vor.u32 %v8233_v56, %v7327_v57  ;;  %v8137_v3 = vld [vmem:[%s9365_s15 + $0x33c] sm:$0xf0]  ;;  %v1481_v4 = vld.sshfl [vmem:[#allocation1 + $0x20] sm:$0xff pattern:$0x73625140] }
 0x1c4   : > { %3921 = vmatmul.bf16.vlgmr.msrb.gmra.mxu0 %v1469_v11  ;;  %3934 = vmatmul.bf16.vlgmr.msrb.gmra.mxu1 %v1470_v12  ;;  %v8041_v5 = vld [vmem:[%s9365_s15 + $0x44] sm:$0xf]  ;;  %v1483_v8 = vld.sshfl [vmem:[#allocation1 + $0x30] sm:$0xff pattern:$0x73625140] }
 0x1c5   : > { %3971 = vmatpush.bf16.xpose.msra.mxu0 %v7294_v1  ;;  %3984 = vmatpush.bf16.xpose.msra.mxu1 %v7298_v2  ;;  %v6567_v1 = vld [vmem:[%s9365_s15 + $0x348] sm:$0xf0]  ;;  %v6557_v2 = vld [vmem:[%s9365_s15 + $0x40] sm:$0xf]  ;;  %v6559_v6 = vld [vmem:[%s9365_s15 + $0x340] sm:$0xf0] }
 0x1c6   : > { %3997 = vmatpush.bf16.xpose.msra.mxu2 %v7302_v63  ;;  %3960 = vmatmul.bf16.vlgmr.msrb.gmra.mxu3 %v1472_v15  ;;  %v8138_v63 = vld [vmem:[%s9365_s15 + $0x344] sm:$0xf0]  ;;  %v1482_v7 = vld.sshfl [vmem:[#allocation1 + $0x28] sm:$0xff pattern:$0x73625140]  ;;  %v6558_v12 = vor.u32 %v8137_v3, %v6557_v2  ;;  %v6562_v14 = vor.u32 %v8041_v5, %v6559_v6 }
 0x1c7   : > { %4010 = vmatpush.bf16.xpose.msra.mxu3 %v7306_v0  ;;  %3947 = vmatmul.bf16.vlgmr.msrb.gmra.mxu2 %v1471_v13  ;;  %v8042_v0 = vld [vmem:[%s9365_s15 + $0x4c] sm:$0xf]  ;;  %v6566_v9 = vor.u32 %v8138_v63, %v6565_v62  ;;  %v1484_v10 = vld.sshfl [vmem:[#allocation1 + $0x38] sm:$0xff pattern:$0x73625140]  ;;  %v1033_v13 = vld [vmem:[%s9363_s14 + $0x28] sm:$0xff] }
 0x1c8   : > { %v6570_v11 = vor.u32 %v8042_v0, %v6567_v1  ;;  %1488 = vst [vmem:[#allocation1 + $0x20] ss:$4 sm:$0xff] %v1033_v13  ;;  %v7349_v15 = vld [vmem:[%s9365_s15 + $0x658] sm:$0xf]  ;;  %v8236_v17 = vld [vmem:[%s9365_s15 + $0x65c] sm:$0xf] }
 0x1c9   : > { %v8235_v21 = vld [vmem:[%s9365_s15 + $0x654] sm:$0xf]  ;;  %v6581_v27 = vld [vmem:[%s9365_s15 + $0x58] sm:$0xf]  ;;  %v7357_v48 = vld [vmem:[%s9365_s15 + $0x660] sm:$0xf] }
 0x1ca   : > { %v7343_v22 = vld [vmem:[%s9365_s15 + $0x950] sm:$0xf0]  ;;  %v8140_v28 = vld [vmem:[%s9365_s15 + $0x354] sm:$0xf0]  ;;  %v8237_v50 = vld [vmem:[%s9365_s15 + $0x664] sm:$0xf] }
 0x1cb   : > { %v7346_v26 = vor.u32 %v8235_v21, %v7343_v22  ;;  %v1489_v33 = vld.sshfl [vmem:[#allocation1] sm:$0xff pattern:$0x73625140]  ;;  %v8043_v34 = vld [vmem:[%s9365_s15 + $0x54] sm:$0xf]  ;;  %v6582_v38 = vor.u32 %v8140_v28, %v6581_v27 }
 0x1cc   : > { %v6575_v35 = vld [vmem:[%s9365_s15 + $0x350] sm:$0xf0]  ;;  %v1490_v36 = vld.sshfl [vmem:[#allocation1 + $0x8] sm:$0xff pattern:$0x73625140] }
 0x1cd   : > { %3972 = vmatpush.bf16.xpose.msra.mxu0 %v6526_v19  ;;  %3985 = vmatpush.bf16.xpose.msra.mxu1 %v6530_v20  ;;  %v7341_v19 = vld [vmem:[%s9365_s15 + $0x650] sm:$0xf]  ;;  %v1491_v37 = vld.sshfl [vmem:[#allocation1 + $0x10] sm:$0xff pattern:$0x73625140] }
 0x1ce   : > { %3998 = vmatpush.bf16.xpose.msra.mxu2 %v6534_v16  ;;  %v8332_v16 = vld [vmem:[%s9365_s15 + $0x954] sm:$0xf0]  ;;  %v8331_v20 = vld [vmem:[%s9365_s15 + $0x94c] sm:$0xf0]  ;;  %v7359_v51 = vld [vmem:[%s9365_s15 + $0x960] sm:$0xf0] }
 0x1cf   : > { %4011 = vmatpush.bf16.xpose.msra.mxu3 %v6538_v18  ;;  %v7351_v18 = vld [vmem:[%s9365_s15 + $0x958] sm:$0xf0]  ;;  %v7350_v23 = vor.u32 %v8332_v16, %v7349_v15  ;;  %v7342_v25 = vor.u32 %v8331_v20, %v7341_v19  ;;  %v1492_v39 = vld.sshfl [vmem:[#allocation1 + $0x18] sm:$0xff pattern:$0x73625140]  ;;  %v7362_v55 = vor.u32 %v8237_v50, %v7359_v51 }
 0x1d0   : > { %v7354_v24 = vor.u32 %v8236_v17, %v7351_v18  ;;  %v6597_v56 = vld [vmem:[%s9365_s15 + $0x68] sm:$0xf]  ;;  %v1493_v62 = vld.sshfl [vmem:[#allocation1 + $0x20] sm:$0xff pattern:$0x73625140] }
 0x1d1   : > { %v8142_v57 = vld [vmem:[%s9365_s15 + $0x364] sm:$0xf0]  ;;  %v8045_v63 = vld [vmem:[%s9365_s15 + $0x64] sm:$0xf]  ;;  %v7373_v13 = vld [vmem:[%s9365_s15 + $0x670] sm:$0xf] }
 0x1d2   : > { %v6591_v0 = vld [vmem:[%s9365_s15 + $0x360] sm:$0xf0]  ;;  %v1495_v2 = vld.sshfl [vmem:[#allocation1 + $0x30] sm:$0xff pattern:$0x73625140]  ;;  %v6598_v3 = vor.u32 %v8142_v57, %v6597_v56 }
 0x1d3   : > { %v1494_v1 = vld.sshfl [vmem:[#allocation1 + $0x28] sm:$0xff pattern:$0x73625140]  ;;  %v8239_v15 = vld [vmem:[%s9365_s15 + $0x674] sm:$0xf] }
 0x1d4   : > { %3973 = vmatmul.bf16.vlgmr.msra.gmra.mxu0 %v1477_v40  ;;  %3986 = vmatmul.bf16.vlgmr.msra.gmra.mxu1 %v1478_v42  ;;  %v1034_v42 = vld [vmem:[%s9363_s14 + $0x30] sm:$0xff]  ;;  %v7375_v16 = vld [vmem:[%s9365_s15 + $0x970] sm:$0xf0]  ;;  %v6613_v21 = vld [vmem:[%s9365_s15 + $0x78] sm:$0xf] }
 0x1d5   : > { %4023 = vmatpush.bf16.xpose.msrb.mxu0 %v7310_v31  ;;  %4036 = vmatpush.bf16.xpose.msrb.mxu1 %v7314_v32  ;;  %v6573_v31 = vld [vmem:[%s9365_s15 + $0x50] sm:$0xf]  ;;  %1498 = vst [vmem:[#allocation1] ss:$4 sm:$0xff] %v1034_v42  ;;  %v7378_v20 = vor.u32 %v8239_v15, %v7375_v16  ;;  %v8144_v22 = vld [vmem:[%s9365_s15 + $0x374] sm:$0xf0] }
 0x1d6   : > { %4049 = vmatpush.bf16.xpose.msrb.mxu2 %v7318_v29  ;;  %4012 = vmatmul.bf16.vlgmr.msra.gmra.mxu3 %v1480_v45  ;;  %v8044_v29 = vld [vmem:[%s9365_s15 + $0x5c] sm:$0xf]  ;;  %v8139_v32 = vld [vmem:[%s9365_s15 + $0x34c] sm:$0xf0]  ;;  %v8334_v45 = vld [vmem:[%s9365_s15 + $0x964] sm:$0xf0] }
 0x1d7   : > { %4062 = vmatpush.bf16.xpose.msrb.mxu3 %v7322_v30  ;;  %3999 = vmatmul.bf16.vlgmr.msra.gmra.mxu2 %v1479_v43  ;;  %v6583_v30 = vld [vmem:[%s9365_s15 + $0x358] sm:$0xf0]  ;;  %v6574_v41 = vor.u32 %v8139_v32, %v6573_v31  ;;  %v6578_v43 = vor.u32 %v8043_v34, %v6575_v35  ;;  %v8047_v27 = vld [vmem:[%s9365_s15 + $0x74] sm:$0xf]  ;;  %v7389_v42 = vld [vmem:[%s9365_s15 + $0x680] sm:$0xf] }
 0x1d8   : > { %v6586_v40 = vor.u32 %v8044_v29, %v6583_v30  ;;  %v6607_v28 = vld [vmem:[%s9365_s15 + $0x370] sm:$0xf0]  ;;  %v6614_v29 = vor.u32 %v8144_v22, %v6613_v21  ;;  %v6629_v50 = vld [vmem:[%s9365_s15 + $0x88] sm:$0xf]  ;;  %v8049_v56 = vld [vmem:[%s9365_s15 + $0x84] sm:$0xf] }
 0x1d9   : > { %v6610_v35 = vor.u32 %v8047_v27, %v6607_v28  ;;  %v8146_v51 = vld [vmem:[%s9365_s15 + $0x384] sm:$0xf0]  ;;  %v6623_v57 = vld [vmem:[%s9365_s15 + $0x380] sm:$0xf0]  ;;  %v6645_v15 = vld [vmem:[%s9365_s15 + $0x98] sm:$0xf] }
 0x1da   : > { %v8148_v16 = vld [vmem:[%s9365_s15 + $0x394] sm:$0xf0]  ;;  %v8051_v21 = vld [vmem:[%s9365_s15 + $0x94] sm:$0xf] }
 0x1db   : > { %v6639_v22 = vld [vmem:[%s9365_s15 + $0x390] sm:$0xf0] }
 0x1dc   : > { %v1501_v30 = vld.sshfl [vmem:[#allocation1] sm:$0xff pattern:$0x73625140]  ;;  %v1503_v34 = vld.sshfl [vmem:[#allocation1 + $0x10] sm:$0xff pattern:$0x73625140] }
 0x1dd   : > { %4024 = vmatpush.bf16.xpose.msrb.mxu0 %v6542_v47  ;;  %4037 = vmatpush.bf16.xpose.msrb.mxu1 %v6546_v49  ;;  %v7367_v47 = vld [vmem:[%s9365_s15 + $0x968] sm:$0xf0]  ;;  %v8333_v49 = vld [vmem:[%s9365_s15 + $0x95c] sm:$0xf0] }
 0x1de   : > { %4050 = vmatpush.bf16.xpose.msrb.mxu2 %v6550_v44  ;;  %v7365_v44 = vld [vmem:[%s9365_s15 + $0x668] sm:$0xf]  ;;  %v7358_v54 = vor.u32 %v8333_v49, %v7357_v48 }
 0x1df   : > { %4063 = vmatpush.bf16.xpose.msrb.mxu3 %v6554_v46  ;;  %v8238_v46 = vld [vmem:[%s9365_s15 + $0x66c] sm:$0xf]  ;;  %v7366_v52 = vor.u32 %v8334_v45, %v7365_v44  ;;  %v8241_v44 = vld [vmem:[%s9365_s15 + $0x684] sm:$0xf] }
 0x1e0   : > { %v7370_v53 = vor.u32 %v8238_v46, %v7367_v47  ;;  %v7391_v45 = vld [vmem:[%s9365_s15 + $0x980] sm:$0xf0] }
 0x1e1   : > { %v7394_v49 = vor.u32 %v8241_v44, %v7391_v45 }
 0x1e4   : > { %4025 = vmatmul.bf16.vlgmr.msrb.gmra.mxu0 %v1481_v4  ;;  %4038 = vmatmul.bf16.vlgmr.msrb.gmra.mxu1 %v1482_v7  ;;  %v1496_v4 = vld.sshfl [vmem:[#allocation1 + $0x38] sm:$0xff pattern:$0x73625140] }
 0x1e5   : > { %4075 = vmatpush.bf16.xpose.msra.mxu0 %v7326_v60  ;;  %4088 = vmatpush.bf16.xpose.msra.mxu1 %v7330_v61  ;;  %v6589_v60 = vld [vmem:[%s9365_s15 + $0x60] sm:$0xf]  ;;  %v1035_v7 = vld [vmem:[%s9363_s14 + $0x38] sm:$0xff] }
 0x1e6   : > { %4101 = vmatpush.bf16.xpose.msra.mxu2 %v7334_v58  ;;  %4064 = vmatmul.bf16.vlgmr.msrb.gmra.mxu3 %v1484_v10  ;;  %v8046_v58 = vld [vmem:[%s9365_s15 + $0x6c] sm:$0xf]  ;;  %v8141_v61 = vld [vmem:[%s9365_s15 + $0x35c] sm:$0xf0]  ;;  %1500 = vst [vmem:[#allocation1 + $0x20] ss:$4 sm:$0xff] %v1035_v7 }
 0x1e7   : > { %4114 = vmatpush.bf16.xpose.msra.mxu3 %v7338_v59  ;;  %4051 = vmatmul.bf16.vlgmr.msrb.gmra.mxu2 %v1483_v8  ;;  %v6599_v59 = vld [vmem:[%s9365_s15 + $0x368] sm:$0xf0]  ;;  %v6590_v6 = vor.u32 %v8141_v61, %v6589_v60  ;;  %v6594_v8 = vor.u32 %v8045_v63, %v6591_v0  ;;  %v8336_v10 = vld [vmem:[%s9365_s15 + $0x974] sm:$0xf0]  ;;  %v6626_v0 = vor.u32 %v8049_v56, %v6623_v57  ;;  %v7405_v7 = vld [vmem:[%s9365_s15 + $0x690] sm:$0xf] }
 0x1e8   : > { %v6602_v5 = vor.u32 %v8046_v58, %v6599_v59  ;;  %v6630_v58 = vor.u32 %v8146_v51, %v6629_v50  ;;  %v6663_v51 = vld [vmem:[%s9365_s15 + $0x3a8] sm:$0xf0]  ;;  %v8053_v57 = vld [vmem:[%s9365_s15 + $0xa4] sm:$0xf] }
 0x1ed   : > { %4076 = vmatpush.bf16.xpose.msra.mxu0 %v6558_v12  ;;  %4089 = vmatpush.bf16.xpose.msra.mxu1 %v6562_v14  ;;  %v7383_v12 = vld [vmem:[%s9365_s15 + $0x978] sm:$0xf0]  ;;  %v8335_v14 = vld [vmem:[%s9365_s15 + $0x96c] sm:$0xf0] }
 0x1ee   : > { %4102 = vmatpush.bf16.xpose.msra.mxu2 %v6566_v9  ;;  %v7381_v9 = vld [vmem:[%s9365_s15 + $0x678] sm:$0xf]  ;;  %v7374_v19 = vor.u32 %v8335_v14, %v7373_v13  ;;  %v1507_v63 = vld.sshfl [vmem:[#allocation1 + $0x30] sm:$0xff pattern:$0x73625140] }
 0x1ef   : > { %4115 = vmatpush.bf16.xpose.msra.mxu3 %v6570_v11  ;;  %v8240_v11 = vld [vmem:[%s9365_s15 + $0x67c] sm:$0xf]  ;;  %v7382_v17 = vor.u32 %v8336_v10, %v7381_v9  ;;  %v8243_v9 = vld [vmem:[%s9365_s15 + $0x694] sm:$0xf] }
 0x1f0   : > { %v7386_v18 = vor.u32 %v8240_v11, %v7383_v12  ;;  %v1505_v59 = vld.sshfl [vmem:[#allocation1 + $0x20] sm:$0xff pattern:$0x73625140]  ;;  %v7407_v10 = vld [vmem:[%s9365_s15 + $0x990] sm:$0xf0] }
 0x1f1   : > { %v7410_v14 = vor.u32 %v8243_v9, %v7407_v10  ;;  %v7447_v10 = vld [vmem:[%s9365_s15 + $0x9b8] sm:$0xf0] }
 0x1f4   : > { %4077 = vmatmul.bf16.vlgmr.msra.gmra.mxu0 %v1489_v33  ;;  %4090 = vmatmul.bf16.vlgmr.msra.gmra.mxu1 %v1490_v36  ;;  %v1502_v33 = vld.sshfl [vmem:[#allocation1 + $0x8] sm:$0xff pattern:$0x73625140]  ;;  %v1504_v36 = vld.sshfl [vmem:[#allocation1 + $0x18] sm:$0xff pattern:$0x73625140] }
 0x1f5   : > { %4127 = vmatpush.bf16.xpose.msrb.mxu0 %v7342_v25  ;;  %4140 = vmatpush.bf16.xpose.msrb.mxu1 %v7346_v26  ;;  %v6605_v25 = vld [vmem:[%s9365_s15 + $0x70] sm:$0xf] }
 0x1f6   : > { %4153 = vmatpush.bf16.xpose.msrb.mxu2 %v7350_v23  ;;  %4116 = vmatmul.bf16.vlgmr.msra.gmra.mxu3 %v1492_v39  ;;  %v8048_v23 = vld [vmem:[%s9365_s15 + $0x7c] sm:$0xf]  ;;  %v8143_v26 = vld [vmem:[%s9365_s15 + $0x36c] sm:$0xf0]  ;;  %v8338_v39 = vld [vmem:[%s9365_s15 + $0x984] sm:$0xf0] }
 0x1f7   : > { %4166 = vmatpush.bf16.xpose.msrb.mxu3 %v7354_v24  ;;  %4103 = vmatmul.bf16.vlgmr.msra.gmra.mxu2 %v1491_v37  ;;  %v6615_v24 = vld [vmem:[%s9365_s15 + $0x378] sm:$0xf0]  ;;  %v6606_v32 = vor.u32 %v8143_v26, %v6605_v25 }
 0x1f8   : > { %v6618_v31 = vor.u32 %v8048_v23, %v6615_v24  ;;  %v1036_v37 = vld [vmem:[%s9363_s14 + $0x40] sm:$0xff]  ;;  %v6646_v23 = vor.u32 %v8148_v16, %v6645_v15  ;;  %v8247_v15 = vld [vmem:[%s9365_s15 + $0x6b4] sm:$0xf] }
 0x1f9   : > { %1510 = vst [vmem:[#allocation1] ss:$4 sm:$0xff] %v1036_v37  ;;  %v8341_v37 = vld [vmem:[%s9365_s15 + $0x99c] sm:$0xf0]  ;;  %v7439_v16 = vld [vmem:[%s9365_s15 + $0x9b0] sm:$0xf0] }
 0x1fd   : > { %4128 = vmatpush.bf16.xpose.msrb.mxu0 %v6574_v41  ;;  %4141 = vmatpush.bf16.xpose.msrb.mxu1 %v6578_v43  ;;  %v7399_v41 = vld [vmem:[%s9365_s15 + $0x988] sm:$0xf0]  ;;  %v8337_v43 = vld [vmem:[%s9365_s15 + $0x97c] sm:$0xf0] }
 0x1fe   : > { %4154 = vmatpush.bf16.xpose.msrb.mxu2 %v6582_v38  ;;  %v7397_v38 = vld [vmem:[%s9365_s15 + $0x688] sm:$0xf]  ;;  %v7390_v48 = vor.u32 %v8337_v43, %v7389_v42 }
 0x1ff   : > { %4167 = vmatpush.bf16.xpose.msrb.mxu3 %v6586_v40  ;;  %v8242_v40 = vld [vmem:[%s9365_s15 + $0x68c] sm:$0xf]  ;;  %v7398_v46 = vor.u32 %v8338_v39, %v7397_v38  ;;  %v8245_v39 = vld [vmem:[%s9365_s15 + $0x6a4] sm:$0xf] }
 0x200   : > { %v7402_v47 = vor.u32 %v8242_v40, %v7399_v41  ;;  %v1513_v24 = vld.sshfl [vmem:[#allocation1] sm:$0xff pattern:$0x73625140]  ;;  %v1514_v27 = vld.sshfl [vmem:[#allocation1 + $0x8] sm:$0xff pattern:$0x73625140] }
 0x201   : > { %v1515_v28 = vld.sshfl [vmem:[#allocation1 + $0x10] sm:$0xff pattern:$0x73625140]  ;;  %v7423_v40 = vld [vmem:[%s9365_s15 + $0x9a0] sm:$0xf0] }
 0x204   : > { %4129 = vmatmul.bf16.vlgmr.msrb.gmra.mxu0 %v1493_v62  ;;  %4142 = vmatmul.bf16.vlgmr.msrb.gmra.mxu1 %v1494_v1  ;;  %v1506_v62 = vld.sshfl [vmem:[#allocation1 + $0x28] sm:$0xff pattern:$0x73625140]  ;;  %v1508_v1 = vld.sshfl [vmem:[#allocation1 + $0x38] sm:$0xff pattern:$0x73625140] }
 0x205   : > { %4179 = vmatpush.bf16.xpose.msra.mxu0 %v7358_v54  ;;  %4192 = vmatpush.bf16.xpose.msra.mxu1 %v7362_v55  ;;  %v6621_v54 = vld [vmem:[%s9365_s15 + $0x80] sm:$0xf] }
 0x206   : > { %4205 = vmatpush.bf16.xpose.msra.mxu2 %v7366_v52  ;;  %4168 = vmatmul.bf16.vlgmr.msrb.gmra.mxu3 %v1496_v4  ;;  %v8050_v52 = vld [vmem:[%s9365_s15 + $0x8c] sm:$0xf]  ;;  %v8145_v55 = vld [vmem:[%s9365_s15 + $0x37c] sm:$0xf0]  ;;  %v8340_v4 = vld [vmem:[%s9365_s15 + $0x994] sm:$0xf0] }
 0x207   : > { %4218 = vmatpush.bf16.xpose.msra.mxu3 %v7370_v53  ;;  %4155 = vmatmul.bf16.vlgmr.msrb.gmra.mxu2 %v1495_v2  ;;  %v6631_v53 = vld [vmem:[%s9365_s15 + $0x388] sm:$0xf0]  ;;  %v6622_v61 = vor.u32 %v8145_v55, %v6621_v54  ;;  %v1037_v2 = vld [vmem:[%s9363_s14 + $0x48] sm:$0xff] }
 0x208   : > { %v6634_v60 = vor.u32 %v8050_v52, %v6631_v53  ;;  %1512 = vst [vmem:[#allocation1 + $0x20] ss:$4 sm:$0xff] %v1037_v2  ;;  %v6653_v52 = vld [vmem:[%s9365_s15 + $0xa0] sm:$0xf] }
 0x209   : > { %v8149_v53 = vld [vmem:[%s9365_s15 + $0x39c] sm:$0xf0] }
 0x20d   : > { %4180 = vmatpush.bf16.xpose.msra.mxu0 %v6590_v6  ;;  %4193 = vmatpush.bf16.xpose.msra.mxu1 %v6594_v8  ;;  %v7415_v6 = vld [vmem:[%s9365_s15 + $0x998] sm:$0xf0]  ;;  %v8339_v8 = vld [vmem:[%s9365_s15 + $0x98c] sm:$0xf0] }
 0x20e   : > { %4206 = vmatpush.bf16.xpose.msra.mxu2 %v6598_v3  ;;  %v7413_v3 = vld [vmem:[%s9365_s15 + $0x698] sm:$0xf]  ;;  %v7406_v13 = vor.u32 %v8339_v8, %v7405_v7  ;;  %v8248_v8 = vld [vmem:[%s9365_s15 + $0x6bc] sm:$0xf] }
 0x20f   : > { %4219 = vmatpush.bf16.xpose.msra.mxu3 %v6602_v5  ;;  %v8244_v5 = vld [vmem:[%s9365_s15 + $0x69c] sm:$0xf]  ;;  %v7414_v11 = vor.u32 %v8340_v4, %v7413_v3  ;;  %v1519_v2 = vld.sshfl [vmem:[#allocation1 + $0x30] sm:$0xff pattern:$0x73625140] }
 0x210   : > { %v7418_v12 = vor.u32 %v8244_v5, %v7415_v6  ;;  %v1520_v4 = vld.sshfl [vmem:[#allocation1 + $0x38] sm:$0xff pattern:$0x73625140]  ;;  %v7445_v6 = vld [vmem:[%s9365_s15 + $0x6b8] sm:$0xf] }
 0x211   : > { %v1039_v5 = vld [vmem:[%s9363_s14 + $0x58] sm:$0xff]  ;;  %v8344_v7 = vld [vmem:[%s9365_s15 + $0x9b4] sm:$0xf0] }
 0x214   : > { %4181 = vmatmul.bf16.vlgmr.msra.gmra.mxu0 %v1501_v30  ;;  %4194 = vmatmul.bf16.vlgmr.msra.gmra.mxu1 %v1502_v33  ;;  %v1516_v30 = vld.sshfl [vmem:[#allocation1 + $0x18] sm:$0xff pattern:$0x73625140]  ;;  %v8342_v33 = vld [vmem:[%s9365_s15 + $0x9a4] sm:$0xf0] }
 0x215   : > { %4231 = vmatpush.bf16.xpose.msrb.mxu0 %v7374_v19  ;;  %4244 = vmatpush.bf16.xpose.msrb.mxu1 %v7378_v20  ;;  %v6637_v19 = vld [vmem:[%s9365_s15 + $0x90] sm:$0xf] }
 0x216   : > { %4257 = vmatpush.bf16.xpose.msrb.mxu2 %v7382_v17  ;;  %4220 = vmatmul.bf16.vlgmr.msra.gmra.mxu3 %v1504_v36  ;;  %v8052_v17 = vld [vmem:[%s9365_s15 + $0x9c] sm:$0xf]  ;;  %v8147_v20 = vld [vmem:[%s9365_s15 + $0x38c] sm:$0xf0]  ;;  %v7421_v36 = vld [vmem:[%s9365_s15 + $0x6a0] sm:$0xf] }
 0x217   : > { %4270 = vmatpush.bf16.xpose.msrb.mxu3 %v7386_v18  ;;  %4207 = vmatmul.bf16.vlgmr.msra.gmra.mxu2 %v1503_v34  ;;  %v6647_v18 = vld [vmem:[%s9365_s15 + $0x398] sm:$0xf0]  ;;  %v6638_v26 = vor.u32 %v8147_v20, %v6637_v19  ;;  %v8246_v34 = vld [vmem:[%s9365_s15 + $0x6ac] sm:$0xf]  ;;  %v7422_v45 = vor.u32 %v8341_v37, %v7421_v36  ;;  %v7446_v19 = vor.u32 %v8344_v7, %v7445_v6  ;;  %v6685_v6 = vld [vmem:[%s9365_s15 + $0xc0] sm:$0xf] }
 0x218   : > { %v6650_v25 = vor.u32 %v8052_v17, %v6647_v18  ;;  %v7450_v20 = vor.u32 %v8248_v8, %v7447_v10  ;;  %v8153_v7 = vld [vmem:[%s9365_s15 + $0x3bc] sm:$0xf0] }
 0x21d   : > { %4232 = vmatpush.bf16.xpose.msrb.mxu0 %v6606_v32  ;;  %4245 = vmatpush.bf16.xpose.msrb.mxu1 %v6610_v35  ;;  %v7429_v32 = vld [vmem:[%s9365_s15 + $0x6a8] sm:$0xf]  ;;  %v7431_v35 = vld [vmem:[%s9365_s15 + $0x9a8] sm:$0xf0] }
 0x21e   : > { %4258 = vmatpush.bf16.xpose.msrb.mxu2 %v6614_v29  ;;  %v6642_v29 = vor.u32 %v8051_v21, %v6639_v22  ;;  %v7430_v42 = vor.u32 %v8342_v33, %v7429_v32  ;;  %v7434_v44 = vor.u32 %v8246_v34, %v7431_v35  ;;  %v8055_v34 = vld [vmem:[%s9365_s15 + $0xb4] sm:$0xf] }
 0x21f   : > { %4271 = vmatpush.bf16.xpose.msrb.mxu3 %v6618_v31  ;;  %v1038_v31 = vld [vmem:[%s9363_s14 + $0x50] sm:$0xff]  ;;  %v6671_v35 = vld [vmem:[%s9365_s15 + $0x3b0] sm:$0xf0] }
 0x220   : > { %1522 = vst [vmem:[#allocation1] ss:$4 sm:$0xff] %v1038_v31 }
 0x224   : > { %4233 = vmatmul.bf16.vlgmr.msrb.gmra.mxu0 %v1505_v59  ;;  %4246 = vmatmul.bf16.vlgmr.msrb.gmra.mxu1 %v1506_v62  ;;  %v1517_v62 = vld.sshfl [vmem:[#allocation1 + $0x20] sm:$0xff pattern:$0x73625140] }
 0x225   : > { %4283 = vmatpush.bf16.xpose.msra.mxu0 %v7390_v48  ;;  %4296 = vmatpush.bf16.xpose.msra.mxu1 %v7394_v49  ;;  %v8150_v48 = vld [vmem:[%s9365_s15 + $0x3a4] sm:$0xf0]  ;;  %v8054_v49 = vld [vmem:[%s9365_s15 + $0xac] sm:$0xf] }
 0x226   : > { %4309 = vmatpush.bf16.xpose.msra.mxu2 %v7398_v46  ;;  %4272 = vmatmul.bf16.vlgmr.msrb.gmra.mxu3 %v1508_v1  ;;  %v7426_v46 = vor.u32 %v8245_v39, %v7423_v40  ;;  %v1518_v1 = vld.sshfl [vmem:[#allocation1 + $0x28] sm:$0xff pattern:$0x73625140] }
 0x227   : > { %4322 = vmatpush.bf16.xpose.msra.mxu3 %v7402_v47  ;;  %4259 = vmatmul.bf16.vlgmr.msrb.gmra.mxu2 %v1507_v63  ;;  %v6661_v47 = vld [vmem:[%s9365_s15 + $0xa8] sm:$0xf]  ;;  %v6666_v63 = vor.u32 %v8054_v49, %v6663_v51  ;;  %1524 = vst [vmem:[#allocation1 + $0x20] ss:$4 sm:$0xff] %v1039_v5  ;;  %v8250_v49 = vld [vmem:[%s9365_s15 + $0x6cc] sm:$0xf] }
 0x228   : > { %v1525_v39 = vld.sshfl [vmem:[#allocation1] sm:$0xff pattern:$0x73625140]  ;;  %v7463_v51 = vld [vmem:[%s9365_s15 + $0x9c8] sm:$0xf0] }
 0x229   : > { %v6695_v5 = vld [vmem:[%s9365_s15 + $0x3c8] sm:$0xf0] }
 0x22d   : > { %4284 = vmatpush.bf16.xpose.msra.mxu0 %v6622_v61  ;;  %4297 = vmatpush.bf16.xpose.msra.mxu1 %v6626_v0  ;;  %v6654_v0 = vor.u32 %v8149_v53, %v6653_v52  ;;  %v7453_v52 = vld [vmem:[%s9365_s15 + $0x6c0] sm:$0xf] }
 0x22e   : > { %4310 = vmatpush.bf16.xpose.msra.mxu2 %v6630_v58  ;;  %v6655_v58 = vld [vmem:[%s9365_s15 + $0x3a0] sm:$0xf0]  ;;  %v8345_v53 = vld [vmem:[%s9365_s15 + $0x9bc] sm:$0xf0] }
 0x22f   : > { %4323 = vmatpush.bf16.xpose.msra.mxu3 %v6634_v60  ;;  %v6662_v60 = vor.u32 %v8150_v48, %v6661_v47  ;;  %v6658_v3 = vor.u32 %v8053_v57, %v6655_v58  ;;  %v7461_v47 = vld [vmem:[%s9365_s15 + $0x6c8] sm:$0xf]  ;;  %v7455_v57 = vld [vmem:[%s9365_s15 + $0x9c0] sm:$0xf0] }
 0x230   : > { %v8346_v48 = vld [vmem:[%s9365_s15 + $0x9c4] sm:$0xf0] }
 0x231   : > { %v3870_v38 = vpop.f32.mrf.mxu0  ;;  %v3883_v41 = vpop.f32.mrf.mxu1 }
 0x232   : > { %v3884_v43 = vadd.f32 %v3883_v41, %v3870_v38 }
 0x234   : > { %4285 = vmatmul.bf16.vlgmr.msra.gmra.mxu0 %v1513_v24  ;;  %4298 = vmatmul.bf16.vlgmr.msra.gmra.mxu1 %v1514_v27  ;;  %v6677_v24 = vld [vmem:[%s9365_s15 + $0xb8] sm:$0xf] }
 0x235   : > { %4335 = vmatpush.bf16.xpose.msrb.mxu0 %v7406_v13  ;;  %4348 = vmatpush.bf16.xpose.msrb.mxu1 %v7410_v14 }
 0x236   : > { %4361 = vmatpush.bf16.xpose.msrb.mxu2 %v7414_v11  ;;  %4324 = vmatmul.bf16.vlgmr.msra.gmra.mxu3 %v1516_v30  ;;  %v7437_v11 = vld [vmem:[%s9365_s15 + $0x6b0] sm:$0xf] }
 0x237   : > { %4374 = vmatpush.bf16.xpose.msrb.mxu3 %v7418_v12  ;;  %4311 = vmatmul.bf16.vlgmr.msra.gmra.mxu2 %v1515_v28  ;;  %v8343_v12 = vld [vmem:[%s9365_s15 + $0x9ac] sm:$0xf0]  ;;  %v6679_v28 = vld [vmem:[%s9365_s15 + $0x3b8] sm:$0xf0] }
 0x238   : > { %v7438_v21 = vor.u32 %v8343_v12, %v7437_v11  ;;  %v8151_v30 = vld [vmem:[%s9365_s15 + $0x3ac] sm:$0xf0]  ;;  %v8057_v11 = vld [vmem:[%s9365_s15 + $0xc4] sm:$0xf] }
 0x239   : > { %v3909_v55 = vpop.f32.mrf.mxu3  ;;  %v3872_v56 = vpop.f32.mrf.mxu0  ;;  %v6687_v12 = vld [vmem:[%s9365_s15 + $0x3c0] sm:$0xf0] }
 0x23a   : > { %v3896_v50 = vpop.f32.mrf.mxu2  ;;  %v3885_v59 = vpop.f32.mrf.mxu1  ;;  %v8249_v56 = vld [vmem:[%s9365_s15 + $0x6c4] sm:$0xf] }
 0x23b   : > { %v3897_v54 = vadd.f32 %v3896_v50, %v3884_v43  ;;  %v1527_v43 = vld.sshfl [vmem:[#allocation1 + $0x10] sm:$0xff pattern:$0x73625140] }
 0x23d   : > { %4336 = vmatpush.bf16.xpose.msrb.mxu0 %v6638_v26  ;;  %4349 = vmatpush.bf16.xpose.msrb.mxu1 %v6642_v29  ;;  %v3910_v61 = vadd.f32 %v3909_v55, %v3897_v54  ;;  %v8056_v26 = vld [vmem:[%s9365_s15 + $0xbc] sm:$0xf]  ;;  %v6669_v29 = vld [vmem:[%s9365_s15 + $0xb0] sm:$0xf] }
 0x23e   : > { %4362 = vmatpush.bf16.xpose.msrb.mxu2 %v6646_v23  ;;  %v7442_v23 = vor.u32 %v8247_v15, %v7439_v16  ;;  %v6682_v40 = vor.u32 %v8056_v26, %v6679_v28  ;;  %v6670_v41 = vor.u32 %v8151_v30, %v6669_v29  ;;  %v1529_v16 = vld.sshfl [vmem:[#allocation1 + $0x20] sm:$0xff pattern:$0x73625140]  ;;  %v7469_v29 = vld [vmem:[%s9365_s15 + $0x6d0] sm:$0xf] }
 0x23f   : > { %4375 = vmatpush.bf16.xpose.msrb.mxu3 %v6650_v25  ;;  %v8152_v25 = vld [vmem:[%s9365_s15 + $0x3b4] sm:$0xf0]  ;;  %v8252_v26 = vld [vmem:[%s9365_s15 + $0x6dc] sm:$0xf]  ;;  %v8347_v30 = vld [vmem:[%s9365_s15 + $0x9cc] sm:$0xf0] }
 0x240   : > { %v6678_v37 = vor.u32 %v8152_v25, %v6677_v24  ;;  %v7477_v24 = vld [vmem:[%s9365_s15 + $0x6d8] sm:$0xf]  ;;  %v7479_v28 = vld [vmem:[%s9365_s15 + $0x9d8] sm:$0xf0] }
 0x241   : > { %v3911_v13 = vpop.f32.mrf.mxu3  ;;  %v3922_v14 = vpop.f32.mrf.mxu0  ;;  %v8348_v25 = vld [vmem:[%s9365_s15 + $0x9d4] sm:$0xf0] }
 0x242   : > { %v3898_v9 = vpop.f32.mrf.mxu2  ;;  %v3923_v17 = vadd.f32 %v3922_v14, %v3910_v61  ;;  %v3935_v18 = vpop.f32.mrf.mxu1  ;;  %v7466_v61 = vor.u32 %v8250_v49, %v7463_v51 }
 0x244   : > { %v3936_v22 = vadd.f32 %v3935_v18, %v3923_v17  ;;  %4337 = vmatmul.bf16.vlgmr.msrb.gmra.mxu0 %v1517_v62  ;;  %4350 = vmatmul.bf16.vlgmr.msrb.gmra.mxu1 %v1518_v1  ;;  %v7454_v62 = vor.u32 %v8345_v53, %v7453_v52  ;;  %v6693_v1 = vld [vmem:[%s9365_s15 + $0xc8] sm:$0xf]  ;;  %v6686_v18 = vor.u32 %v8153_v7, %v6685_v6  ;;  %v8059_v52 = vld [vmem:[%s9365_s15 + $0xd4] sm:$0xf]  ;;  %v7485_v6 = vld [vmem:[%s9365_s15 + $0x6e0] sm:$0xf] }
 0x245   : > { %4387 = vmatpush.bf16.xpose.msra.mxu0 %v7422_v45  ;;  %4400 = vmatpush.bf16.xpose.msra.mxu1 %v7426_v46  ;;  %v1528_v45 = vld.sshfl [vmem:[#allocation1 + $0x18] sm:$0xff pattern:$0x73625140]  ;;  %v1040_v46 = vld [vmem:[%s9363_s14 + $0x60] sm:$0xff]  ;;  %v8349_v7 = vld [vmem:[%s9365_s15 + $0x9dc] sm:$0xf0] }
 0x246   : > { %4413 = vmatpush.bf16.xpose.msra.mxu2 %v7430_v42  ;;  %4376 = vmatmul.bf16.vlgmr.msrb.gmra.mxu3 %v1520_v4  ;;  %v1526_v42 = vld.sshfl [vmem:[#allocation1 + $0x8] sm:$0xff pattern:$0x73625140]  ;;  %v6703_v53 = vld [vmem:[%s9365_s15 + $0x3d0] sm:$0xf0] }
 0x247   : > { %4426 = vmatpush.bf16.xpose.msra.mxu3 %v7434_v44  ;;  %4363 = vmatmul.bf16.vlgmr.msrb.gmra.mxu2 %v1519_v2  ;;  %v6674_v44 = vor.u32 %v8055_v34, %v6671_v35  ;;  %1534 = vst [vmem:[#allocation1] ss:$4 sm:$0xff] %v1040_v46  ;;  %v8154_v2 = vld [vmem:[%s9365_s15 + $0x3c4] sm:$0xf0]  ;;  %v7471_v34 = vld [vmem:[%s9365_s15 + $0x9d0] sm:$0xf0] }
 0x248   : > { %v6694_v14 = vor.u32 %v8154_v2, %v6693_v1  ;;  %v6711_v46 = vld [vmem:[%s9365_s15 + $0x3d8] sm:$0xf0]  ;;  %v7493_v1 = vld [vmem:[%s9365_s15 + $0x6e8] sm:$0xf] }
 0x249   : > { %v3961_v32 = vpop.f32.mrf.mxu3  ;;  %v3924_v33 = vpop.f32.mrf.mxu0  ;;  %v8350_v2 = vld [vmem:[%s9365_s15 + $0x9e4] sm:$0xf0] }
 0x24a   : > { %v3948_v27 = vpop.f32.mrf.mxu2  ;;  %v3937_v36 = vpop.f32.mrf.mxu1  ;;  %v8251_v33 = vld [vmem:[%s9365_s15 + $0x6d4] sm:$0xf] }
 0x24b   : > { %v3949_v31 = vadd.f32 %v3948_v27, %v3936_v22  ;;  %v1532_v22 = vld.sshfl [vmem:[#allocation1 + $0x38] sm:$0xff pattern:$0x73625140] }
 0x24d   : > { %4388 = vmatpush.bf16.xpose.msra.mxu0 %v6654_v0  ;;  %4401 = vmatpush.bf16.xpose.msra.mxu1 %v6658_v3  ;;  %v3962_v38 = vadd.f32 %v3961_v32, %v3949_v31  ;;  %v7458_v0 = vor.u32 %v8249_v56, %v7455_v57  ;;  %v8058_v3 = vld [vmem:[%s9365_s15 + $0xcc] sm:$0xf] }
 0x24e   : > { %4414 = vmatpush.bf16.xpose.msra.mxu2 %v6662_v60  ;;  %v7462_v60 = vor.u32 %v8346_v48, %v7461_v47  ;;  %v6698_v17 = vor.u32 %v8058_v3, %v6695_v5  ;;  %v6701_v47 = vld [vmem:[%s9365_s15 + $0xd0] sm:$0xf]  ;;  %v1537_v57 = vld.sshfl [vmem:[#allocation1] sm:$0xff pattern:$0x73625140] }
 0x24f   : > { %4427 = vmatpush.bf16.xpose.msra.mxu3 %v6666_v63  ;;  %v8155_v48 = vld [vmem:[%s9365_s15 + $0x3cc] sm:$0xf0]  ;;  %v8254_v3 = vld [vmem:[%s9365_s15 + $0x6ec] sm:$0xf] }
 0x250   : > { %v7495_v5 = vld [vmem:[%s9365_s15 + $0x9e8] sm:$0xf0] }
 0x251   : > { %v3963_v54 = vpop.f32.mrf.mxu3  ;;  %v3974_v55 = vpop.f32.mrf.mxu0 }
 0x252   : > { %v3950_v50 = vpop.f32.mrf.mxu2  ;;  %v3975_v58 = vadd.f32 %v3974_v55, %v3962_v38  ;;  %v3987_v59 = vpop.f32.mrf.mxu1  ;;  %v7482_v38 = vor.u32 %v8252_v26, %v7479_v28 }
 0x254   : > { %v3988_v63 = vadd.f32 %v3987_v59, %v3975_v58  ;;  %4389 = vmatmul.bf16.vlgmr.msra.gmra.mxu0 %v1525_v39  ;;  %4402 = vmatmul.bf16.vlgmr.msra.gmra.mxu1 %v1526_v42  ;;  %v7470_v39 = vor.u32 %v8347_v30, %v7469_v29  ;;  %v6709_v42 = vld [vmem:[%s9365_s15 + $0xd8] sm:$0xf]  ;;  %v6702_v59 = vor.u32 %v8155_v48, %v6701_v47  ;;  %v8061_v29 = vld [vmem:[%s9365_s15 + $0xe4] sm:$0xf]  ;;  %v7501_v47 = vld [vmem:[%s9365_s15 + $0x6f0] sm:$0xf] }
 0x255   : > { %4439 = vmatpush.bf16.xpose.msrb.mxu0 %v7438_v21  ;;  %4452 = vmatpush.bf16.xpose.msrb.mxu1 %v7442_v23  ;;  %v6690_v21 = vor.u32 %v8057_v11, %v6687_v12  ;;  %v1041_v23 = vld [vmem:[%s9363_s14 + $0x68] sm:$0xff]  ;;  %v8351_v48 = vld [vmem:[%s9365_s15 + $0x9ec] sm:$0xf0] }
 0x256   : > { %4465 = vmatpush.bf16.xpose.msrb.mxu2 %v7446_v19  ;;  %4428 = vmatmul.bf16.vlgmr.msra.gmra.mxu3 %v1528_v45  ;;  %v1530_v19 = vld.sshfl [vmem:[#allocation1 + $0x28] sm:$0xff pattern:$0x73625140] }
 0x257   : > { %4478 = vmatpush.bf16.xpose.msrb.mxu3 %v7450_v20  ;;  %4415 = vmatmul.bf16.vlgmr.msra.gmra.mxu2 %v1527_v43  ;;  %v1531_v20 = vld.sshfl [vmem:[#allocation1 + $0x30] sm:$0xff pattern:$0x73625140]  ;;  %v8156_v43 = vld [vmem:[%s9365_s15 + $0x3d4] sm:$0xf0] }
 0x258   : > { %1536 = vst [vmem:[#allocation1 + $0x20] ss:$4 sm:$0xff] %v1041_v23  ;;  %v6710_v55 = vor.u32 %v8156_v43, %v6709_v42  ;;  %v7487_v11 = vld [vmem:[%s9365_s15 + $0x9e0] sm:$0xf0]  ;;  %v6727_v23 = vld [vmem:[%s9365_s15 + $0x3e8] sm:$0xf0] }
 0x259   : > { %v4013_v9 = vpop.f32.mrf.mxu3  ;;  %v3976_v10 = vpop.f32.mrf.mxu0  ;;  %v6719_v30 = vld [vmem:[%s9365_s15 + $0x3e0] sm:$0xf0]  ;;  %v7509_v42 = vld [vmem:[%s9365_s15 + $0x6f8] sm:$0xf] }
 0x25a   : > { %v4000_v4 = vpop.f32.mrf.mxu2  ;;  %v3989_v13 = vpop.f32.mrf.mxu1  ;;  %v8253_v10 = vld [vmem:[%s9365_s15 + $0x6e4] sm:$0xf]  ;;  %v8352_v43 = vld [vmem:[%s9365_s15 + $0x9f4] sm:$0xf0] }
 0x25b   : > { %v4001_v8 = vadd.f32 %v4000_v4, %v3988_v63  ;;  %v1540_v63 = vld.sshfl [vmem:[#allocation1 + $0x18] sm:$0xff pattern:$0x73625140] }
 0x25d   : > { %4440 = vmatpush.bf16.xpose.msrb.mxu0 %v6670_v41  ;;  %4453 = vmatpush.bf16.xpose.msrb.mxu1 %v6674_v44  ;;  %v4014_v15 = vadd.f32 %v4013_v9, %v4001_v8  ;;  %v7474_v41 = vor.u32 %v8251_v33, %v7471_v34  ;;  %v8060_v44 = vld [vmem:[%s9365_s15 + $0xdc] sm:$0xf] }
 0x25e   : > { %4466 = vmatpush.bf16.xpose.msrb.mxu2 %v6678_v37  ;;  %v7478_v37 = vor.u32 %v8348_v25, %v7477_v24  ;;  %v6714_v58 = vor.u32 %v8060_v44, %v6711_v46  ;;  %v6717_v24 = vld [vmem:[%s9365_s15 + $0xe0] sm:$0xf]  ;;  %v8256_v44 = vld [vmem:[%s9365_s15 + $0x6fc] sm:$0xf] }
 0x25f   : > { %4479 = vmatpush.bf16.xpose.msrb.mxu3 %v6682_v40  ;;  %v8157_v25 = vld [vmem:[%s9365_s15 + $0x3dc] sm:$0xf0]  ;;  %v1541_v34 = vld.sshfl [vmem:[#allocation1 + $0x20] sm:$0xff pattern:$0x73625140] }
 0x260   : > { %v7511_v46 = vld [vmem:[%s9365_s15 + $0x9f8] sm:$0xf0] }
 0x261   : > { %v4015_v31 = vpop.f32.mrf.mxu3  ;;  %v4026_v32 = vpop.f32.mrf.mxu0 }
 0x262   : > { %v4002_v27 = vpop.f32.mrf.mxu2  ;;  %v4027_v35 = vadd.f32 %v4026_v32, %v4014_v15  ;;  %v4039_v36 = vpop.f32.mrf.mxu1  ;;  %v7498_v15 = vor.u32 %v8254_v3, %v7495_v5 }
 0x264   : > { %v4040_v40 = vadd.f32 %v4039_v36, %v4027_v35  ;;  %4441 = vmatmul.bf16.vlgmr.msrb.gmra.mxu0 %v1529_v16  ;;  %4454 = vmatmul.bf16.vlgmr.msrb.gmra.mxu1 %v1530_v19  ;;  %v7486_v16 = vor.u32 %v8349_v7, %v7485_v6  ;;  %v6725_v19 = vld [vmem:[%s9365_s15 + $0xe8] sm:$0xf]  ;;  %v6718_v36 = vor.u32 %v8157_v25, %v6717_v24  ;;  %v8063_v6 = vld [vmem:[%s9365_s15 + $0xf4] sm:$0xf]  ;;  %v7517_v24 = vld [vmem:[%s9365_s15 + $0x700] sm:$0xf] }
 0x265   : > { %4491 = vmatpush.bf16.xpose.msra.mxu0 %v7454_v62  ;;  %4504 = vmatpush.bf16.xpose.msra.mxu1 %v7458_v0  ;;  %v6706_v62 = vor.u32 %v8059_v52, %v6703_v53  ;;  %v1042_v0 = vld [vmem:[%s9363_s14 + $0x70] sm:$0xff]  ;;  %v7503_v52 = vld [vmem:[%s9365_s15 + $0x9f0] sm:$0xf0]  ;;  %v8353_v25 = vld [vmem:[%s9365_s15 + $0x9fc] sm:$0xf0] }
 0x266   : > { %4517 = vmatpush.bf16.xpose.msra.mxu2 %v7462_v60  ;;  %4480 = vmatmul.bf16.vlgmr.msrb.gmra.mxu3 %v1532_v22  ;;  %v1538_v60 = vld.sshfl [vmem:[#allocation1 + $0x8] sm:$0xff pattern:$0x73625140]  ;;  %v6735_v7 = vld [vmem:[%s9365_s15 + $0x3f0] sm:$0xf0] }
 0x267   : > { %4530 = vmatpush.bf16.xpose.msra.mxu3 %v7466_v61  ;;  %4467 = vmatmul.bf16.vlgmr.msrb.gmra.mxu2 %v1531_v20  ;;  %v1539_v61 = vld.sshfl [vmem:[#allocation1 + $0x10] sm:$0xff pattern:$0x73625140] }
 0x268   : > { %1546 = vst [vmem:[#allocation1] ss:$4 sm:$0xff] %v1042_v0  ;;  %v8158_v20 = vld [vmem:[%s9365_s15 + $0x3e4] sm:$0xf0]  ;;  %v6743_v0 = vld [vmem:[%s9365_s15 + $0x3f8] sm:$0xf0] }
 0x269   : > { %v4065_v50 = vpop.f32.mrf.mxu3  ;;  %v4028_v51 = vpop.f32.mrf.mxu0  ;;  %v6726_v32 = vor.u32 %v8158_v20, %v6725_v19  ;;  %v7525_v19 = vld [vmem:[%s9365_s15 + $0x708] sm:$0xf] }
 0x26a   : > { %v4052_v45 = vpop.f32.mrf.mxu2  ;;  %v4041_v54 = vpop.f32.mrf.mxu1  ;;  %v8255_v51 = vld [vmem:[%s9365_s15 + $0x6f4] sm:$0xf]  ;;  %v8354_v20 = vld [vmem:[%s9365_s15 + $0xa04] sm:$0xf0] }
 0x26b   : > { %v4053_v49 = vadd.f32 %v4052_v45, %v4040_v40  ;;  %v1544_v40 = vld.sshfl [vmem:[#allocation1 + $0x38] sm:$0xff pattern:$0x73625140] }
 0x26d   : > { %4492 = vmatpush.bf16.xpose.msra.mxu0 %v6686_v18  ;;  %4505 = vmatpush.bf16.xpose.msra.mxu1 %v6690_v21  ;;  %v4066_v56 = vadd.f32 %v4065_v50, %v4053_v49  ;;  %v7490_v18 = vor.u32 %v8253_v10, %v7487_v11  ;;  %v8062_v21 = vld [vmem:[%s9365_s15 + $0xec] sm:$0xf] }
 0x26e   : > { %4518 = vmatpush.bf16.xpose.msra.mxu2 %v6694_v14  ;;  %v7494_v14 = vor.u32 %v8350_v2, %v7493_v1  ;;  %v6730_v35 = vor.u32 %v8062_v21, %v6727_v23  ;;  %v6733_v1 = vld [vmem:[%s9365_s15 + $0xf0] sm:$0xf]  ;;  %v8258_v21 = vld [vmem:[%s9365_s15 + $0x70c] sm:$0xf] }
 0x26f   : > { %4531 = vmatpush.bf16.xpose.msra.mxu3 %v6698_v17  ;;  %v8159_v2 = vld [vmem:[%s9365_s15 + $0x3ec] sm:$0xf0]  ;;  %v1549_v11 = vld.sshfl [vmem:[#allocation1] sm:$0xff pattern:$0x73625140] }
 0x270   : > { %v7527_v23 = vld [vmem:[%s9365_s15 + $0xa08] sm:$0xf0] }
 0x271   : > { %v4067_v8 = vpop.f32.mrf.mxu3  ;;  %v4078_v9 = vpop.f32.mrf.mxu0 }
 0x272   : > { %v4054_v4 = vpop.f32.mrf.mxu2  ;;  %v4079_v12 = vadd.f32 %v4078_v9, %v4066_v56  ;;  %v4091_v13 = vpop.f32.mrf.mxu1  ;;  %v7514_v56 = vor.u32 %v8256_v44, %v7511_v46 }
 0x274   : > { %v4092_v17 = vadd.f32 %v4091_v13, %v4079_v12  ;;  %4493 = vmatmul.bf16.vlgmr.msra.gmra.mxu0 %v1537_v57  ;;  %4506 = vmatmul.bf16.vlgmr.msra.gmra.mxu1 %v1538_v60  ;;  %v7502_v57 = vor.u32 %v8351_v48, %v7501_v47  ;;  %v6741_v60 = vld [vmem:[%s9365_s15 + $0xf8] sm:$0xf]  ;;  %v6734_v13 = vor.u32 %v8159_v2, %v6733_v1  ;;  %v8065_v47 = vld [vmem:[%s9365_s15 + $0x104] sm:$0xf]  ;;  %v7533_v1 = vld [vmem:[%s9365_s15 + $0x710] sm:$0xf] }
 0x275   : > { %4543 = vmatpush.bf16.xpose.msrb.mxu0 %v7470_v39  ;;  %4556 = vmatpush.bf16.xpose.msrb.mxu1 %v7474_v41  ;;  %v6722_v39 = vor.u32 %v8061_v29, %v6719_v30  ;;  %v1043_v41 = vld [vmem:[%s9363_s14 + $0x78] sm:$0xff]  ;;  %v7519_v29 = vld [vmem:[%s9365_s15 + $0xa00] sm:$0xf0] }
 0x276   : > { %4569 = vmatpush.bf16.xpose.msrb.mxu2 %v7478_v37  ;;  %4532 = vmatmul.bf16.vlgmr.msra.gmra.mxu3 %v1540_v63  ;;  %v1542_v37 = vld.sshfl [vmem:[#allocation1 + $0x28] sm:$0xff pattern:$0x73625140]  ;;  %v8355_v2 = vld [vmem:[%s9365_s15 + $0xa0c] sm:$0xf0] }
 0x277   : > { %4582 = vmatpush.bf16.xpose.msrb.mxu3 %v7482_v38  ;;  %4519 = vmatmul.bf16.vlgmr.msra.gmra.mxu2 %v1539_v61  ;;  %v1543_v38 = vld.sshfl [vmem:[#allocation1 + $0x30] sm:$0xff pattern:$0x73625140]  ;;  %v8160_v61 = vld [vmem:[%s9365_s15 + $0x3f4] sm:$0xf0] }
 0x278   : > { %1548 = vst [vmem:[#allocation1 + $0x20] ss:$4 sm:$0xff] %v1043_v41  ;;  %v6742_v9 = vor.u32 %v8160_v61, %v6741_v60  ;;  %v6759_v41 = vld [vmem:[%s9365_s15 + $0x408] sm:$0xf0]  ;;  %v6751_v48 = vld [vmem:[%s9365_s15 + $0x400] sm:$0xf0] }
 0x279   : > { %v4117_v27 = vpop.f32.mrf.mxu3  ;;  %v4080_v28 = vpop.f32.mrf.mxu0  ;;  %v7541_v60 = vld [vmem:[%s9365_s15 + $0x718] sm:$0xf] }
 0x27a   : > { %v4104_v22 = vpop.f32.mrf.mxu2  ;;  %v4093_v31 = vpop.f32.mrf.mxu1  ;;  %v8257_v28 = vld [vmem:[%s9365_s15 + $0x704] sm:$0xf]  ;;  %v8356_v61 = vld [vmem:[%s9365_s15 + $0xa14] sm:$0xf0] }
 0x27b   : > { %v4105_v26 = vadd.f32 %v4104_v22, %v4092_v17  ;;  %v1552_v17 = vld.sshfl [vmem:[#allocation1 + $0x18] sm:$0xff pattern:$0x73625140] }
 0x27d   : > { %4544 = vmatpush.bf16.xpose.msrb.mxu0 %v6702_v59  ;;  %4557 = vmatpush.bf16.xpose.msrb.mxu1 %v6706_v62  ;;  %v4118_v33 = vadd.f32 %v4117_v27, %v4105_v26  ;;  %v7506_v59 = vor.u32 %v8255_v51, %v7503_v52  ;;  %v8064_v62 = vld [vmem:[%s9365_s15 + $0xfc] sm:$0xf] }
 0x27e   : > { %4570 = vmatpush.bf16.xpose.msrb.mxu2 %v6710_v55  ;;  %v7510_v55 = vor.u32 %v8352_v43, %v7509_v42  ;;  %v6746_v12 = vor.u32 %v8064_v62, %v6743_v0  ;;  %v6749_v42 = vld [vmem:[%s9365_s15 + $0x100] sm:$0xf]  ;;  %v8260_v62 = vld [vmem:[%s9365_s15 + $0x71c] sm:$0xf] }
 0x27f   : > { %4583 = vmatpush.bf16.xpose.msrb.mxu3 %v6714_v58  ;;  %v8161_v43 = vld [vmem:[%s9365_s15 + $0x3fc] sm:$0xf0]  ;;  %v1553_v52 = vld.sshfl [vmem:[#allocation1 + $0x20] sm:$0xff pattern:$0x73625140] }
 0x280   : > { %v7543_v0 = vld [vmem:[%s9365_s15 + $0xa18] sm:$0xf0] }
 0x281   : > { %v4119_v49 = vpop.f32.mrf.mxu3  ;;  %v4130_v50 = vpop.f32.mrf.mxu0 }
 0x282   : > { %v4106_v45 = vpop.f32.mrf.mxu2  ;;  %v4131_v53 = vadd.f32 %v4130_v50, %v4118_v33  ;;  %v4143_v54 = vpop.f32.mrf.mxu1  ;;  %v7530_v33 = vor.u32 %v8258_v21, %v7527_v23 }
 0x284   : > { %v4144_v58 = vadd.f32 %v4143_v54, %v4131_v53  ;;  %4545 = vmatmul.bf16.vlgmr.msrb.gmra.mxu0 %v1541_v34  ;;  %4558 = vmatmul.bf16.vlgmr.msrb.gmra.mxu1 %v1542_v37  ;;  %v7518_v34 = vor.u32 %v8353_v25, %v7517_v24  ;;  %v6757_v37 = vld [vmem:[%s9365_s15 + $0x108] sm:$0xf]  ;;  %v6750_v54 = vor.u32 %v8161_v43, %v6749_v42  ;;  %v8067_v24 = vld [vmem:[%s9365_s15 + $0x114] sm:$0xf]  ;;  %v7549_v42 = vld [vmem:[%s9365_s15 + $0x720] sm:$0xf] }
 0x285   : > { %4595 = vmatpush.bf16.xpose.msra.mxu0 %v7486_v16  ;;  %4608 = vmatpush.bf16.xpose.msra.mxu1 %v7490_v18  ;;  %v6738_v16 = vor.u32 %v8063_v6, %v6735_v7  ;;  %v1044_v18 = vld [vmem:[%s9363_s14 + $0x80] sm:$0xff]  ;;  %v7535_v6 = vld [vmem:[%s9365_s15 + $0xa10] sm:$0xf0]  ;;  %v8357_v43 = vld [vmem:[%s9365_s15 + $0xa1c] sm:$0xf0] }
 0x286   : > { %4621 = vmatpush.bf16.xpose.msra.mxu2 %v7494_v14  ;;  %4584 = vmatmul.bf16.vlgmr.msrb.gmra.mxu3 %v1544_v40  ;;  %v1550_v14 = vld.sshfl [vmem:[#allocation1 + $0x8] sm:$0xff pattern:$0x73625140]  ;;  %v6767_v25 = vld [vmem:[%s9365_s15 + $0x410] sm:$0xf0] }
 0x287   : > { %4634 = vmatpush.bf16.xpose.msra.mxu3 %v7498_v15  ;;  %4571 = vmatmul.bf16.vlgmr.msrb.gmra.mxu2 %v1543_v38  ;;  %v1551_v15 = vld.sshfl [vmem:[#allocation1 + $0x10] sm:$0xff pattern:$0x73625140] }
 0x288   : > { %1558 = vst [vmem:[#allocation1] ss:$4 sm:$0xff] %v1044_v18  ;;  %v8162_v38 = vld [vmem:[%s9365_s15 + $0x404] sm:$0xf0]  ;;  %v6775_v18 = vld [vmem:[%s9365_s15 + $0x418] sm:$0xf0] }
 0x289   : > { %v4169_v4 = vpop.f32.mrf.mxu3  ;;  %v4132_v5 = vpop.f32.mrf.mxu0  ;;  %v6758_v50 = vor.u32 %v8162_v38, %v6757_v37  ;;  %v7557_v37 = vld [vmem:[%s9365_s15 + $0x728] sm:$0xf] }
 0x28a   : > { %v4156_v63 = vpop.f32.mrf.mxu2  ;;  %v4145_v8 = vpop.f32.mrf.mxu1  ;;  %v8259_v5 = vld [vmem:[%s9365_s15 + $0x714] sm:$0xf]  ;;  %v8358_v38 = vld [vmem:[%s9365_s15 + $0xa24] sm:$0xf0] }
 0x28b   : > { %v4157_v3 = vadd.f32 %v4156_v63, %v4144_v58  ;;  %v1556_v58 = vld.sshfl [vmem:[#allocation1 + $0x38] sm:$0xff pattern:$0x73625140] }
 0x28d   : > { %4596 = vmatpush.bf16.xpose.msra.mxu0 %v6718_v36  ;;  %4609 = vmatpush.bf16.xpose.msra.mxu1 %v6722_v39  ;;  %v4170_v10 = vadd.f32 %v4169_v4, %v4157_v3  ;;  %v7522_v36 = vor.u32 %v8257_v28, %v7519_v29  ;;  %v8066_v39 = vld [vmem:[%s9365_s15 + $0x10c] sm:$0xf] }
 0x28e   : > { %4622 = vmatpush.bf16.xpose.msra.mxu2 %v6726_v32  ;;  %v7526_v32 = vor.u32 %v8354_v20, %v7525_v19  ;;  %v6762_v53 = vor.u32 %v8066_v39, %v6759_v41  ;;  %v6765_v19 = vld [vmem:[%s9365_s15 + $0x110] sm:$0xf]  ;;  %v8262_v39 = vld [vmem:[%s9365_s15 + $0x72c] sm:$0xf] }
 0x28f   : > { %4635 = vmatpush.bf16.xpose.msra.mxu3 %v6730_v35  ;;  %v8163_v20 = vld [vmem:[%s9365_s15 + $0x40c] sm:$0xf0]  ;;  %v1561_v29 = vld.sshfl [vmem:[#allocation1] sm:$0xff pattern:$0x73625140] }
 0x290   : > { %v7559_v41 = vld [vmem:[%s9365_s15 + $0xa28] sm:$0xf0] }
 0x291   : > { %v4171_v26 = vpop.f32.mrf.mxu3  ;;  %v4182_v27 = vpop.f32.mrf.mxu0 }
 0x292   : > { %v4158_v22 = vpop.f32.mrf.mxu2  ;;  %v4183_v30 = vadd.f32 %v4182_v27, %v4170_v10  ;;  %v4195_v31 = vpop.f32.mrf.mxu1  ;;  %v7546_v10 = vor.u32 %v8260_v62, %v7543_v0 }
 0x294   : > { %v4196_v35 = vadd.f32 %v4195_v31, %v4183_v30  ;;  %4597 = vmatmul.bf16.vlgmr.msra.gmra.mxu0 %v1549_v11  ;;  %4610 = vmatmul.bf16.vlgmr.msra.gmra.mxu1 %v1550_v14  ;;  %v7534_v11 = vor.u32 %v8355_v2, %v7533_v1  ;;  %v6773_v14 = vld [vmem:[%s9365_s15 + $0x118] sm:$0xf]  ;;  %v6766_v31 = vor.u32 %v8163_v20, %v6765_v19  ;;  %v8069_v1 = vld [vmem:[%s9365_s15 + $0x124] sm:$0xf]  ;;  %v7565_v19 = vld [vmem:[%s9365_s15 + $0x730] sm:$0xf] }
 0x295   : > { %4647 = vmatpush.bf16.xpose.msrb.mxu0 %v7502_v57  ;;  %4660 = vmatpush.bf16.xpose.msrb.mxu1 %v7506_v59  ;;  %v6754_v57 = vor.u32 %v8065_v47, %v6751_v48  ;;  %v1045_v59 = vld [vmem:[%s9363_s14 + $0x88] sm:$0xff]  ;;  %v8359_v20 = vld [vmem:[%s9365_s15 + $0xa2c] sm:$0xf0] }
 0x296   : > { %4673 = vmatpush.bf16.xpose.msrb.mxu2 %v7510_v55  ;;  %4636 = vmatmul.bf16.vlgmr.msra.gmra.mxu3 %v1552_v17  ;;  %v1554_v55 = vld.sshfl [vmem:[#allocation1 + $0x28] sm:$0xff pattern:$0x73625140] }
 0x297   : > { %4686 = vmatpush.bf16.xpose.msrb.mxu3 %v7514_v56  ;;  %4623 = vmatmul.bf16.vlgmr.msra.gmra.mxu2 %v1551_v15  ;;  %v1555_v56 = vld.sshfl [vmem:[#allocation1 + $0x30] sm:$0xff pattern:$0x73625140]  ;;  %v8164_v15 = vld [vmem:[%s9365_s15 + $0x414] sm:$0xf0] }
 0x298   : > { %1560 = vst [vmem:[#allocation1 + $0x20] ss:$4 sm:$0xff] %v1045_v59  ;;  %v6774_v27 = vor.u32 %v8164_v15, %v6773_v14  ;;  %v7551_v47 = vld [vmem:[%s9365_s15 + $0xa20] sm:$0xf0]  ;;  %v6791_v59 = vld [vmem:[%s9365_s15 + $0x428] sm:$0xf0] }
 0x299   : > { %v4221_v45 = vpop.f32.mrf.mxu3  ;;  %v4184_v46 = vpop.f32.mrf.mxu0  ;;  %v6783_v2 = vld [vmem:[%s9365_s15 + $0x420] sm:$0xf0]  ;;  %v7573_v14 = vld [vmem:[%s9365_s15 + $0x738] sm:$0xf] }
 0x29a   : > { %v4208_v40 = vpop.f32.mrf.mxu2  ;;  %v4197_v49 = vpop.f32.mrf.mxu1  ;;  %v8261_v46 = vld [vmem:[%s9365_s15 + $0x724] sm:$0xf]  ;;  %v8360_v15 = vld [vmem:[%s9365_s15 + $0xa34] sm:$0xf0] }
 0x29b   : > { %v4209_v44 = vadd.f32 %v4208_v40, %v4196_v35  ;;  %v1564_v35 = vld.sshfl [vmem:[#allocation1 + $0x18] sm:$0xff pattern:$0x73625140] }
 0x29d   : > { %4648 = vmatpush.bf16.xpose.msrb.mxu0 %v6734_v13  ;;  %4661 = vmatpush.bf16.xpose.msrb.mxu1 %v6738_v16  ;;  %v4222_v51 = vadd.f32 %v4221_v45, %v4209_v44  ;;  %v7538_v13 = vor.u32 %v8259_v5, %v7535_v6  ;;  %v8068_v16 = vld [vmem:[%s9365_s15 + $0x11c] sm:$0xf] }
 0x29e   : > { %4674 = vmatpush.bf16.xpose.msrb.mxu2 %v6742_v9  ;;  %v7542_v9 = vor.u32 %v8356_v61, %v7541_v60  ;;  %v6778_v30 = vor.u32 %v8068_v16, %v6775_v18  ;;  %v6781_v60 = vld [vmem:[%s9365_s15 + $0x120] sm:$0xf]  ;;  %v8264_v16 = vld [vmem:[%s9365_s15 + $0x73c] sm:$0xf] }
 0x29f   : > { %4687 = vmatpush.bf16.xpose.msrb.mxu3 %v6746_v12  ;;  %v8165_v61 = vld [vmem:[%s9365_s15 + $0x41c] sm:$0xf0]  ;;  %v1565_v6 = vld.sshfl [vmem:[#allocation1 + $0x20] sm:$0xff pattern:$0x73625140] }
 0x2a0   : > { %v7575_v18 = vld [vmem:[%s9365_s15 + $0xa38] sm:$0xf0] }
 0x2a1   : > { %v4223_v3 = vpop.f32.mrf.mxu3  ;;  %v4234_v4 = vpop.f32.mrf.mxu0 }
 0x2a2   : > { %v4210_v63 = vpop.f32.mrf.mxu2  ;;  %v4235_v7 = vadd.f32 %v4234_v4, %v4222_v51  ;;  %v4247_v8 = vpop.f32.mrf.mxu1  ;;  %v7562_v51 = vor.u32 %v8262_v39, %v7559_v41 }
 0x2a4   : > { %v4248_v12 = vadd.f32 %v4247_v8, %v4235_v7  ;;  %4649 = vmatmul.bf16.vlgmr.msrb.gmra.mxu0 %v1553_v52  ;;  %4662 = vmatmul.bf16.vlgmr.msrb.gmra.mxu1 %v1554_v55  ;;  %v7550_v52 = vor.u32 %v8357_v43, %v7549_v42  ;;  %v6789_v55 = vld [vmem:[%s9365_s15 + $0x128] sm:$0xf]  ;;  %v6782_v8 = vor.u32 %v8165_v61, %v6781_v60  ;;  %v8071_v42 = vld [vmem:[%s9365_s15 + $0x134] sm:$0xf]  ;;  %v7581_v60 = vld [vmem:[%s9365_s15 + $0x740] sm:$0xf] }
 0x2a5   : > { %4699 = vmatpush.bf16.xpose.msra.mxu0 %v7518_v34  ;;  %4712 = vmatpush.bf16.xpose.msra.mxu1 %v7522_v36  ;;  %v6770_v34 = vor.u32 %v8067_v24, %v6767_v25  ;;  %v1046_v36 = vld [vmem:[%s9363_s14 + $0x90] sm:$0xff]  ;;  %v7567_v24 = vld [vmem:[%s9365_s15 + $0xa30] sm:$0xf0]  ;;  %v8361_v61 = vld [vmem:[%s9365_s15 + $0xa3c] sm:$0xf0] }
 0x2a6   : > { %4725 = vmatpush.bf16.xpose.msra.mxu2 %v7526_v32  ;;  %4688 = vmatmul.bf16.vlgmr.msrb.gmra.mxu3 %v1556_v58  ;;  %v1562_v32 = vld.sshfl [vmem:[#allocation1 + $0x8] sm:$0xff pattern:$0x73625140]  ;;  %v6799_v43 = vld [vmem:[%s9365_s15 + $0x430] sm:$0xf0] }
 0x2a7   : > { %4738 = vmatpush.bf16.xpose.msra.mxu3 %v7530_v33  ;;  %4675 = vmatmul.bf16.vlgmr.msrb.gmra.mxu2 %v1555_v56  ;;  %v1563_v33 = vld.sshfl [vmem:[#allocation1 + $0x10] sm:$0xff pattern:$0x73625140] }
 0x2a8   : > { %1570 = vst [vmem:[#allocation1] ss:$4 sm:$0xff] %v1046_v36  ;;  %v8166_v56 = vld [vmem:[%s9365_s15 + $0x424] sm:$0xf0]  ;;  %v6807_v36 = vld [vmem:[%s9365_s15 + $0x438] sm:$0xf0] }
 0x2a9   : > { %v4273_v22 = vpop.f32.mrf.mxu3  ;;  %v4236_v23 = vpop.f32.mrf.mxu0  ;;  %v6790_v4 = vor.u32 %v8166_v56, %v6789_v55  ;;  %v7589_v55 = vld [vmem:[%s9365_s15 + $0x748] sm:$0xf] }
 0x2aa   : > { %v4260_v17 = vpop.f32.mrf.mxu2  ;;  %v4249_v26 = vpop.f32.mrf.mxu1  ;;  %v8263_v23 = vld [vmem:[%s9365_s15 + $0x734] sm:$0xf]  ;;  %v8362_v56 = vld [vmem:[%s9365_s15 + $0xa44] sm:$0xf0] }
 0x2ab   : > { %v4261_v21 = vadd.f32 %v4260_v17, %v4248_v12  ;;  %v1568_v12 = vld.sshfl [vmem:[#allocation1 + $0x38] sm:$0xff pattern:$0x73625140] }
 0x2ad   : > { %4700 = vmatpush.bf16.xpose.msra.mxu0 %v6750_v54  ;;  %4713 = vmatpush.bf16.xpose.msra.mxu1 %v6754_v57  ;;  %v4274_v28 = vadd.f32 %v4273_v22, %v4261_v21  ;;  %v7554_v54 = vor.u32 %v8261_v46, %v7551_v47  ;;  %v8070_v57 = vld [vmem:[%s9365_s15 + $0x12c] sm:$0xf] }
 0x2ae   : > { %4726 = vmatpush.bf16.xpose.msra.mxu2 %v6758_v50  ;;  %v7558_v50 = vor.u32 %v8358_v38, %v7557_v37  ;;  %v6794_v7 = vor.u32 %v8070_v57, %v6791_v59  ;;  %v6797_v37 = vld [vmem:[%s9365_s15 + $0x130] sm:$0xf]  ;;  %v8266_v57 = vld [vmem:[%s9365_s15 + $0x74c] sm:$0xf] }
 0x2af   : > { %4739 = vmatpush.bf16.xpose.msra.mxu3 %v6762_v53  ;;  %v8167_v38 = vld [vmem:[%s9365_s15 + $0x42c] sm:$0xf0]  ;;  %v1573_v47 = vld.sshfl [vmem:[#allocation1] sm:$0xff pattern:$0x73625140] }
 0x2b0   : > { %v7591_v59 = vld [vmem:[%s9365_s15 + $0xa48] sm:$0xf0] }
 0x2b1   : > { %v4275_v44 = vpop.f32.mrf.mxu3  ;;  %v4286_v45 = vpop.f32.mrf.mxu0 }
 0x2b2   : > { %v4262_v40 = vpop.f32.mrf.mxu2  ;;  %v4287_v48 = vadd.f32 %v4286_v45, %v4274_v28  ;;  %v4299_v49 = vpop.f32.mrf.mxu1  ;;  %v7578_v28 = vor.u32 %v8264_v16, %v7575_v18 }
 0x2b4   : > { %v4300_v53 = vadd.f32 %v4299_v49, %v4287_v48  ;;  %4701 = vmatmul.bf16.vlgmr.msra.gmra.mxu0 %v1561_v29  ;;  %4714 = vmatmul.bf16.vlgmr.msra.gmra.mxu1 %v1562_v32  ;;  %v7566_v29 = vor.u32 %v8359_v20, %v7565_v19  ;;  %v6805_v32 = vld [vmem:[%s9365_s15 + $0x138] sm:$0xf]  ;;  %v6798_v49 = vor.u32 %v8167_v38, %v6797_v37  ;;  %v8073_v19 = vld [vmem:[%s9365_s15 + $0x144] sm:$0xf]  ;;  %v7597_v37 = vld [vmem:[%s9365_s15 + $0x750] sm:$0xf] }
 0x2b5   : > { %4751 = vmatpush.bf16.xpose.msrb.mxu0 %v7534_v11  ;;  %4764 = vmatpush.bf16.xpose.msrb.mxu1 %v7538_v13  ;;  %v6786_v11 = vor.u32 %v8069_v1, %v6783_v2  ;;  %v1047_v13 = vld [vmem:[%s9363_s14 + $0x98] sm:$0xff]  ;;  %v7583_v1 = vld [vmem:[%s9365_s15 + $0xa40] sm:$0xf0] }
 0x2b6   : > { %4777 = vmatpush.bf16.xpose.msrb.mxu2 %v7542_v9  ;;  %4740 = vmatmul.bf16.vlgmr.msra.gmra.mxu3 %v1564_v35  ;;  %v1566_v9 = vld.sshfl [vmem:[#allocation1 + $0x28] sm:$0xff pattern:$0x73625140]  ;;  %v8363_v38 = vld [vmem:[%s9365_s15 + $0xa4c] sm:$0xf0] }
 0x2b7   : > { %4790 = vmatpush.bf16.xpose.msrb.mxu3 %v7546_v10  ;;  %4727 = vmatmul.bf16.vlgmr.msra.gmra.mxu2 %v1563_v33  ;;  %v1567_v10 = vld.sshfl [vmem:[#allocation1 + $0x30] sm:$0xff pattern:$0x73625140]  ;;  %v8168_v33 = vld [vmem:[%s9365_s15 + $0x434] sm:$0xf0] }
 0x2b8   : > { %1572 = vst [vmem:[#allocation1 + $0x20] ss:$4 sm:$0xff] %v1047_v13  ;;  %v6806_v45 = vor.u32 %v8168_v33, %v6805_v32  ;;  %v6823_v13 = vld [vmem:[%s9365_s15 + $0x448] sm:$0xf0]  ;;  %v6815_v20 = vld [vmem:[%s9365_s15 + $0x440] sm:$0xf0] }
 0x2b9   : > { %v4325_v63 = vpop.f32.mrf.mxu3  ;;  %v4288_v0 = vpop.f32.mrf.mxu0  ;;  %v7605_v32 = vld [vmem:[%s9365_s15 + $0x758] sm:$0xf] }
 0x2ba   : > { %v4312_v58 = vpop.f32.mrf.mxu2  ;;  %v4301_v3 = vpop.f32.mrf.mxu1  ;;  %v8265_v0 = vld [vmem:[%s9365_s15 + $0x744] sm:$0xf]  ;;  %v8364_v33 = vld [vmem:[%s9365_s15 + $0xa54] sm:$0xf0] }
 0x2bb   : > { %v4313_v62 = vadd.f32 %v4312_v58, %v4300_v53  ;;  %v1576_v53 = vld.sshfl [vmem:[#allocation1 + $0x18] sm:$0xff pattern:$0x73625140] }
 0x2bd   : > { %4752 = vmatpush.bf16.xpose.msrb.mxu0 %v6766_v31  ;;  %4765 = vmatpush.bf16.xpose.msrb.mxu1 %v6770_v34  ;;  %v4326_v5 = vadd.f32 %v4325_v63, %v4313_v62  ;;  %v7570_v31 = vor.u32 %v8263_v23, %v7567_v24  ;;  %v8072_v34 = vld [vmem:[%s9365_s15 + $0x13c] sm:$0xf] }
 0x2be   : > { %4778 = vmatpush.bf16.xpose.msrb.mxu2 %v6774_v27  ;;  %v7574_v27 = vor.u32 %v8360_v15, %v7573_v14  ;;  %v6810_v48 = vor.u32 %v8072_v34, %v6807_v36  ;;  %v6813_v14 = vld [vmem:[%s9365_s15 + $0x140] sm:$0xf]  ;;  %v8268_v34 = vld [vmem:[%s9365_s15 + $0x75c] sm:$0xf] }
 0x2bf   : > { %4791 = vmatpush.bf16.xpose.msrb.mxu3 %v6778_v30  ;;  %v8169_v15 = vld [vmem:[%s9365_s15 + $0x43c] sm:$0xf0]  ;;  %v1577_v24 = vld.sshfl [vmem:[#allocation1 + $0x20] sm:$0xff pattern:$0x73625140] }
 0x2c0   : > { %v7607_v36 = vld [vmem:[%s9365_s15 + $0xa58] sm:$0xf0] }
 0x2c1   : > { %v4327_v21 = vpop.f32.mrf.mxu3  ;;  %v4338_v22 = vpop.f32.mrf.mxu0 }
 0x2c2   : > { %v4314_v17 = vpop.f32.mrf.mxu2  ;;  %v4339_v25 = vadd.f32 %v4338_v22, %v4326_v5  ;;  %v4351_v26 = vpop.f32.mrf.mxu1  ;;  %v7594_v5 = vor.u32 %v8266_v57, %v7591_v59 }
 0x2c4   : > { %v4352_v30 = vadd.f32 %v4351_v26, %v4339_v25  ;;  %4753 = vmatmul.bf16.vlgmr.msrb.gmra.mxu0 %v1565_v6  ;;  %4766 = vmatmul.bf16.vlgmr.msrb.gmra.mxu1 %v1566_v9  ;;  %v7582_v6 = vor.u32 %v8361_v61, %v7581_v60  ;;  %v6821_v9 = vld [vmem:[%s9365_s15 + $0x148] sm:$0xf]  ;;  %v6814_v26 = vor.u32 %v8169_v15, %v6813_v14  ;;  %v8075_v60 = vld [vmem:[%s9365_s15 + $0x154] sm:$0xf]  ;;  %v7613_v14 = vld [vmem:[%s9365_s15 + $0x760] sm:$0xf] }
 0x2c5   : > { %4803 = vmatpush.bf16.xpose.msra.mxu0 %v7550_v52  ;;  %4816 = vmatpush.bf16.xpose.msra.mxu1 %v7554_v54  ;;  %v6802_v52 = vor.u32 %v8071_v42, %v6799_v43  ;;  %v1048_v54 = vld [vmem:[%s9363_s14 + $0xa0] sm:$0xff]  ;;  %v7599_v42 = vld [vmem:[%s9365_s15 + $0xa50] sm:$0xf0]  ;;  %v8365_v15 = vld [vmem:[%s9365_s15 + $0xa5c] sm:$0xf0] }
 0x2c6   : > { %4829 = vmatpush.bf16.xpose.msra.mxu2 %v7558_v50  ;;  %4792 = vmatmul.bf16.vlgmr.msrb.gmra.mxu3 %v1568_v12  ;;  %v1574_v50 = vld.sshfl [vmem:[#allocation1 + $0x8] sm:$0xff pattern:$0x73625140]  ;;  %v6831_v61 = vld [vmem:[%s9365_s15 + $0x450] sm:$0xf0] }
 0x2c7   : > { %4842 = vmatpush.bf16.xpose.msra.mxu3 %v7562_v51  ;;  %4779 = vmatmul.bf16.vlgmr.msrb.gmra.mxu2 %v1567_v10  ;;  %v1575_v51 = vld.sshfl [vmem:[#allocation1 + $0x10] sm:$0xff pattern:$0x73625140] }
 0x2c8   : > { %1582 = vst [vmem:[#allocation1] ss:$4 sm:$0xff] %v1048_v54  ;;  %v8170_v10 = vld [vmem:[%s9365_s15 + $0x444] sm:$0xf0]  ;;  %v6839_v54 = vld [vmem:[%s9365_s15 + $0x458] sm:$0xf0] }
 0x2c9   : > { %v4377_v40 = vpop.f32.mrf.mxu3  ;;  %v4340_v41 = vpop.f32.mrf.mxu0  ;;  %v6822_v22 = vor.u32 %v8170_v10, %v6821_v9  ;;  %v7621_v9 = vld [vmem:[%s9365_s15 + $0x768] sm:$0xf] }
 0x2ca   : > { %v4364_v35 = vpop.f32.mrf.mxu2  ;;  %v4353_v44 = vpop.f32.mrf.mxu1  ;;  %v8267_v41 = vld [vmem:[%s9365_s15 + $0x754] sm:$0xf]  ;;  %v8366_v10 = vld [vmem:[%s9365_s15 + $0xa64] sm:$0xf0] }
 0x2cb   : > { %v4365_v39 = vadd.f32 %v4364_v35, %v4352_v30  ;;  %v1580_v30 = vld.sshfl [vmem:[#allocation1 + $0x38] sm:$0xff pattern:$0x73625140] }
 0x2cd   : > { %4804 = vmatpush.bf16.xpose.msra.mxu0 %v6782_v8  ;;  %4817 = vmatpush.bf16.xpose.msra.mxu1 %v6786_v11  ;;  %v4378_v46 = vadd.f32 %v4377_v40, %v4365_v39  ;;  %v7586_v8 = vor.u32 %v8265_v0, %v7583_v1  ;;  %v8074_v11 = vld [vmem:[%s9365_s15 + $0x14c] sm:$0xf] }
 0x2ce   : > { %4830 = vmatpush.bf16.xpose.msra.mxu2 %v6790_v4  ;;  %v7590_v4 = vor.u32 %v8362_v56, %v7589_v55  ;;  %v6826_v25 = vor.u32 %v8074_v11, %v6823_v13  ;;  %v6829_v55 = vld [vmem:[%s9365_s15 + $0x150] sm:$0xf]  ;;  %v8270_v11 = vld [vmem:[%s9365_s15 + $0x76c] sm:$0xf] }
 0x2cf   : > { %4843 = vmatpush.bf16.xpose.msra.mxu3 %v6794_v7  ;;  %v8171_v56 = vld [vmem:[%s9365_s15 + $0x44c] sm:$0xf0]  ;;  %v1585_v1 = vld.sshfl [vmem:[#allocation1] sm:$0xff pattern:$0x73625140] }
 0x2d0   : > { %v7623_v13 = vld [vmem:[%s9365_s15 + $0xa68] sm:$0xf0] }
 0x2d1   : > { %v4379_v62 = vpop.f32.mrf.mxu3  ;;  %v4390_v63 = vpop.f32.mrf.mxu0 }
 0x2d2   : > { %v4366_v58 = vpop.f32.mrf.mxu2  ;;  %v4391_v2 = vadd.f32 %v4390_v63, %v4378_v46  ;;  %v4403_v3 = vpop.f32.mrf.mxu1  ;;  %v7610_v46 = vor.u32 %v8268_v34, %v7607_v36 }
 0x2d4   : > { %v4404_v7 = vadd.f32 %v4403_v3, %v4391_v2  ;;  %4805 = vmatmul.bf16.vlgmr.msra.gmra.mxu0 %v1573_v47  ;;  %4818 = vmatmul.bf16.vlgmr.msra.gmra.mxu1 %v1574_v50  ;;  %v7598_v47 = vor.u32 %v8363_v38, %v7597_v37  ;;  %v6837_v50 = vld [vmem:[%s9365_s15 + $0x158] sm:$0xf]  ;;  %v6830_v3 = vor.u32 %v8171_v56, %v6829_v55  ;;  %v8077_v37 = vld [vmem:[%s9365_s15 + $0x164] sm:$0xf]  ;;  %v7629_v55 = vld [vmem:[%s9365_s15 + $0x770] sm:$0xf] }
 0x2d5   : > { %4855 = vmatpush.bf16.xpose.msrb.mxu0 %v7566_v29  ;;  %4868 = vmatpush.bf16.xpose.msrb.mxu1 %v7570_v31  ;;  %v6818_v29 = vor.u32 %v8073_v19, %v6815_v20  ;;  %v1049_v31 = vld [vmem:[%s9363_s14 + $0xa8] sm:$0xff]  ;;  %v8367_v56 = vld [vmem:[%s9365_s15 + $0xa6c] sm:$0xf0] }
 0x2d6   : > { %4881 = vmatpush.bf16.xpose.msrb.mxu2 %v7574_v27  ;;  %4844 = vmatmul.bf16.vlgmr.msra.gmra.mxu3 %v1576_v53  ;;  %v1578_v27 = vld.sshfl [vmem:[#allocation1 + $0x28] sm:$0xff pattern:$0x73625140] }
 0x2d7   : > { %4894 = vmatpush.bf16.xpose.msrb.mxu3 %v7578_v28  ;;  %4831 = vmatmul.bf16.vlgmr.msra.gmra.mxu2 %v1575_v51  ;;  %v1579_v28 = vld.sshfl [vmem:[#allocation1 + $0x30] sm:$0xff pattern:$0x73625140]  ;;  %v8172_v51 = vld [vmem:[%s9365_s15 + $0x454] sm:$0xf0] }
 0x2d8   : > { %1584 = vst [vmem:[#allocation1 + $0x20] ss:$4 sm:$0xff] %v1049_v31  ;;  %v6838_v63 = vor.u32 %v8172_v51, %v6837_v50  ;;  %v7615_v19 = vld [vmem:[%s9365_s15 + $0xa60] sm:$0xf0]  ;;  %v6855_v31 = vld [vmem:[%s9365_s15 + $0x468] sm:$0xf0] }
 0x2d9   : > { %v4429_v17 = vpop.f32.mrf.mxu3  ;;  %v4392_v18 = vpop.f32.mrf.mxu0  ;;  %v6847_v38 = vld [vmem:[%s9365_s15 + $0x460] sm:$0xf0]  ;;  %v7637_v50 = vld [vmem:[%s9365_s15 + $0x778] sm:$0xf] }
 0x2da   : > { %v4416_v12 = vpop.f32.mrf.mxu2  ;;  %v4405_v21 = vpop.f32.mrf.mxu1  ;;  %v8269_v18 = vld [vmem:[%s9365_s15 + $0x764] sm:$0xf]  ;;  %v8368_v51 = vld [vmem:[%s9365_s15 + $0xa74] sm:$0xf0] }
 0x2db   : > { %v4417_v16 = vadd.f32 %v4416_v12, %v4404_v7  ;;  %v1588_v7 = vld.sshfl [vmem:[#allocation1 + $0x18] sm:$0xff pattern:$0x73625140] }
 0x2dd   : > { %4856 = vmatpush.bf16.xpose.msrb.mxu0 %v6798_v49  ;;  %4869 = vmatpush.bf16.xpose.msrb.mxu1 %v6802_v52  ;;  %v4430_v23 = vadd.f32 %v4429_v17, %v4417_v16  ;;  %v7602_v49 = vor.u32 %v8267_v41, %v7599_v42  ;;  %v8076_v52 = vld [vmem:[%s9365_s15 + $0x15c] sm:$0xf] }
 0x2de   : > { %4882 = vmatpush.bf16.xpose.msrb.mxu2 %v6806_v45  ;;  %v7606_v45 = vor.u32 %v8364_v33, %v7605_v32  ;;  %v6842_v2 = vor.u32 %v8076_v52, %v6839_v54  ;;  %v6845_v32 = vld [vmem:[%s9365_s15 + $0x160] sm:$0xf]  ;;  %v8272_v52 = vld [vmem:[%s9365_s15 + $0x77c] sm:$0xf] }
 0x2df   : > { %4895 = vmatpush.bf16.xpose.msrb.mxu3 %v6810_v48  ;;  %v8173_v33 = vld [vmem:[%s9365_s15 + $0x45c] sm:$0xf0]  ;;  %v1589_v42 = vld.sshfl [vmem:[#allocation1 + $0x20] sm:$0xff pattern:$0x73625140] }
 0x2e0   : > { %v7639_v54 = vld [vmem:[%s9365_s15 + $0xa78] sm:$0xf0] }
 0x2e1   : > { %v4431_v39 = vpop.f32.mrf.mxu3  ;;  %v4442_v40 = vpop.f32.mrf.mxu0 }
 0x2e2   : > { %v4418_v35 = vpop.f32.mrf.mxu2  ;;  %v4443_v43 = vadd.f32 %v4442_v40, %v4430_v23  ;;  %v4455_v44 = vpop.f32.mrf.mxu1  ;;  %v7626_v23 = vor.u32 %v8270_v11, %v7623_v13 }
 0x2e4   : > { %v4456_v48 = vadd.f32 %v4455_v44, %v4443_v43  ;;  %4857 = vmatmul.bf16.vlgmr.msrb.gmra.mxu0 %v1577_v24  ;;  %4870 = vmatmul.bf16.vlgmr.msrb.gmra.mxu1 %v1578_v27  ;;  %v7614_v24 = vor.u32 %v8365_v15, %v7613_v14  ;;  %v6853_v27 = vld [vmem:[%s9365_s15 + $0x168] sm:$0xf]  ;;  %v6846_v44 = vor.u32 %v8173_v33, %v6845_v32  ;;  %v8079_v14 = vld [vmem:[%s9365_s15 + $0x174] sm:$0xf]  ;;  %v7645_v32 = vld [vmem:[%s9365_s15 + $0x780] sm:$0xf] }
 0x2e5   : > { %4907 = vmatpush.bf16.xpose.msra.mxu0 %v7582_v6  ;;  %4920 = vmatpush.bf16.xpose.msra.mxu1 %v7586_v8  ;;  %v6834_v6 = vor.u32 %v8075_v60, %v6831_v61  ;;  %v1050_v8 = vld [vmem:[%s9363_s14 + $0xb0] sm:$0xff]  ;;  %v7631_v60 = vld [vmem:[%s9365_s15 + $0xa70] sm:$0xf0]  ;;  %v8369_v33 = vld [vmem:[%s9365_s15 + $0xa7c] sm:$0xf0] }
 0x2e6   : > { %4933 = vmatpush.bf16.xpose.msra.mxu2 %v7590_v4  ;;  %4896 = vmatmul.bf16.vlgmr.msrb.gmra.mxu3 %v1580_v30  ;;  %v1586_v4 = vld.sshfl [vmem:[#allocation1 + $0x8] sm:$0xff pattern:$0x73625140]  ;;  %v6863_v15 = vld [vmem:[%s9365_s15 + $0x470] sm:$0xf0] }
 0x2e7   : > { %4946 = vmatpush.bf16.xpose.msra.mxu3 %v7594_v5  ;;  %4883 = vmatmul.bf16.vlgmr.msrb.gmra.mxu2 %v1579_v28  ;;  %v1587_v5 = vld.sshfl [vmem:[#allocation1 + $0x10] sm:$0xff pattern:$0x73625140] }
 0x2e8   : > { %1594 = vst [vmem:[#allocation1] ss:$4 sm:$0xff] %v1050_v8  ;;  %v8174_v28 = vld [vmem:[%s9365_s15 + $0x464] sm:$0xf0]  ;;  %v6871_v8 = vld [vmem:[%s9365_s15 + $0x478] sm:$0xf0] }
 0x2e9   : > { %v4481_v58 = vpop.f32.mrf.mxu3  ;;  %v4444_v59 = vpop.f32.mrf.mxu0  ;;  %v6854_v40 = vor.u32 %v8174_v28, %v6853_v27  ;;  %v7653_v27 = vld [vmem:[%s9365_s15 + $0x788] sm:$0xf] }
 0x2ea   : > { %v4468_v53 = vpop.f32.mrf.mxu2  ;;  %v4457_v62 = vpop.f32.mrf.mxu1  ;;  %v8271_v59 = vld [vmem:[%s9365_s15 + $0x774] sm:$0xf]  ;;  %v8370_v28 = vld [vmem:[%s9365_s15 + $0xa84] sm:$0xf0] }
 0x2eb   : > { %v4469_v57 = vadd.f32 %v4468_v53, %v4456_v48  ;;  %v1592_v48 = vld.sshfl [vmem:[#allocation1 + $0x38] sm:$0xff pattern:$0x73625140] }
 0x2ed   : > { %4908 = vmatpush.bf16.xpose.msra.mxu0 %v6814_v26  ;;  %4921 = vmatpush.bf16.xpose.msra.mxu1 %v6818_v29  ;;  %v4482_v0 = vadd.f32 %v4481_v58, %v4469_v57  ;;  %v7618_v26 = vor.u32 %v8269_v18, %v7615_v19  ;;  %v8078_v29 = vld [vmem:[%s9365_s15 + $0x16c] sm:$0xf] }
 0x2ee   : > { %4934 = vmatpush.bf16.xpose.msra.mxu2 %v6822_v22  ;;  %v7622_v22 = vor.u32 %v8366_v10, %v7621_v9  ;;  %v6858_v43 = vor.u32 %v8078_v29, %v6855_v31  ;;  %v6861_v9 = vld [vmem:[%s9365_s15 + $0x170] sm:$0xf]  ;;  %v8274_v29 = vld [vmem:[%s9365_s15 + $0x78c] sm:$0xf] }
 0x2ef   : > { %4947 = vmatpush.bf16.xpose.msra.mxu3 %v6826_v25  ;;  %v8175_v10 = vld [vmem:[%s9365_s15 + $0x46c] sm:$0xf0]  ;;  %v1597_v19 = vld.sshfl [vmem:[#allocation1] sm:$0xff pattern:$0x73625140] }
 0x2f0   : > { %v7655_v31 = vld [vmem:[%s9365_s15 + $0xa88] sm:$0xf0] }
 0x2f1   : > { %v4483_v16 = vpop.f32.mrf.mxu3  ;;  %v4494_v17 = vpop.f32.mrf.mxu0 }
 0x2f2   : > { %v4470_v12 = vpop.f32.mrf.mxu2  ;;  %v4495_v20 = vadd.f32 %v4494_v17, %v4482_v0  ;;  %v4507_v21 = vpop.f32.mrf.mxu1  ;;  %v7642_v0 = vor.u32 %v8272_v52, %v7639_v54 }
 0x2f4   : > { %v4508_v25 = vadd.f32 %v4507_v21, %v4495_v20  ;;  %4909 = vmatmul.bf16.vlgmr.msra.gmra.mxu0 %v1585_v1  ;;  %4922 = vmatmul.bf16.vlgmr.msra.gmra.mxu1 %v1586_v4  ;;  %v7630_v1 = vor.u32 %v8367_v56, %v7629_v55  ;;  %v6869_v4 = vld [vmem:[%s9365_s15 + $0x178] sm:$0xf]  ;;  %v6862_v21 = vor.u32 %v8175_v10, %v6861_v9  ;;  %v8081_v55 = vld [vmem:[%s9365_s15 + $0x184] sm:$0xf]  ;;  %v7661_v9 = vld [vmem:[%s9365_s15 + $0x790] sm:$0xf] }
 0x2f5   : > { %4959 = vmatpush.bf16.xpose.msrb.mxu0 %v7598_v47  ;;  %4972 = vmatpush.bf16.xpose.msrb.mxu1 %v7602_v49  ;;  %v6850_v47 = vor.u32 %v8077_v37, %v6847_v38  ;;  %v1051_v49 = vld [vmem:[%s9363_s14 + $0xb8] sm:$0xff]  ;;  %v7647_v37 = vld [vmem:[%s9365_s15 + $0xa80] sm:$0xf0] }
 0x2f6   : > { %4985 = vmatpush.bf16.xpose.msrb.mxu2 %v7606_v45  ;;  %4948 = vmatmul.bf16.vlgmr.msra.gmra.mxu3 %v1588_v7  ;;  %v1590_v45 = vld.sshfl [vmem:[#allocation1 + $0x28] sm:$0xff pattern:$0x73625140]  ;;  %v8371_v10 = vld [vmem:[%s9365_s15 + $0xa8c] sm:$0xf0] }
 0x2f7   : > { %4998 = vmatpush.bf16.xpose.msrb.mxu3 %v7610_v46  ;;  %4935 = vmatmul.bf16.vlgmr.msra.gmra.mxu2 %v1587_v5  ;;  %v1591_v46 = vld.sshfl [vmem:[#allocation1 + $0x30] sm:$0xff pattern:$0x73625140]  ;;  %v8176_v5 = vld [vmem:[%s9365_s15 + $0x474] sm:$0xf0] }
 0x2f8   : > { %1596 = vst [vmem:[#allocation1 + $0x20] ss:$4 sm:$0xff] %v1051_v49  ;;  %v6870_v17 = vor.u32 %v8176_v5, %v6869_v4  ;;  %v6887_v49 = vld [vmem:[%s9365_s15 + $0x488] sm:$0xf0]  ;;  %v6879_v56 = vld [vmem:[%s9365_s15 + $0x480] sm:$0xf0] }
 0x2f9   : > { %v4533_v35 = vpop.f32.mrf.mxu3  ;;  %v4496_v36 = vpop.f32.mrf.mxu0  ;;  %v7669_v4 = vld [vmem:[%s9365_s15 + $0x798] sm:$0xf] }
 0x2fa   : > { %v4520_v30 = vpop.f32.mrf.mxu2  ;;  %v4509_v39 = vpop.f32.mrf.mxu1  ;;  %v8273_v36 = vld [vmem:[%s9365_s15 + $0x784] sm:$0xf]  ;;  %v8372_v5 = vld [vmem:[%s9365_s15 + $0xa94] sm:$0xf0] }
 0x2fb   : > { %v4521_v34 = vadd.f32 %v4520_v30, %v4508_v25  ;;  %v1600_v25 = vld.sshfl [vmem:[#allocation1 + $0x18] sm:$0xff pattern:$0x73625140] }
 0x2fd   : > { %4960 = vmatpush.bf16.xpose.msrb.mxu0 %v6830_v3  ;;  %4973 = vmatpush.bf16.xpose.msrb.mxu1 %v6834_v6  ;;  %v4534_v41 = vadd.f32 %v4533_v35, %v4521_v34  ;;  %v7634_v3 = vor.u32 %v8271_v59, %v7631_v60  ;;  %v8080_v6 = vld [vmem:[%s9365_s15 + $0x17c] sm:$0xf] }
 0x2fe   : > { %4986 = vmatpush.bf16.xpose.msrb.mxu2 %v6838_v63  ;;  %v7638_v63 = vor.u32 %v8368_v51, %v7637_v50  ;;  %v6874_v20 = vor.u32 %v8080_v6, %v6871_v8  ;;  %v6877_v50 = vld [vmem:[%s9365_s15 + $0x180] sm:$0xf]  ;;  %v8276_v6 = vld [vmem:[%s9365_s15 + $0x79c] sm:$0xf] }
 0x2ff   : > { %4999 = vmatpush.bf16.xpose.msrb.mxu3 %v6842_v2  ;;  %v8177_v51 = vld [vmem:[%s9365_s15 + $0x47c] sm:$0xf0]  ;;  %v1601_v60 = vld.sshfl [vmem:[#allocation1 + $0x20] sm:$0xff pattern:$0x73625140] }
 0x300   : > { %v7671_v8 = vld [vmem:[%s9365_s15 + $0xa98] sm:$0xf0] }
 0x301   : > { %v4535_v57 = vpop.f32.mrf.mxu3  ;;  %v4546_v58 = vpop.f32.mrf.mxu0 }
 0x302   : > { %v4522_v53 = vpop.f32.mrf.mxu2  ;;  %v4547_v61 = vadd.f32 %v4546_v58, %v4534_v41  ;;  %v4559_v62 = vpop.f32.mrf.mxu1  ;;  %v7658_v41 = vor.u32 %v8274_v29, %v7655_v31 }
 0x304   : > { %v4560_v2 = vadd.f32 %v4559_v62, %v4547_v61  ;;  %4961 = vmatmul.bf16.vlgmr.msrb.gmra.mxu0 %v1589_v42  ;;  %4974 = vmatmul.bf16.vlgmr.msrb.gmra.mxu1 %v1590_v45  ;;  %v7646_v42 = vor.u32 %v8369_v33, %v7645_v32  ;;  %v6885_v45 = vld [vmem:[%s9365_s15 + $0x188] sm:$0xf]  ;;  %v6878_v62 = vor.u32 %v8177_v51, %v6877_v50  ;;  %v8083_v32 = vld [vmem:[%s9365_s15 + $0x194] sm:$0xf]  ;;  %v7677_v50 = vld [vmem:[%s9365_s15 + $0x7a0] sm:$0xf] }
 0x305   : > { %5011 = vmatpush.bf16.xpose.msra.mxu0 %v7614_v24  ;;  %5024 = vmatpush.bf16.xpose.msra.mxu1 %v7618_v26  ;;  %v6866_v24 = vor.u32 %v8079_v14, %v6863_v15  ;;  %v1052_v26 = vld [vmem:[%s9363_s14 + $0xc0] sm:$0xff]  ;;  %v7663_v14 = vld [vmem:[%s9365_s15 + $0xa90] sm:$0xf0]  ;;  %v8373_v51 = vld [vmem:[%s9365_s15 + $0xa9c] sm:$0xf0] }
 0x306   : > { %5037 = vmatpush.bf16.xpose.msra.mxu2 %v7622_v22  ;;  %5000 = vmatmul.bf16.vlgmr.msrb.gmra.mxu3 %v1592_v48  ;;  %v1598_v22 = vld.sshfl [vmem:[#allocation1 + $0x8] sm:$0xff pattern:$0x73625140]  ;;  %v6895_v33 = vld [vmem:[%s9365_s15 + $0x490] sm:$0xf0] }
 0x307   : > { %5050 = vmatpush.bf16.xpose.msra.mxu3 %v7626_v23  ;;  %4987 = vmatmul.bf16.vlgmr.msrb.gmra.mxu2 %v1591_v46  ;;  %v1599_v23 = vld.sshfl [vmem:[#allocation1 + $0x10] sm:$0xff pattern:$0x73625140] }
 0x308   : > { %1606 = vst [vmem:[#allocation1] ss:$4 sm:$0xff] %v1052_v26  ;;  %v8178_v46 = vld [vmem:[%s9365_s15 + $0x484] sm:$0xf0]  ;;  %v6903_v26 = vld [vmem:[%s9365_s15 + $0x498] sm:$0xf0] }
 0x309   : > { %v4585_v12 = vpop.f32.mrf.mxu3  ;;  %v4548_v13 = vpop.f32.mrf.mxu0  ;;  %v6886_v58 = vor.u32 %v8178_v46, %v6885_v45  ;;  %v7685_v45 = vld [vmem:[%s9365_s15 + $0x7a8] sm:$0xf] }
 0x30a   : > { %v4572_v7 = vpop.f32.mrf.mxu2  ;;  %v4561_v16 = vpop.f32.mrf.mxu1  ;;  %v8275_v13 = vld [vmem:[%s9365_s15 + $0x794] sm:$0xf]  ;;  %v8374_v46 = vld [vmem:[%s9365_s15 + $0xaa4] sm:$0xf0] }
 0x30b   : > { %v4573_v11 = vadd.f32 %v4572_v7, %v4560_v2  ;;  %v1604_v2 = vld.sshfl [vmem:[#allocation1 + $0x38] sm:$0xff pattern:$0x73625140] }
 0x30d   : > { %5012 = vmatpush.bf16.xpose.msra.mxu0 %v6846_v44  ;;  %5025 = vmatpush.bf16.xpose.msra.mxu1 %v6850_v47  ;;  %v4586_v18 = vadd.f32 %v4585_v12, %v4573_v11  ;;  %v7650_v44 = vor.u32 %v8273_v36, %v7647_v37  ;;  %v8082_v47 = vld [vmem:[%s9365_s15 + $0x18c] sm:$0xf] }
 0x30e   : > { %5038 = vmatpush.bf16.xpose.msra.mxu2 %v6854_v40  ;;  %v7654_v40 = vor.u32 %v8370_v28, %v7653_v27  ;;  %v6890_v61 = vor.u32 %v8082_v47, %v6887_v49  ;;  %v6893_v27 = vld [vmem:[%s9365_s15 + $0x190] sm:$0xf]  ;;  %v8278_v47 = vld [vmem:[%s9365_s15 + $0x7ac] sm:$0xf] }
 0x30f   : > { %5051 = vmatpush.bf16.xpose.msra.mxu3 %v6858_v43  ;;  %v8179_v28 = vld [vmem:[%s9365_s15 + $0x48c] sm:$0xf0]  ;;  %v1609_v37 = vld.sshfl [vmem:[#allocation1] sm:$0xff pattern:$0x73625140] }
 0x310   : > { %v7687_v49 = vld [vmem:[%s9365_s15 + $0xaa8] sm:$0xf0] }
 0x311   : > { %v4587_v34 = vpop.f32.mrf.mxu3  ;;  %v4598_v35 = vpop.f32.mrf.mxu0 }
 0x312   : > { %v4574_v30 = vpop.f32.mrf.mxu2  ;;  %v4599_v38 = vadd.f32 %v4598_v35, %v4586_v18  ;;  %v4611_v39 = vpop.f32.mrf.mxu1  ;;  %v7674_v18 = vor.u32 %v8276_v6, %v7671_v8 }
 0x314   : > { %v4612_v43 = vadd.f32 %v4611_v39, %v4599_v38  ;;  %5013 = vmatmul.bf16.vlgmr.msra.gmra.mxu0 %v1597_v19  ;;  %5026 = vmatmul.bf16.vlgmr.msra.gmra.mxu1 %v1598_v22  ;;  %v7662_v19 = vor.u32 %v8371_v10, %v7661_v9  ;;  %v6901_v22 = vld [vmem:[%s9365_s15 + $0x198] sm:$0xf]  ;;  %v6894_v39 = vor.u32 %v8179_v28, %v6893_v27  ;;  %v8085_v9 = vld [vmem:[%s9365_s15 + $0x1a4] sm:$0xf]  ;;  %v7693_v27 = vld [vmem:[%s9365_s15 + $0x7b0] sm:$0xf] }
 0x315   : > { %5063 = vmatpush.bf16.xpose.msrb.mxu0 %v7630_v1  ;;  %5076 = vmatpush.bf16.xpose.msrb.mxu1 %v7634_v3  ;;  %v6882_v1 = vor.u32 %v8081_v55, %v6879_v56  ;;  %v1053_v3 = vld [vmem:[%s9363_s14 + $0xc8] sm:$0xff]  ;;  %v8375_v28 = vld [vmem:[%s9365_s15 + $0xaac] sm:$0xf0] }
 0x316   : > { %5089 = vmatpush.bf16.xpose.msrb.mxu2 %v7638_v63  ;;  %5052 = vmatmul.bf16.vlgmr.msra.gmra.mxu3 %v1600_v25  ;;  %v1602_v63 = vld.sshfl [vmem:[#allocation1 + $0x28] sm:$0xff pattern:$0x73625140] }
 0x317   : > { %5102 = vmatpush.bf16.xpose.msrb.mxu3 %v7642_v0  ;;  %5039 = vmatmul.bf16.vlgmr.msra.gmra.mxu2 %v1599_v23  ;;  %v1603_v0 = vld.sshfl [vmem:[#allocation1 + $0x30] sm:$0xff pattern:$0x73625140]  ;;  %v8180_v23 = vld [vmem:[%s9365_s15 + $0x494] sm:$0xf0] }
 0x318   : > { %1608 = vst [vmem:[#allocation1 + $0x20] ss:$4 sm:$0xff] %v1053_v3  ;;  %v6902_v35 = vor.u32 %v8180_v23, %v6901_v22  ;;  %v7679_v55 = vld [vmem:[%s9365_s15 + $0xaa0] sm:$0xf0]  ;;  %v6919_v3 = vld [vmem:[%s9365_s15 + $0x4a8] sm:$0xf0] }
 0x319   : > { %v4637_v53 = vpop.f32.mrf.mxu3  ;;  %v4600_v54 = vpop.f32.mrf.mxu0  ;;  %v6911_v10 = vld [vmem:[%s9365_s15 + $0x4a0] sm:$0xf0]  ;;  %v7701_v22 = vld [vmem:[%s9365_s15 + $0x7b8] sm:$0xf] }
 0x31a   : > { %v4624_v48 = vpop.f32.mrf.mxu2  ;;  %v4613_v57 = vpop.f32.mrf.mxu1  ;;  %v8277_v54 = vld [vmem:[%s9365_s15 + $0x7a4] sm:$0xf]  ;;  %v8376_v23 = vld [vmem:[%s9365_s15 + $0xab4] sm:$0xf0] }
 0x31b   : > { %v4625_v52 = vadd.f32 %v4624_v48, %v4612_v43  ;;  %v1612_v43 = vld.sshfl [vmem:[#allocation1 + $0x18] sm:$0xff pattern:$0x73625140] }
 0x31d   : > { %5064 = vmatpush.bf16.xpose.msrb.mxu0 %v6862_v21  ;;  %5077 = vmatpush.bf16.xpose.msrb.mxu1 %v6866_v24  ;;  %v4638_v59 = vadd.f32 %v4637_v53, %v4625_v52  ;;  %v7666_v21 = vor.u32 %v8275_v13, %v7663_v14  ;;  %v8084_v24 = vld [vmem:[%s9365_s15 + $0x19c] sm:$0xf] }
 0x31e   : > { %5090 = vmatpush.bf16.xpose.msrb.mxu2 %v6870_v17  ;;  %v7670_v17 = vor.u32 %v8372_v5, %v7669_v4  ;;  %v6906_v38 = vor.u32 %v8084_v24, %v6903_v26  ;;  %v6909_v4 = vld [vmem:[%s9365_s15 + $0x1a0] sm:$0xf]  ;;  %v8280_v24 = vld [vmem:[%s9365_s15 + $0x7bc] sm:$0xf] }
 0x31f   : > { %5103 = vmatpush.bf16.xpose.msrb.mxu3 %v6874_v20  ;;  %v8181_v5 = vld [vmem:[%s9365_s15 + $0x49c] sm:$0xf0]  ;;  %v1613_v14 = vld.sshfl [vmem:[#allocation1 + $0x20] sm:$0xff pattern:$0x73625140] }
 0x320   : > { %v7703_v26 = vld [vmem:[%s9365_s15 + $0xab8] sm:$0xf0] }
 0x321   : > { %v4639_v11 = vpop.f32.mrf.mxu3  ;;  %v4650_v12 = vpop.f32.mrf.mxu0 }
 0x322   : > { %v4626_v7 = vpop.f32.mrf.mxu2  ;;  %v4651_v15 = vadd.f32 %v4650_v12, %v4638_v59  ;;  %v4663_v16 = vpop.f32.mrf.mxu1  ;;  %v7690_v59 = vor.u32 %v8278_v47, %v7687_v49 }
 0x324   : > { %v4664_v20 = vadd.f32 %v4663_v16, %v4651_v15  ;;  %5065 = vmatmul.bf16.vlgmr.msrb.gmra.mxu0 %v1601_v60  ;;  %5078 = vmatmul.bf16.vlgmr.msrb.gmra.mxu1 %v1602_v63  ;;  %v7678_v60 = vor.u32 %v8373_v51, %v7677_v50  ;;  %v6917_v63 = vld [vmem:[%s9365_s15 + $0x1a8] sm:$0xf]  ;;  %v6910_v16 = vor.u32 %v8181_v5, %v6909_v4  ;;  %v8087_v50 = vld [vmem:[%s9365_s15 + $0x1b4] sm:$0xf]  ;;  %v7709_v4 = vld [vmem:[%s9365_s15 + $0x7c0] sm:$0xf] }
 0x325   : > { %5115 = vmatpush.bf16.xpose.msra.mxu0 %v7646_v42  ;;  %5128 = vmatpush.bf16.xpose.msra.mxu1 %v7650_v44  ;;  %v6898_v42 = vor.u32 %v8083_v32, %v6895_v33  ;;  %v1054_v44 = vld [vmem:[%s9363_s14 + $0xd0] sm:$0xff]  ;;  %v7695_v32 = vld [vmem:[%s9365_s15 + $0xab0] sm:$0xf0]  ;;  %v8377_v5 = vld [vmem:[%s9365_s15 + $0xabc] sm:$0xf0] }
 0x326   : > { %5141 = vmatpush.bf16.xpose.msra.mxu2 %v7654_v40  ;;  %5104 = vmatmul.bf16.vlgmr.msrb.gmra.mxu3 %v1604_v2  ;;  %v1610_v40 = vld.sshfl [vmem:[#allocation1 + $0x8] sm:$0xff pattern:$0x73625140]  ;;  %v6927_v51 = vld [vmem:[%s9365_s15 + $0x4b0] sm:$0xf0] }
 0x327   : > { %5154 = vmatpush.bf16.xpose.msra.mxu3 %v7658_v41  ;;  %5091 = vmatmul.bf16.vlgmr.msrb.gmra.mxu2 %v1603_v0  ;;  %v1611_v41 = vld.sshfl [vmem:[#allocation1 + $0x10] sm:$0xff pattern:$0x73625140] }
 0x328   : > { %1618 = vst [vmem:[#allocation1] ss:$4 sm:$0xff] %v1054_v44  ;;  %v8182_v0 = vld [vmem:[%s9365_s15 + $0x4a4] sm:$0xf0]  ;;  %v6935_v44 = vld [vmem:[%s9365_s15 + $0x4b8] sm:$0xf0] }
 0x329   : > { %v4689_v30 = vpop.f32.mrf.mxu3  ;;  %v4652_v31 = vpop.f32.mrf.mxu0  ;;  %v6918_v12 = vor.u32 %v8182_v0, %v6917_v63  ;;  %v7717_v63 = vld [vmem:[%s9365_s15 + $0x7c8] sm:$0xf] }
 0x32a   : > { %v4676_v25 = vpop.f32.mrf.mxu2  ;;  %v4665_v34 = vpop.f32.mrf.mxu1  ;;  %v8279_v31 = vld [vmem:[%s9365_s15 + $0x7b4] sm:$0xf]  ;;  %v8378_v0 = vld [vmem:[%s9365_s15 + $0xac4] sm:$0xf0] }
 0x32b   : > { %v4677_v29 = vadd.f32 %v4676_v25, %v4664_v20  ;;  %v1616_v20 = vld.sshfl [vmem:[#allocation1 + $0x38] sm:$0xff pattern:$0x73625140] }
 0x32d   : > { %5116 = vmatpush.bf16.xpose.msra.mxu0 %v6878_v62  ;;  %5129 = vmatpush.bf16.xpose.msra.mxu1 %v6882_v1  ;;  %v4690_v36 = vadd.f32 %v4689_v30, %v4677_v29  ;;  %v7682_v62 = vor.u32 %v8277_v54, %v7679_v55  ;;  %v8086_v1 = vld [vmem:[%s9365_s15 + $0x1ac] sm:$0xf] }
 0x32e   : > { %5142 = vmatpush.bf16.xpose.msra.mxu2 %v6886_v58  ;;  %v7686_v58 = vor.u32 %v8374_v46, %v7685_v45  ;;  %v6922_v15 = vor.u32 %v8086_v1, %v6919_v3  ;;  %v6925_v45 = vld [vmem:[%s9365_s15 + $0x1b0] sm:$0xf]  ;;  %v8282_v1 = vld [vmem:[%s9365_s15 + $0x7cc] sm:$0xf] }
 0x32f   : > { %5155 = vmatpush.bf16.xpose.msra.mxu3 %v6890_v61  ;;  %v8183_v46 = vld [vmem:[%s9365_s15 + $0x4ac] sm:$0xf0]  ;;  %v1621_v55 = vld.sshfl [vmem:[#allocation1] sm:$0xff pattern:$0x73625140] }
 0x330   : > { %v7719_v3 = vld [vmem:[%s9365_s15 + $0xac8] sm:$0xf0] }
 0x331   : > { %v4691_v52 = vpop.f32.mrf.mxu3  ;;  %v4702_v53 = vpop.f32.mrf.mxu0 }
 0x332   : > { %v4678_v48 = vpop.f32.mrf.mxu2  ;;  %v4703_v56 = vadd.f32 %v4702_v53, %v4690_v36  ;;  %v4715_v57 = vpop.f32.mrf.mxu1  ;;  %v7706_v36 = vor.u32 %v8280_v24, %v7703_v26 }
 0x334   : > { %v4716_v61 = vadd.f32 %v4715_v57, %v4703_v56  ;;  %5117 = vmatmul.bf16.vlgmr.msra.gmra.mxu0 %v1609_v37  ;;  %5130 = vmatmul.bf16.vlgmr.msra.gmra.mxu1 %v1610_v40  ;;  %v7694_v37 = vor.u32 %v8375_v28, %v7693_v27  ;;  %v6933_v40 = vld [vmem:[%s9365_s15 + $0x1b8] sm:$0xf]  ;;  %v6926_v57 = vor.u32 %v8183_v46, %v6925_v45  ;;  %v8089_v27 = vld [vmem:[%s9365_s15 + $0x1c4] sm:$0xf]  ;;  %v7725_v45 = vld [vmem:[%s9365_s15 + $0x7d0] sm:$0xf] }
 0x335   : > { %5167 = vmatpush.bf16.xpose.msrb.mxu0 %v7662_v19  ;;  %5180 = vmatpush.bf16.xpose.msrb.mxu1 %v7666_v21  ;;  %v6914_v19 = vor.u32 %v8085_v9, %v6911_v10  ;;  %v1055_v21 = vld [vmem:[%s9363_s14 + $0xd8] sm:$0xff]  ;;  %v7711_v9 = vld [vmem:[%s9365_s15 + $0xac0] sm:$0xf0] }
 0x336   : > { %5193 = vmatpush.bf16.xpose.msrb.mxu2 %v7670_v17  ;;  %5156 = vmatmul.bf16.vlgmr.msra.gmra.mxu3 %v1612_v43  ;;  %v1614_v17 = vld.sshfl [vmem:[#allocation1 + $0x28] sm:$0xff pattern:$0x73625140]  ;;  %v8379_v46 = vld [vmem:[%s9365_s15 + $0xacc] sm:$0xf0] }
 0x337   : > { %5206 = vmatpush.bf16.xpose.msrb.mxu3 %v7674_v18  ;;  %5143 = vmatmul.bf16.vlgmr.msra.gmra.mxu2 %v1611_v41  ;;  %v1615_v18 = vld.sshfl [vmem:[#allocation1 + $0x30] sm:$0xff pattern:$0x73625140]  ;;  %v8184_v41 = vld [vmem:[%s9365_s15 + $0x4b4] sm:$0xf0] }
 0x338   : > { %1620 = vst [vmem:[#allocation1 + $0x20] ss:$4 sm:$0xff] %v1055_v21  ;;  %v6934_v53 = vor.u32 %v8184_v41, %v6933_v40  ;;  %v6951_v21 = vld [vmem:[%s9365_s15 + $0x4c8] sm:$0xf0]  ;;  %v6943_v28 = vld [vmem:[%s9365_s15 + $0x4c0] sm:$0xf0] }
 0x339   : > { %v4741_v7 = vpop.f32.mrf.mxu3  ;;  %v4704_v8 = vpop.f32.mrf.mxu0  ;;  %v7733_v40 = vld [vmem:[%s9365_s15 + $0x7d8] sm:$0xf] }
 0x33a   : > { %v4728_v2 = vpop.f32.mrf.mxu2  ;;  %v4717_v11 = vpop.f32.mrf.mxu1  ;;  %v8281_v8 = vld [vmem:[%s9365_s15 + $0x7c4] sm:$0xf]  ;;  %v8380_v41 = vld [vmem:[%s9365_s15 + $0xad4] sm:$0xf0] }
 0x33b   : > { %v4729_v6 = vadd.f32 %v4728_v2, %v4716_v61  ;;  %v1624_v61 = vld.sshfl [vmem:[#allocation1 + $0x18] sm:$0xff pattern:$0x73625140] }
 0x33d   : > { %5168 = vmatpush.bf16.xpose.msrb.mxu0 %v6894_v39  ;;  %5181 = vmatpush.bf16.xpose.msrb.mxu1 %v6898_v42  ;;  %v4742_v13 = vadd.f32 %v4741_v7, %v4729_v6  ;;  %v7698_v39 = vor.u32 %v8279_v31, %v7695_v32  ;;  %v8088_v42 = vld [vmem:[%s9365_s15 + $0x1bc] sm:$0xf] }
 0x33e   : > { %5194 = vmatpush.bf16.xpose.msrb.mxu2 %v6902_v35  ;;  %v7702_v35 = vor.u32 %v8376_v23, %v7701_v22  ;;  %v6938_v56 = vor.u32 %v8088_v42, %v6935_v44  ;;  %v6941_v22 = vld [vmem:[%s9365_s15 + $0x1c0] sm:$0xf]  ;;  %v8284_v42 = vld [vmem:[%s9365_s15 + $0x7dc] sm:$0xf] }
 0x33f   : > { %5207 = vmatpush.bf16.xpose.msrb.mxu3 %v6906_v38  ;;  %v8185_v23 = vld [vmem:[%s9365_s15 + $0x4bc] sm:$0xf0]  ;;  %v1625_v32 = vld.sshfl [vmem:[#allocation1 + $0x20] sm:$0xff pattern:$0x73625140] }
 0x340   : > { %v7735_v44 = vld [vmem:[%s9365_s15 + $0xad8] sm:$0xf0] }
 0x341   : > { %v4743_v29 = vpop.f32.mrf.mxu3  ;;  %v4754_v30 = vpop.f32.mrf.mxu0 }
 0x342   : > { %v4730_v25 = vpop.f32.mrf.mxu2  ;;  %v4755_v33 = vadd.f32 %v4754_v30, %v4742_v13  ;;  %v4767_v34 = vpop.f32.mrf.mxu1  ;;  %v7722_v13 = vor.u32 %v8282_v1, %v7719_v3 }
 0x344   : > { %v4768_v38 = vadd.f32 %v4767_v34, %v4755_v33  ;;  %5169 = vmatmul.bf16.vlgmr.msrb.gmra.mxu0 %v1613_v14  ;;  %5182 = vmatmul.bf16.vlgmr.msrb.gmra.mxu1 %v1614_v17  ;;  %v7710_v14 = vor.u32 %v8377_v5, %v7709_v4  ;;  %v6949_v17 = vld [vmem:[%s9365_s15 + $0x1c8] sm:$0xf]  ;;  %v6942_v34 = vor.u32 %v8185_v23, %v6941_v22  ;;  %v8091_v4 = vld [vmem:[%s9365_s15 + $0x1d4] sm:$0xf]  ;;  %v7741_v22 = vld [vmem:[%s9365_s15 + $0x7e0] sm:$0xf] }
 0x345   : > { %5219 = vmatpush.bf16.xpose.msra.mxu0 %v7678_v60  ;;  %5232 = vmatpush.bf16.xpose.msra.mxu1 %v7682_v62  ;;  %v6930_v60 = vor.u32 %v8087_v50, %v6927_v51  ;;  %v1056_v62 = vld [vmem:[%s9363_s14 + $0xe0] sm:$0xff]  ;;  %v7727_v50 = vld [vmem:[%s9365_s15 + $0xad0] sm:$0xf0]  ;;  %v8381_v23 = vld [vmem:[%s9365_s15 + $0xadc] sm:$0xf0] }
 0x346   : > { %5245 = vmatpush.bf16.xpose.msra.mxu2 %v7686_v58  ;;  %5208 = vmatmul.bf16.vlgmr.msrb.gmra.mxu3 %v1616_v20  ;;  %v1622_v58 = vld.sshfl [vmem:[#allocation1 + $0x8] sm:$0xff pattern:$0x73625140]  ;;  %v6959_v5 = vld [vmem:[%s9365_s15 + $0x4d0] sm:$0xf0] }
 0x347   : > { %5258 = vmatpush.bf16.xpose.msra.mxu3 %v7690_v59  ;;  %5195 = vmatmul.bf16.vlgmr.msrb.gmra.mxu2 %v1615_v18  ;;  %v1623_v59 = vld.sshfl [vmem:[#allocation1 + $0x10] sm:$0xff pattern:$0x73625140] }
 0x348   : > { %1630 = vst [vmem:[#allocation1] ss:$4 sm:$0xff] %v1056_v62  ;;  %v8186_v18 = vld [vmem:[%s9365_s15 + $0x4c4] sm:$0xf0]  ;;  %v6967_v62 = vld [vmem:[%s9365_s15 + $0x4d8] sm:$0xf0] }
 0x349   : > { %v4793_v48 = vpop.f32.mrf.mxu3  ;;  %v4756_v49 = vpop.f32.mrf.mxu0  ;;  %v6950_v30 = vor.u32 %v8186_v18, %v6949_v17  ;;  %v7749_v17 = vld [vmem:[%s9365_s15 + $0x7e8] sm:$0xf] }
 0x34a   : > { %v4780_v43 = vpop.f32.mrf.mxu2  ;;  %v4769_v52 = vpop.f32.mrf.mxu1  ;;  %v8283_v49 = vld [vmem:[%s9365_s15 + $0x7d4] sm:$0xf]  ;;  %v8382_v18 = vld [vmem:[%s9365_s15 + $0xae4] sm:$0xf0] }
 0x34b   : > { %v4781_v47 = vadd.f32 %v4780_v43, %v4768_v38  ;;  %v1628_v38 = vld.sshfl [vmem:[#allocation1 + $0x38] sm:$0xff pattern:$0x73625140] }
 0x34d   : > { %5220 = vmatpush.bf16.xpose.msra.mxu0 %v6910_v16  ;;  %5233 = vmatpush.bf16.xpose.msra.mxu1 %v6914_v19  ;;  %v4794_v54 = vadd.f32 %v4793_v48, %v4781_v47  ;;  %v7714_v16 = vor.u32 %v8281_v8, %v7711_v9  ;;  %v8090_v19 = vld [vmem:[%s9365_s15 + $0x1cc] sm:$0xf] }
 0x34e   : > { %5246 = vmatpush.bf16.xpose.msra.mxu2 %v6918_v12  ;;  %v7718_v12 = vor.u32 %v8378_v0, %v7717_v63  ;;  %v6954_v33 = vor.u32 %v8090_v19, %v6951_v21  ;;  %v6957_v63 = vld [vmem:[%s9365_s15 + $0x1d0] sm:$0xf]  ;;  %v8286_v19 = vld [vmem:[%s9365_s15 + $0x7ec] sm:$0xf] }
 0x34f   : > { %5259 = vmatpush.bf16.xpose.msra.mxu3 %v6922_v15  ;;  %v8187_v0 = vld [vmem:[%s9365_s15 + $0x4cc] sm:$0xf0]  ;;  %v1633_v9 = vld.sshfl [vmem:[#allocation1] sm:$0xff pattern:$0x73625140] }
 0x350   : > { %v7751_v21 = vld [vmem:[%s9365_s15 + $0xae8] sm:$0xf0] }
 0x351   : > { %v4795_v6 = vpop.f32.mrf.mxu3  ;;  %v4806_v7 = vpop.f32.mrf.mxu0 }
 0x352   : > { %v4782_v2 = vpop.f32.mrf.mxu2  ;;  %v4807_v10 = vadd.f32 %v4806_v7, %v4794_v54  ;;  %v4819_v11 = vpop.f32.mrf.mxu1  ;;  %v7738_v54 = vor.u32 %v8284_v42, %v7735_v44 }
 0x354   : > { %v4820_v15 = vadd.f32 %v4819_v11, %v4807_v10  ;;  %5221 = vmatmul.bf16.vlgmr.msra.gmra.mxu0 %v1621_v55  ;;  %5234 = vmatmul.bf16.vlgmr.msra.gmra.mxu1 %v1622_v58  ;;  %v7726_v55 = vor.u32 %v8379_v46, %v7725_v45  ;;  %v6965_v58 = vld [vmem:[%s9365_s15 + $0x1d8] sm:$0xf]  ;;  %v6958_v11 = vor.u32 %v8187_v0, %v6957_v63  ;;  %v8093_v45 = vld [vmem:[%s9365_s15 + $0x1e4] sm:$0xf]  ;;  %v7757_v63 = vld [vmem:[%s9365_s15 + $0x7f0] sm:$0xf] }
 0x355   : > { %5271 = vmatpush.bf16.xpose.msrb.mxu0 %v7694_v37  ;;  %5284 = vmatpush.bf16.xpose.msrb.mxu1 %v7698_v39  ;;  %v6946_v37 = vor.u32 %v8089_v27, %v6943_v28  ;;  %v1057_v39 = vld [vmem:[%s9363_s14 + $0xe8] sm:$0xff]  ;;  %v8383_v0 = vld [vmem:[%s9365_s15 + $0xaec] sm:$0xf0] }
 0x356   : > { %5297 = vmatpush.bf16.xpose.msrb.mxu2 %v7702_v35  ;;  %5260 = vmatmul.bf16.vlgmr.msra.gmra.mxu3 %v1624_v61  ;;  %v1626_v35 = vld.sshfl [vmem:[#allocation1 + $0x28] sm:$0xff pattern:$0x73625140] }
 0x357   : > { %5310 = vmatpush.bf16.xpose.msrb.mxu3 %v7706_v36  ;;  %5247 = vmatmul.bf16.vlgmr.msra.gmra.mxu2 %v1623_v59  ;;  %v1627_v36 = vld.sshfl [vmem:[#allocation1 + $0x30] sm:$0xff pattern:$0x73625140]  ;;  %v8188_v59 = vld [vmem:[%s9365_s15 + $0x4d4] sm:$0xf0] }
 0x358   : > { %1632 = vst [vmem:[#allocation1 + $0x20] ss:$4 sm:$0xff] %v1057_v39  ;;  %v6966_v7 = vor.u32 %v8188_v59, %v6965_v58  ;;  %v7743_v27 = vld [vmem:[%s9365_s15 + $0xae0] sm:$0xf0]  ;;  %v6983_v39 = vld [vmem:[%s9365_s15 + $0x4e8] sm:$0xf0] }
 0x359   : > { %v4845_v25 = vpop.f32.mrf.mxu3  ;;  %v4808_v26 = vpop.f32.mrf.mxu0  ;;  %v6975_v46 = vld [vmem:[%s9365_s15 + $0x4e0] sm:$0xf0]  ;;  %v7765_v58 = vld [vmem:[%s9365_s15 + $0x7f8] sm:$0xf] }
 0x35a   : > { %v4832_v20 = vpop.f32.mrf.mxu2  ;;  %v4821_v29 = vpop.f32.mrf.mxu1  ;;  %v8285_v26 = vld [vmem:[%s9365_s15 + $0x7e4] sm:$0xf]  ;;  %v8384_v59 = vld [vmem:[%s9365_s15 + $0xaf4] sm:$0xf0] }
 0x35b   : > { %v4833_v24 = vadd.f32 %v4832_v20, %v4820_v15  ;;  %v1636_v15 = vld.sshfl [vmem:[#allocation1 + $0x18] sm:$0xff pattern:$0x73625140] }
 0x35d   : > { %5272 = vmatpush.bf16.xpose.msrb.mxu0 %v6926_v57  ;;  %5285 = vmatpush.bf16.xpose.msrb.mxu1 %v6930_v60  ;;  %v4846_v31 = vadd.f32 %v4845_v25, %v4833_v24  ;;  %v7730_v57 = vor.u32 %v8283_v49, %v7727_v50  ;;  %v8092_v60 = vld [vmem:[%s9365_s15 + $0x1dc] sm:$0xf] }
 0x35e   : > { %5298 = vmatpush.bf16.xpose.msrb.mxu2 %v6934_v53  ;;  %v7734_v53 = vor.u32 %v8380_v41, %v7733_v40  ;;  %v6970_v10 = vor.u32 %v8092_v60, %v6967_v62  ;;  %v6973_v40 = vld [vmem:[%s9365_s15 + $0x1e0] sm:$0xf]  ;;  %v8288_v60 = vld [vmem:[%s9365_s15 + $0x7fc] sm:$0xf] }
 0x35f   : > { %5311 = vmatpush.bf16.xpose.msrb.mxu3 %v6938_v56  ;;  %v8189_v41 = vld [vmem:[%s9365_s15 + $0x4dc] sm:$0xf0]  ;;  %v1637_v50 = vld.sshfl [vmem:[#allocation1 + $0x20] sm:$0xff pattern:$0x73625140] }
 0x360   : > { %v7767_v62 = vld [vmem:[%s9365_s15 + $0xaf8] sm:$0xf0] }
 0x361   : > { %v4847_v47 = vpop.f32.mrf.mxu3  ;;  %v4858_v48 = vpop.f32.mrf.mxu0 }
 0x362   : > { %v4834_v43 = vpop.f32.mrf.mxu2  ;;  %v4859_v51 = vadd.f32 %v4858_v48, %v4846_v31  ;;  %v4871_v52 = vpop.f32.mrf.mxu1  ;;  %v7754_v31 = vor.u32 %v8286_v19, %v7751_v21 }
 0x364   : > { %v4872_v56 = vadd.f32 %v4871_v52, %v4859_v51  ;;  %5273 = vmatmul.bf16.vlgmr.msrb.gmra.mxu0 %v1625_v32  ;;  %5286 = vmatmul.bf16.vlgmr.msrb.gmra.mxu1 %v1626_v35  ;;  %v7742_v32 = vor.u32 %v8381_v23, %v7741_v22  ;;  %v6981_v35 = vld [vmem:[%s9365_s15 + $0x1e8] sm:$0xf]  ;;  %v6974_v52 = vor.u32 %v8189_v41, %v6973_v40  ;;  %v8095_v22 = vld [vmem:[%s9365_s15 + $0x1f4] sm:$0xf]  ;;  %v7773_v40 = vld [vmem:[%s9365_s15 + $0x800] sm:$0xf] }
 0x365   : > { %5323 = vmatpush.bf16.xpose.msra.mxu0 %v7710_v14  ;;  %5336 = vmatpush.bf16.xpose.msra.mxu1 %v7714_v16  ;;  %v6962_v14 = vor.u32 %v8091_v4, %v6959_v5  ;;  %v1058_v16 = vld [vmem:[%s9363_s14 + $0xf0] sm:$0xff]  ;;  %v7759_v4 = vld [vmem:[%s9365_s15 + $0xaf0] sm:$0xf0]  ;;  %v8385_v41 = vld [vmem:[%s9365_s15 + $0xafc] sm:$0xf0] }
 0x366   : > { %5349 = vmatpush.bf16.xpose.msra.mxu2 %v7718_v12  ;;  %5312 = vmatmul.bf16.vlgmr.msrb.gmra.mxu3 %v1628_v38  ;;  %v1634_v12 = vld.sshfl [vmem:[#allocation1 + $0x8] sm:$0xff pattern:$0x73625140]  ;;  %v6991_v23 = vld [vmem:[%s9365_s15 + $0x4f0] sm:$0xf0] }
 0x367   : > { %5362 = vmatpush.bf16.xpose.msra.mxu3 %v7722_v13  ;;  %5299 = vmatmul.bf16.vlgmr.msrb.gmra.mxu2 %v1627_v36  ;;  %v1635_v13 = vld.sshfl [vmem:[#allocation1 + $0x10] sm:$0xff pattern:$0x73625140] }
 0x368   : > { %1642 = vst [vmem:[#allocation1] ss:$4 sm:$0xff] %v1058_v16  ;;  %v8190_v36 = vld [vmem:[%s9365_s15 + $0x4e4] sm:$0xf0]  ;;  %v6999_v16 = vld [vmem:[%s9365_s15 + $0x4f8] sm:$0xf0] }
 0x369   : > { %v4897_v2 = vpop.f32.mrf.mxu3  ;;  %v4860_v3 = vpop.f32.mrf.mxu0  ;;  %v6982_v48 = vor.u32 %v8190_v36, %v6981_v35  ;;  %v7781_v35 = vld [vmem:[%s9365_s15 + $0x808] sm:$0xf] }
 0x36a   : > { %v4884_v61 = vpop.f32.mrf.mxu2  ;;  %v4873_v6 = vpop.f32.mrf.mxu1  ;;  %v8287_v3 = vld [vmem:[%s9365_s15 + $0x7f4] sm:$0xf]  ;;  %v8386_v36 = vld [vmem:[%s9365_s15 + $0xb04] sm:$0xf0] }
 0x36b   : > { %v4885_v1 = vadd.f32 %v4884_v61, %v4872_v56  ;;  %v1640_v56 = vld.sshfl [vmem:[#allocation1 + $0x38] sm:$0xff pattern:$0x73625140] }
 0x36d   : > { %5324 = vmatpush.bf16.xpose.msra.mxu0 %v6942_v34  ;;  %5337 = vmatpush.bf16.xpose.msra.mxu1 %v6946_v37  ;;  %v4898_v8 = vadd.f32 %v4897_v2, %v4885_v1  ;;  %v7746_v34 = vor.u32 %v8285_v26, %v7743_v27  ;;  %v8094_v37 = vld [vmem:[%s9365_s15 + $0x1ec] sm:$0xf] }
 0x36e   : > { %5350 = vmatpush.bf16.xpose.msra.mxu2 %v6950_v30  ;;  %v7750_v30 = vor.u32 %v8382_v18, %v7749_v17  ;;  %v6986_v51 = vor.u32 %v8094_v37, %v6983_v39  ;;  %v6989_v17 = vld [vmem:[%s9365_s15 + $0x1f0] sm:$0xf]  ;;  %v8290_v37 = vld [vmem:[%s9365_s15 + $0x80c] sm:$0xf] }
 0x36f   : > { %5363 = vmatpush.bf16.xpose.msra.mxu3 %v6954_v33  ;;  %v8191_v18 = vld [vmem:[%s9365_s15 + $0x4ec] sm:$0xf0]  ;;  %v1645_v27 = vld.sshfl [vmem:[#allocation1] sm:$0xff pattern:$0x73625140] }
 0x370   : > { %v7783_v39 = vld [vmem:[%s9365_s15 + $0xb08] sm:$0xf0] }
 0x371   : > { %v4899_v24 = vpop.f32.mrf.mxu3  ;;  %v4910_v25 = vpop.f32.mrf.mxu0 }
 0x372   : > { %v4886_v20 = vpop.f32.mrf.mxu2  ;;  %v4911_v28 = vadd.f32 %v4910_v25, %v4898_v8  ;;  %v4923_v29 = vpop.f32.mrf.mxu1  ;;  %v7770_v8 = vor.u32 %v8288_v60, %v7767_v62 }
 0x374   : > { %v4924_v33 = vadd.f32 %v4923_v29, %v4911_v28  ;;  %5325 = vmatmul.bf16.vlgmr.msra.gmra.mxu0 %v1633_v9  ;;  %5338 = vmatmul.bf16.vlgmr.msra.gmra.mxu1 %v1634_v12  ;;  %v7758_v9 = vor.u32 %v8383_v0, %v7757_v63  ;;  %v6997_v12 = vld [vmem:[%s9365_s15 + $0x1f8] sm:$0xf]  ;;  %v6990_v29 = vor.u32 %v8191_v18, %v6989_v17  ;;  %v8097_v63 = vld [vmem:[%s9365_s15 + $0x204] sm:$0xf]  ;;  %v7789_v17 = vld [vmem:[%s9365_s15 + $0x810] sm:$0xf] }
 0x375   : > { %5375 = vmatpush.bf16.xpose.msrb.mxu0 %v7726_v55  ;;  %5388 = vmatpush.bf16.xpose.msrb.mxu1 %v7730_v57  ;;  %v6978_v55 = vor.u32 %v8093_v45, %v6975_v46  ;;  %v1059_v57 = vld [vmem:[%s9363_s14 + $0xf8] sm:$0xff]  ;;  %v7775_v45 = vld [vmem:[%s9365_s15 + $0xb00] sm:$0xf0] }
 0x376   : > { %5401 = vmatpush.bf16.xpose.msrb.mxu2 %v7734_v53  ;;  %5364 = vmatmul.bf16.vlgmr.msra.gmra.mxu3 %v1636_v15  ;;  %v1638_v53 = vld.sshfl [vmem:[#allocation1 + $0x28] sm:$0xff pattern:$0x73625140]  ;;  %v8387_v18 = vld [vmem:[%s9365_s15 + $0xb0c] sm:$0xf0] }
 0x377   : > { %5414 = vmatpush.bf16.xpose.msrb.mxu3 %v7738_v54  ;;  %5351 = vmatmul.bf16.vlgmr.msra.gmra.mxu2 %v1635_v13  ;;  %v1639_v54 = vld.sshfl [vmem:[#allocation1 + $0x30] sm:$0xff pattern:$0x73625140]  ;;  %v8192_v13 = vld [vmem:[%s9365_s15 + $0x4f4] sm:$0xf0] }
 0x378   : > { %1644 = vst [vmem:[#allocation1 + $0x20] ss:$4 sm:$0xff] %v1059_v57  ;;  %v6998_v25 = vor.u32 %v8192_v13, %v6997_v12  ;;  %v7015_v57 = vld [vmem:[%s9365_s15 + $0x508] sm:$0xf0]  ;;  %v7007_v0 = vld [vmem:[%s9365_s15 + $0x500] sm:$0xf0] }
 0x379   : > { %v4949_v43 = vpop.f32.mrf.mxu3  ;;  %v4912_v44 = vpop.f32.mrf.mxu0  ;;  %v7797_v12 = vld [vmem:[%s9365_s15 + $0x818] sm:$0xf] }
 0x37a   : > { %v4936_v38 = vpop.f32.mrf.mxu2  ;;  %v4925_v47 = vpop.f32.mrf.mxu1  ;;  %v8289_v44 = vld [vmem:[%s9365_s15 + $0x804] sm:$0xf]  ;;  %v8388_v13 = vld [vmem:[%s9365_s15 + $0xb14] sm:$0xf0] }
 0x37b   : > { %v4937_v42 = vadd.f32 %v4936_v38, %v4924_v33  ;;  %v1648_v33 = vld.sshfl [vmem:[#allocation1 + $0x18] sm:$0xff pattern:$0x73625140] }
 0x37d   : > { %5376 = vmatpush.bf16.xpose.msrb.mxu0 %v6958_v11  ;;  %5389 = vmatpush.bf16.xpose.msrb.mxu1 %v6962_v14  ;;  %v4950_v49 = vadd.f32 %v4949_v43, %v4937_v42  ;;  %v7762_v11 = vor.u32 %v8287_v3, %v7759_v4  ;;  %v8096_v14 = vld [vmem:[%s9365_s15 + $0x1fc] sm:$0xf] }
 0x37e   : > { %5402 = vmatpush.bf16.xpose.msrb.mxu2 %v6966_v7  ;;  %v7766_v7 = vor.u32 %v8384_v59, %v7765_v58  ;;  %v7002_v28 = vor.u32 %v8096_v14, %v6999_v16  ;;  %v7005_v58 = vld [vmem:[%s9365_s15 + $0x200] sm:$0xf]  ;;  %v8292_v14 = vld [vmem:[%s9365_s15 + $0x81c] sm:$0xf] }
 0x37f   : > { %5415 = vmatpush.bf16.xpose.msrb.mxu3 %v6970_v10  ;;  %v8193_v59 = vld [vmem:[%s9365_s15 + $0x4fc] sm:$0xf0]  ;;  %v1649_v4 = vld.sshfl [vmem:[#allocation1 + $0x20] sm:$0xff pattern:$0x73625140] }
 0x380   : > { %v7799_v16 = vld [vmem:[%s9365_s15 + $0xb18] sm:$0xf0] }
 0x381   : > { %v4951_v1 = vpop.f32.mrf.mxu3  ;;  %v4962_v2 = vpop.f32.mrf.mxu0 }
 0x382   : > { %v4938_v61 = vpop.f32.mrf.mxu2  ;;  %v4963_v5 = vadd.f32 %v4962_v2, %v4950_v49  ;;  %v4975_v6 = vpop.f32.mrf.mxu1  ;;  %v7786_v49 = vor.u32 %v8290_v37, %v7783_v39 }
 0x384   : > { %v4976_v10 = vadd.f32 %v4975_v6, %v4963_v5  ;;  %5377 = vmatmul.bf16.vlgmr.msrb.gmra.mxu0 %v1637_v50  ;;  %5390 = vmatmul.bf16.vlgmr.msrb.gmra.mxu1 %v1638_v53  ;;  %v7774_v50 = vor.u32 %v8385_v41, %v7773_v40  ;;  %v7013_v53 = vld [vmem:[%s9365_s15 + $0x208] sm:$0xf]  ;;  %v7006_v6 = vor.u32 %v8193_v59, %v7005_v58  ;;  %v8099_v40 = vld [vmem:[%s9365_s15 + $0x214] sm:$0xf]  ;;  %v7805_v58 = vld [vmem:[%s9365_s15 + $0x820] sm:$0xf] }
 0x385   : > { %5427 = vmatpush.bf16.xpose.msra.mxu0 %v7742_v32  ;;  %5440 = vmatpush.bf16.xpose.msra.mxu1 %v7746_v34  ;;  %v6994_v32 = vor.u32 %v8095_v22, %v6991_v23  ;;  %v1060_v34 = vld [vmem:[%s9363_s14 + $0x100] sm:$0xff]  ;;  %v7791_v22 = vld [vmem:[%s9365_s15 + $0xb10] sm:$0xf0]  ;;  %v8389_v59 = vld [vmem:[%s9365_s15 + $0xb1c] sm:$0xf0] }
 0x386   : > { %5453 = vmatpush.bf16.xpose.msra.mxu2 %v7750_v30  ;;  %5416 = vmatmul.bf16.vlgmr.msrb.gmra.mxu3 %v1640_v56  ;;  %v1646_v30 = vld.sshfl [vmem:[#allocation1 + $0x8] sm:$0xff pattern:$0x73625140]  ;;  %v7023_v41 = vld [vmem:[%s9365_s15 + $0x510] sm:$0xf0] }
 0x387   : > { %5466 = vmatpush.bf16.xpose.msra.mxu3 %v7754_v31  ;;  %5403 = vmatmul.bf16.vlgmr.msrb.gmra.mxu2 %v1639_v54  ;;  %v1647_v31 = vld.sshfl [vmem:[#allocation1 + $0x10] sm:$0xff pattern:$0x73625140] }
 0x388   : > { %1654 = vst [vmem:[#allocation1] ss:$4 sm:$0xff] %v1060_v34  ;;  %v8194_v54 = vld [vmem:[%s9365_s15 + $0x504] sm:$0xf0]  ;;  %v7031_v34 = vld [vmem:[%s9365_s15 + $0x518] sm:$0xf0] }
 0x389   : > { %v5001_v20 = vpop.f32.mrf.mxu3  ;;  %v4964_v21 = vpop.f32.mrf.mxu0  ;;  %v7014_v2 = vor.u32 %v8194_v54, %v7013_v53  ;;  %v7813_v53 = vld [vmem:[%s9365_s15 + $0x828] sm:$0xf] }
 0x38a   : > { %v4988_v15 = vpop.f32.mrf.mxu2  ;;  %v4977_v24 = vpop.f32.mrf.mxu1  ;;  %v8291_v21 = vld [vmem:[%s9365_s15 + $0x814] sm:$0xf]  ;;  %v8390_v54 = vld [vmem:[%s9365_s15 + $0xb24] sm:$0xf0] }
 0x38b   : > { %v4989_v19 = vadd.f32 %v4988_v15, %v4976_v10  ;;  %v1652_v10 = vld.sshfl [vmem:[#allocation1 + $0x38] sm:$0xff pattern:$0x73625140] }
 0x38d   : > { %5428 = vmatpush.bf16.xpose.msra.mxu0 %v6974_v52  ;;  %5441 = vmatpush.bf16.xpose.msra.mxu1 %v6978_v55  ;;  %v5002_v26 = vadd.f32 %v5001_v20, %v4989_v19  ;;  %v7778_v52 = vor.u32 %v8289_v44, %v7775_v45  ;;  %v8098_v55 = vld [vmem:[%s9365_s15 + $0x20c] sm:$0xf] }
 0x38e   : > { %5454 = vmatpush.bf16.xpose.msra.mxu2 %v6982_v48  ;;  %v7782_v48 = vor.u32 %v8386_v36, %v7781_v35  ;;  %v7018_v5 = vor.u32 %v8098_v55, %v7015_v57  ;;  %v7021_v35 = vld [vmem:[%s9365_s15 + $0x210] sm:$0xf]  ;;  %v8294_v55 = vld [vmem:[%s9365_s15 + $0x82c] sm:$0xf] }
 0x38f   : > { %5467 = vmatpush.bf16.xpose.msra.mxu3 %v6986_v51  ;;  %v8195_v36 = vld [vmem:[%s9365_s15 + $0x50c] sm:$0xf0]  ;;  %v1657_v45 = vld.sshfl [vmem:[#allocation1] sm:$0xff pattern:$0x73625140] }
 0x390   : > { %v7815_v57 = vld [vmem:[%s9365_s15 + $0xb28] sm:$0xf0] }
 0x391   : > { %v5003_v42 = vpop.f32.mrf.mxu3  ;;  %v5014_v43 = vpop.f32.mrf.mxu0 }
 0x392   : > { %v4990_v38 = vpop.f32.mrf.mxu2  ;;  %v5015_v46 = vadd.f32 %v5014_v43, %v5002_v26  ;;  %v5027_v47 = vpop.f32.mrf.mxu1  ;;  %v7802_v26 = vor.u32 %v8292_v14, %v7799_v16 }
 0x394   : > { %v5028_v51 = vadd.f32 %v5027_v47, %v5015_v46  ;;  %5429 = vmatmul.bf16.vlgmr.msra.gmra.mxu0 %v1645_v27  ;;  %5442 = vmatmul.bf16.vlgmr.msra.gmra.mxu1 %v1646_v30  ;;  %v7790_v27 = vor.u32 %v8387_v18, %v7789_v17  ;;  %v7029_v30 = vld [vmem:[%s9365_s15 + $0x218] sm:$0xf]  ;;  %v7022_v47 = vor.u32 %v8195_v36, %v7021_v35  ;;  %v8101_v17 = vld [vmem:[%s9365_s15 + $0x224] sm:$0xf]  ;;  %v7821_v35 = vld [vmem:[%s9365_s15 + $0x830] sm:$0xf] }
 0x395   : > { %5479 = vmatpush.bf16.xpose.msrb.mxu0 %v7758_v9  ;;  %5492 = vmatpush.bf16.xpose.msrb.mxu1 %v7762_v11  ;;  %v7010_v9 = vor.u32 %v8097_v63, %v7007_v0  ;;  %v1061_v11 = vld [vmem:[%s9363_s14 + $0x108] sm:$0xff]  ;;  %v8391_v36 = vld [vmem:[%s9365_s15 + $0xb2c] sm:$0xf0] }
 0x396   : > { %5505 = vmatpush.bf16.xpose.msrb.mxu2 %v7766_v7  ;;  %5468 = vmatmul.bf16.vlgmr.msra.gmra.mxu3 %v1648_v33  ;;  %v1650_v7 = vld.sshfl [vmem:[#allocation1 + $0x28] sm:$0xff pattern:$0x73625140] }
 0x397   : > { %5518 = vmatpush.bf16.xpose.msrb.mxu3 %v7770_v8  ;;  %5455 = vmatmul.bf16.vlgmr.msra.gmra.mxu2 %v1647_v31  ;;  %v1651_v8 = vld.sshfl [vmem:[#allocation1 + $0x30] sm:$0xff pattern:$0x73625140]  ;;  %v8196_v31 = vld [vmem:[%s9365_s15 + $0x514] sm:$0xf0] }
 0x398   : > { %1656 = vst [vmem:[#allocation1 + $0x20] ss:$4 sm:$0xff] %v1061_v11  ;;  %v7030_v43 = vor.u32 %v8196_v31, %v7029_v30  ;;  %v7807_v63 = vld [vmem:[%s9365_s15 + $0xb20] sm:$0xf0]  ;;  %v7047_v11 = vld [vmem:[%s9365_s15 + $0x528] sm:$0xf0] }
 0x399   : > { %v5053_v61 = vpop.f32.mrf.mxu3  ;;  %v5016_v62 = vpop.f32.mrf.mxu0  ;;  %v7039_v18 = vld [vmem:[%s9365_s15 + $0x520] sm:$0xf0]  ;;  %v7829_v30 = vld [vmem:[%s9365_s15 + $0x838] sm:$0xf] }
 0x39a   : > { %v5040_v56 = vpop.f32.mrf.mxu2  ;;  %v5029_v1 = vpop.f32.mrf.mxu1  ;;  %v8293_v62 = vld [vmem:[%s9365_s15 + $0x824] sm:$0xf]  ;;  %v8392_v31 = vld [vmem:[%s9365_s15 + $0xb34] sm:$0xf0] }
 0x39b   : > { %v5041_v60 = vadd.f32 %v5040_v56, %v5028_v51  ;;  %v1660_v51 = vld.sshfl [vmem:[#allocation1 + $0x18] sm:$0xff pattern:$0x73625140] }
 0x39d   : > { %5480 = vmatpush.bf16.xpose.msrb.mxu0 %v6990_v29  ;;  %5493 = vmatpush.bf16.xpose.msrb.mxu1 %v6994_v32  ;;  %v5054_v3 = vadd.f32 %v5053_v61, %v5041_v60  ;;  %v7794_v29 = vor.u32 %v8291_v21, %v7791_v22  ;;  %v8100_v32 = vld [vmem:[%s9365_s15 + $0x21c] sm:$0xf] }
 0x39e   : > { %5506 = vmatpush.bf16.xpose.msrb.mxu2 %v6998_v25  ;;  %v7798_v25 = vor.u32 %v8388_v13, %v7797_v12  ;;  %v7034_v46 = vor.u32 %v8100_v32, %v7031_v34  ;;  %v7037_v12 = vld [vmem:[%s9365_s15 + $0x220] sm:$0xf]  ;;  %v8296_v32 = vld [vmem:[%s9365_s15 + $0x83c] sm:$0xf] }
 0x39f   : > { %5519 = vmatpush.bf16.xpose.msrb.mxu3 %v7002_v28  ;;  %v8197_v13 = vld [vmem:[%s9365_s15 + $0x51c] sm:$0xf0]  ;;  %v1661_v22 = vld.sshfl [vmem:[#allocation1 + $0x20] sm:$0xff pattern:$0x73625140] }
 0x3a0   : > { %v7831_v34 = vld [vmem:[%s9365_s15 + $0xb38] sm:$0xf0] }
 0x3a1   : > { %v5055_v19 = vpop.f32.mrf.mxu3  ;;  %v5066_v20 = vpop.f32.mrf.mxu0 }
 0x3a2   : > { %v5042_v15 = vpop.f32.mrf.mxu2  ;;  %v5067_v23 = vadd.f32 %v5066_v20, %v5054_v3  ;;  %v5079_v24 = vpop.f32.mrf.mxu1  ;;  %v7818_v3 = vor.u32 %v8294_v55, %v7815_v57 }
 0x3a4   : > { %v5080_v28 = vadd.f32 %v5079_v24, %v5067_v23  ;;  %5481 = vmatmul.bf16.vlgmr.msrb.gmra.mxu0 %v1649_v4  ;;  %5494 = vmatmul.bf16.vlgmr.msrb.gmra.mxu1 %v1650_v7  ;;  %v7806_v4 = vor.u32 %v8389_v59, %v7805_v58  ;;  %v7045_v7 = vld [vmem:[%s9365_s15 + $0x228] sm:$0xf]  ;;  %v7038_v24 = vor.u32 %v8197_v13, %v7037_v12  ;;  %v8103_v58 = vld [vmem:[%s9365_s15 + $0x234] sm:$0xf]  ;;  %v7837_v12 = vld [vmem:[%s9365_s15 + $0x840] sm:$0xf] }
 0x3a5   : > { %5531 = vmatpush.bf16.xpose.msra.mxu0 %v7774_v50  ;;  %5544 = vmatpush.bf16.xpose.msra.mxu1 %v7778_v52  ;;  %v7026_v50 = vor.u32 %v8099_v40, %v7023_v41  ;;  %v1062_v52 = vld [vmem:[%s9363_s14 + $0x110] sm:$0xff]  ;;  %v7823_v40 = vld [vmem:[%s9365_s15 + $0xb30] sm:$0xf0]  ;;  %v8393_v13 = vld [vmem:[%s9365_s15 + $0xb3c] sm:$0xf0] }
 0x3a6   : > { %5557 = vmatpush.bf16.xpose.msra.mxu2 %v7782_v48  ;;  %5520 = vmatmul.bf16.vlgmr.msrb.gmra.mxu3 %v1652_v10  ;;  %v1658_v48 = vld.sshfl [vmem:[#allocation1 + $0x8] sm:$0xff pattern:$0x73625140]  ;;  %v7055_v59 = vld [vmem:[%s9365_s15 + $0x530] sm:$0xf0] }
 0x3a7   : > { %5570 = vmatpush.bf16.xpose.msra.mxu3 %v7786_v49  ;;  %5507 = vmatmul.bf16.vlgmr.msrb.gmra.mxu2 %v1651_v8  ;;  %v1659_v49 = vld.sshfl [vmem:[#allocation1 + $0x10] sm:$0xff pattern:$0x73625140] }
 0x3a8   : > { %1666 = vst [vmem:[#allocation1] ss:$4 sm:$0xff] %v1062_v52  ;;  %v8198_v8 = vld [vmem:[%s9365_s15 + $0x524] sm:$0xf0]  ;;  %v7063_v52 = vld [vmem:[%s9365_s15 + $0x538] sm:$0xf0] }
 0x3a9   : > { %v5105_v38 = vpop.f32.mrf.mxu3  ;;  %v5068_v39 = vpop.f32.mrf.mxu0  ;;  %v7046_v20 = vor.u32 %v8198_v8, %v7045_v7  ;;  %v7845_v7 = vld [vmem:[%s9365_s15 + $0x848] sm:$0xf] }
 0x3aa   : > { %v5092_v33 = vpop.f32.mrf.mxu2  ;;  %v5081_v42 = vpop.f32.mrf.mxu1  ;;  %v8295_v39 = vld [vmem:[%s9365_s15 + $0x834] sm:$0xf]  ;;  %v8394_v8 = vld [vmem:[%s9365_s15 + $0xb44] sm:$0xf0] }
 0x3ab   : > { %v5093_v37 = vadd.f32 %v5092_v33, %v5080_v28  ;;  %v1664_v28 = vld.sshfl [vmem:[#allocation1 + $0x38] sm:$0xff pattern:$0x73625140] }
 0x3ad   : > { %5532 = vmatpush.bf16.xpose.msra.mxu0 %v7006_v6  ;;  %5545 = vmatpush.bf16.xpose.msra.mxu1 %v7010_v9  ;;  %v5106_v44 = vadd.f32 %v5105_v38, %v5093_v37  ;;  %v7810_v6 = vor.u32 %v8293_v62, %v7807_v63  ;;  %v8102_v9 = vld [vmem:[%s9365_s15 + $0x22c] sm:$0xf] }
 0x3ae   : > { %5558 = vmatpush.bf16.xpose.msra.mxu2 %v7014_v2  ;;  %v7814_v2 = vor.u32 %v8390_v54, %v7813_v53  ;;  %v7050_v23 = vor.u32 %v8102_v9, %v7047_v11  ;;  %v7053_v53 = vld [vmem:[%s9365_s15 + $0x230] sm:$0xf]  ;;  %v8298_v9 = vld [vmem:[%s9365_s15 + $0x84c] sm:$0xf] }
 0x3af   : > { %5571 = vmatpush.bf16.xpose.msra.mxu3 %v7018_v5  ;;  %v8199_v54 = vld [vmem:[%s9365_s15 + $0x52c] sm:$0xf0]  ;;  %v1669_v63 = vld.sshfl [vmem:[#allocation1] sm:$0xff pattern:$0x73625140] }
 0x3b0   : > { %v7847_v11 = vld [vmem:[%s9365_s15 + $0xb48] sm:$0xf0] }
 0x3b1   : > { %v5107_v60 = vpop.f32.mrf.mxu3  ;;  %v5118_v61 = vpop.f32.mrf.mxu0 }
 0x3b2   : > { %v5094_v56 = vpop.f32.mrf.mxu2  ;;  %v5119_v0 = vadd.f32 %v5118_v61, %v5106_v44  ;;  %v5131_v1 = vpop.f32.mrf.mxu1  ;;  %v7834_v44 = vor.u32 %v8296_v32, %v7831_v34 }
 0x3b4   : > { %v5132_v5 = vadd.f32 %v5131_v1, %v5119_v0  ;;  %5533 = vmatmul.bf16.vlgmr.msra.gmra.mxu0 %v1657_v45  ;;  %5546 = vmatmul.bf16.vlgmr.msra.gmra.mxu1 %v1658_v48  ;;  %v7822_v45 = vor.u32 %v8391_v36, %v7821_v35  ;;  %v7061_v48 = vld [vmem:[%s9365_s15 + $0x238] sm:$0xf]  ;;  %v7054_v1 = vor.u32 %v8199_v54, %v7053_v53  ;;  %v8105_v35 = vld [vmem:[%s9365_s15 + $0x244] sm:$0xf]  ;;  %v7853_v53 = vld [vmem:[%s9365_s15 + $0x850] sm:$0xf] }
 0x3b5   : > { %5583 = vmatpush.bf16.xpose.msrb.mxu0 %v7790_v27  ;;  %5596 = vmatpush.bf16.xpose.msrb.mxu1 %v7794_v29  ;;  %v7042_v27 = vor.u32 %v8101_v17, %v7039_v18  ;;  %v1063_v29 = vld [vmem:[%s9363_s14 + $0x118] sm:$0xff]  ;;  %v7839_v17 = vld [vmem:[%s9365_s15 + $0xb40] sm:$0xf0] }
 0x3b6   : > { %5609 = vmatpush.bf16.xpose.msrb.mxu2 %v7798_v25  ;;  %5572 = vmatmul.bf16.vlgmr.msra.gmra.mxu3 %v1660_v51  ;;  %v1662_v25 = vld.sshfl [vmem:[#allocation1 + $0x28] sm:$0xff pattern:$0x73625140]  ;;  %v8395_v54 = vld [vmem:[%s9365_s15 + $0xb4c] sm:$0xf0] }
 0x3b7   : > { %5622 = vmatpush.bf16.xpose.msrb.mxu3 %v7802_v26  ;;  %5559 = vmatmul.bf16.vlgmr.msra.gmra.mxu2 %v1659_v49  ;;  %v1663_v26 = vld.sshfl [vmem:[#allocation1 + $0x30] sm:$0xff pattern:$0x73625140]  ;;  %v8200_v49 = vld [vmem:[%s9365_s15 + $0x534] sm:$0xf0] }
 0x3b8   : > { %1668 = vst [vmem:[#allocation1 + $0x20] ss:$4 sm:$0xff] %v1063_v29  ;;  %v7062_v61 = vor.u32 %v8200_v49, %v7061_v48  ;;  %v7079_v29 = vld [vmem:[%s9365_s15 + $0x548] sm:$0xf0]  ;;  %v7071_v36 = vld [vmem:[%s9365_s15 + $0x540] sm:$0xf0] }
 0x3b9   : > { %v5157_v15 = vpop.f32.mrf.mxu3  ;;  %v5120_v16 = vpop.f32.mrf.mxu0  ;;  %v7861_v48 = vld [vmem:[%s9365_s15 + $0x858] sm:$0xf] }
 0x3ba   : > { %v5144_v10 = vpop.f32.mrf.mxu2  ;;  %v5133_v19 = vpop.f32.mrf.mxu1  ;;  %v8297_v16 = vld [vmem:[%s9365_s15 + $0x844] sm:$0xf]  ;;  %v8396_v49 = vld [vmem:[%s9365_s15 + $0xb54] sm:$0xf0] }
 0x3bb   : > { %v5145_v14 = vadd.f32 %v5144_v10, %v5132_v5  ;;  %v1672_v5 = vld.sshfl [vmem:[#allocation1 + $0x18] sm:$0xff pattern:$0x73625140] }
 0x3bd   : > { %5584 = vmatpush.bf16.xpose.msrb.mxu0 %v7022_v47  ;;  %5597 = vmatpush.bf16.xpose.msrb.mxu1 %v7026_v50  ;;  %v5158_v21 = vadd.f32 %v5157_v15, %v5145_v14  ;;  %v7826_v47 = vor.u32 %v8295_v39, %v7823_v40  ;;  %v8104_v50 = vld [vmem:[%s9365_s15 + $0x23c] sm:$0xf] }
 0x3be   : > { %5610 = vmatpush.bf16.xpose.msrb.mxu2 %v7030_v43  ;;  %v7830_v43 = vor.u32 %v8392_v31, %v7829_v30  ;;  %v7066_v0 = vor.u32 %v8104_v50, %v7063_v52  ;;  %v7069_v30 = vld [vmem:[%s9365_s15 + $0x240] sm:$0xf]  ;;  %v8300_v50 = vld [vmem:[%s9365_s15 + $0x85c] sm:$0xf] }
 0x3bf   : > { %5623 = vmatpush.bf16.xpose.msrb.mxu3 %v7034_v46  ;;  %v8201_v31 = vld [vmem:[%s9365_s15 + $0x53c] sm:$0xf0]  ;;  %v1673_v40 = vld.sshfl [vmem:[#allocation1 + $0x20] sm:$0xff pattern:$0x73625140] }
 0x3c0   : > { %v7863_v52 = vld [vmem:[%s9365_s15 + $0xb58] sm:$0xf0] }
 0x3c1   : > { %v5159_v37 = vpop.f32.mrf.mxu3  ;;  %v5170_v38 = vpop.f32.mrf.mxu0 }
 0x3c2   : > { %v5146_v33 = vpop.f32.mrf.mxu2  ;;  %v5171_v41 = vadd.f32 %v5170_v38, %v5158_v21  ;;  %v5183_v42 = vpop.f32.mrf.mxu1  ;;  %v7850_v21 = vor.u32 %v8298_v9, %v7847_v11 }
 0x3c4   : > { %v5184_v46 = vadd.f32 %v5183_v42, %v5171_v41  ;;  %5585 = vmatmul.bf16.vlgmr.msrb.gmra.mxu0 %v1661_v22  ;;  %5598 = vmatmul.bf16.vlgmr.msrb.gmra.mxu1 %v1662_v25  ;;  %v7838_v22 = vor.u32 %v8393_v13, %v7837_v12  ;;  %v7077_v25 = vld [vmem:[%s9365_s15 + $0x248] sm:$0xf]  ;;  %v7070_v42 = vor.u32 %v8201_v31, %v7069_v30  ;;  %v8107_v12 = vld [vmem:[%s9365_s15 + $0x254] sm:$0xf]  ;;  %v7869_v30 = vld [vmem:[%s9365_s15 + $0x860] sm:$0xf] }
 0x3c5   : > { %5635 = vmatpush.bf16.xpose.msra.mxu0 %v7806_v4  ;;  %5648 = vmatpush.bf16.xpose.msra.mxu1 %v7810_v6  ;;  %v7058_v4 = vor.u32 %v8103_v58, %v7055_v59  ;;  %v1064_v6 = vld [vmem:[%s9363_s14 + $0x120] sm:$0xff]  ;;  %v7855_v58 = vld [vmem:[%s9365_s15 + $0xb50] sm:$0xf0]  ;;  %v8397_v31 = vld [vmem:[%s9365_s15 + $0xb5c] sm:$0xf0] }
 0x3c6   : > { %5661 = vmatpush.bf16.xpose.msra.mxu2 %v7814_v2  ;;  %5624 = vmatmul.bf16.vlgmr.msrb.gmra.mxu3 %v1664_v28  ;;  %v1670_v2 = vld.sshfl [vmem:[#allocation1 + $0x8] sm:$0xff pattern:$0x73625140]  ;;  %v7087_v13 = vld [vmem:[%s9365_s15 + $0x550] sm:$0xf0] }
 0x3c7   : > { %5674 = vmatpush.bf16.xpose.msra.mxu3 %v7818_v3  ;;  %5611 = vmatmul.bf16.vlgmr.msrb.gmra.mxu2 %v1663_v26  ;;  %v1671_v3 = vld.sshfl [vmem:[#allocation1 + $0x10] sm:$0xff pattern:$0x73625140] }
 0x3c8   : > { %1678 = vst [vmem:[#allocation1] ss:$4 sm:$0xff] %v1064_v6  ;;  %v8202_v26 = vld [vmem:[%s9365_s15 + $0x544] sm:$0xf0]  ;;  %v7095_v6 = vld [vmem:[%s9365_s15 + $0x558] sm:$0xf0] }
 0x3c9   : > { %v5209_v56 = vpop.f32.mrf.mxu3  ;;  %v5172_v57 = vpop.f32.mrf.mxu0  ;;  %v7078_v38 = vor.u32 %v8202_v26, %v7077_v25  ;;  %v7877_v25 = vld [vmem:[%s9365_s15 + $0x868] sm:$0xf] }
 0x3ca   : > { %v5196_v51 = vpop.f32.mrf.mxu2  ;;  %v5185_v60 = vpop.f32.mrf.mxu1  ;;  %v8299_v57 = vld [vmem:[%s9365_s15 + $0x854] sm:$0xf]  ;;  %v8398_v26 = vld [vmem:[%s9365_s15 + $0xb64] sm:$0xf0] }
 0x3cb   : > { %v5197_v55 = vadd.f32 %v5196_v51, %v5184_v46  ;;  %v1676_v46 = vld.sshfl [vmem:[#allocation1 + $0x38] sm:$0xff pattern:$0x73625140] }
 0x3cd   : > { %5636 = vmatpush.bf16.xpose.msra.mxu0 %v7038_v24  ;;  %5649 = vmatpush.bf16.xpose.msra.mxu1 %v7042_v27  ;;  %v5210_v62 = vadd.f32 %v5209_v56, %v5197_v55  ;;  %v7842_v24 = vor.u32 %v8297_v16, %v7839_v17  ;;  %v8106_v27 = vld [vmem:[%s9365_s15 + $0x24c] sm:$0xf] }
 0x3ce   : > { %5662 = vmatpush.bf16.xpose.msra.mxu2 %v7046_v20  ;;  %v7846_v20 = vor.u32 %v8394_v8, %v7845_v7  ;;  %v7082_v41 = vor.u32 %v8106_v27, %v7079_v29  ;;  %v7085_v7 = vld [vmem:[%s9365_s15 + $0x250] sm:$0xf]  ;;  %v8302_v27 = vld [vmem:[%s9365_s15 + $0x86c] sm:$0xf] }
 0x3cf   : > { %5675 = vmatpush.bf16.xpose.msra.mxu3 %v7050_v23  ;;  %v8203_v8 = vld [vmem:[%s9365_s15 + $0x54c] sm:$0xf0]  ;;  %v1681_v17 = vld.sshfl [vmem:[#allocation1] sm:$0xff pattern:$0x73625140] }
 0x3d0   : > { %v7879_v29 = vld [vmem:[%s9365_s15 + $0xb68] sm:$0xf0] }
 0x3d1   : > { %v5211_v14 = vpop.f32.mrf.mxu3  ;;  %v5222_v15 = vpop.f32.mrf.mxu0 }
 0x3d2   : > { %v5198_v10 = vpop.f32.mrf.mxu2  ;;  %v5223_v18 = vadd.f32 %v5222_v15, %v5210_v62  ;;  %v5235_v19 = vpop.f32.mrf.mxu1  ;;  %v7866_v62 = vor.u32 %v8300_v50, %v7863_v52 }
 0x3d4   : > { %v5236_v23 = vadd.f32 %v5235_v19, %v5223_v18  ;;  %5637 = vmatmul.bf16.vlgmr.msra.gmra.mxu0 %v1669_v63  ;;  %5650 = vmatmul.bf16.vlgmr.msra.gmra.mxu1 %v1670_v2  ;;  %v7854_v63 = vor.u32 %v8395_v54, %v7853_v53  ;;  %v7093_v2 = vld [vmem:[%s9365_s15 + $0x258] sm:$0xf]  ;;  %v7086_v19 = vor.u32 %v8203_v8, %v7085_v7  ;;  %v8109_v53 = vld [vmem:[%s9365_s15 + $0x264] sm:$0xf]  ;;  %v7885_v7 = vld [vmem:[%s9365_s15 + $0x870] sm:$0xf] }
 0x3d5   : > { %5687 = vmatpush.bf16.xpose.msrb.mxu0 %v7822_v45  ;;  %5700 = vmatpush.bf16.xpose.msrb.mxu1 %v7826_v47  ;;  %v7074_v45 = vor.u32 %v8105_v35, %v7071_v36  ;;  %v1065_v47 = vld [vmem:[%s9363_s14 + $0x128] sm:$0xff]  ;;  %v8399_v8 = vld [vmem:[%s9365_s15 + $0xb6c] sm:$0xf0] }
 0x3d6   : > { %5713 = vmatpush.bf16.xpose.msrb.mxu2 %v7830_v43  ;;  %5676 = vmatmul.bf16.vlgmr.msra.gmra.mxu3 %v1672_v5  ;;  %v1674_v43 = vld.sshfl [vmem:[#allocation1 + $0x28] sm:$0xff pattern:$0x73625140] }
 0x3d7   : > { %5726 = vmatpush.bf16.xpose.msrb.mxu3 %v7834_v44  ;;  %5663 = vmatmul.bf16.vlgmr.msra.gmra.mxu2 %v1671_v3  ;;  %v1675_v44 = vld.sshfl [vmem:[#allocation1 + $0x30] sm:$0xff pattern:$0x73625140]  ;;  %v8204_v3 = vld [vmem:[%s9365_s15 + $0x554] sm:$0xf0] }
 0x3d8   : > { %1680 = vst [vmem:[#allocation1 + $0x20] ss:$4 sm:$0xff] %v1065_v47  ;;  %v7094_v15 = vor.u32 %v8204_v3, %v7093_v2  ;;  %v7871_v35 = vld [vmem:[%s9365_s15 + $0xb60] sm:$0xf0]  ;;  %v7111_v47 = vld [vmem:[%s9365_s15 + $0x568] sm:$0xf0] }
 0x3d9   : > { %v5261_v33 = vpop.f32.mrf.mxu3  ;;  %v5224_v34 = vpop.f32.mrf.mxu0  ;;  %v7103_v54 = vld [vmem:[%s9365_s15 + $0x560] sm:$0xf0]  ;;  %v7893_v2 = vld [vmem:[%s9365_s15 + $0x878] sm:$0xf] }
 0x3da   : > { %v5248_v28 = vpop.f32.mrf.mxu2  ;;  %v5237_v37 = vpop.f32.mrf.mxu1  ;;  %v8301_v34 = vld [vmem:[%s9365_s15 + $0x864] sm:$0xf]  ;;  %v8400_v3 = vld [vmem:[%s9365_s15 + $0xb74] sm:$0xf0] }
 0x3db   : > { %v5249_v32 = vadd.f32 %v5248_v28, %v5236_v23  ;;  %v1684_v23 = vld.sshfl [vmem:[#allocation1 + $0x18] sm:$0xff pattern:$0x73625140] }
 0x3dd   : > { %5688 = vmatpush.bf16.xpose.msrb.mxu0 %v7054_v1  ;;  %5701 = vmatpush.bf16.xpose.msrb.mxu1 %v7058_v4  ;;  %v5262_v39 = vadd.f32 %v5261_v33, %v5249_v32  ;;  %v7858_v1 = vor.u32 %v8299_v57, %v7855_v58  ;;  %v8108_v4 = vld [vmem:[%s9365_s15 + $0x25c] sm:$0xf] }
 0x3de   : > { %5714 = vmatpush.bf16.xpose.msrb.mxu2 %v7062_v61  ;;  %v7862_v61 = vor.u32 %v8396_v49, %v7861_v48  ;;  %v7098_v18 = vor.u32 %v8108_v4, %v7095_v6  ;;  %v7101_v48 = vld [vmem:[%s9365_s15 + $0x260] sm:$0xf]  ;;  %v8304_v4 = vld [vmem:[%s9365_s15 + $0x87c] sm:$0xf] }
 0x3df   : > { %5727 = vmatpush.bf16.xpose.msrb.mxu3 %v7066_v0  ;;  %v8205_v49 = vld [vmem:[%s9365_s15 + $0x55c] sm:$0xf0]  ;;  %v1685_v58 = vld.sshfl [vmem:[#allocation1 + $0x20] sm:$0xff pattern:$0x73625140] }
 0x3e0   : > { %v7895_v6 = vld [vmem:[%s9365_s15 + $0xb78] sm:$0xf0] }
 0x3e1   : > { %v5263_v55 = vpop.f32.mrf.mxu3  ;;  %v5274_v56 = vpop.f32.mrf.mxu0 }
 0x3e2   : > { %v5250_v51 = vpop.f32.mrf.mxu2  ;;  %v5275_v59 = vadd.f32 %v5274_v56, %v5262_v39  ;;  %v5287_v60 = vpop.f32.mrf.mxu1  ;;  %v7882_v39 = vor.u32 %v8302_v27, %v7879_v29 }
 0x3e4   : > { %v5288_v0 = vadd.f32 %v5287_v60, %v5275_v59  ;;  %5689 = vmatmul.bf16.vlgmr.msrb.gmra.mxu0 %v1673_v40  ;;  %5702 = vmatmul.bf16.vlgmr.msrb.gmra.mxu1 %v1674_v43  ;;  %v7870_v40 = vor.u32 %v8397_v31, %v7869_v30  ;;  %v7109_v43 = vld [vmem:[%s9365_s15 + $0x268] sm:$0xf]  ;;  %v7102_v60 = vor.u32 %v8205_v49, %v7101_v48  ;;  %v8111_v30 = vld [vmem:[%s9365_s15 + $0x274] sm:$0xf]  ;;  %v7901_v48 = vld [vmem:[%s9365_s15 + $0x880] sm:$0xf] }
 0x3e5   : > { %5739 = vmatpush.bf16.xpose.msra.mxu0 %v7838_v22  ;;  %5752 = vmatpush.bf16.xpose.msra.mxu1 %v7842_v24  ;;  %v7090_v22 = vor.u32 %v8107_v12, %v7087_v13  ;;  %v1066_v24 = vld [vmem:[%s9363_s14 + $0x130] sm:$0xff]  ;;  %v7887_v12 = vld [vmem:[%s9365_s15 + $0xb70] sm:$0xf0]  ;;  %v8401_v49 = vld [vmem:[%s9365_s15 + $0xb7c] sm:$0xf0] }
 0x3e6   : > { %5765 = vmatpush.bf16.xpose.msra.mxu2 %v7846_v20  ;;  %5728 = vmatmul.bf16.vlgmr.msrb.gmra.mxu3 %v1676_v46  ;;  %v1682_v20 = vld.sshfl [vmem:[#allocation1 + $0x8] sm:$0xff pattern:$0x73625140]  ;;  %v7119_v31 = vld [vmem:[%s9365_s15 + $0x570] sm:$0xf0] }
 0x3e7   : > { %5778 = vmatpush.bf16.xpose.msra.mxu3 %v7850_v21  ;;  %5715 = vmatmul.bf16.vlgmr.msrb.gmra.mxu2 %v1675_v44  ;;  %v1683_v21 = vld.sshfl [vmem:[#allocation1 + $0x10] sm:$0xff pattern:$0x73625140] }
 0x3e8   : > { %1690 = vst [vmem:[#allocation1] ss:$4 sm:$0xff] %v1066_v24  ;;  %v8206_v44 = vld [vmem:[%s9365_s15 + $0x564] sm:$0xf0]  ;;  %v7127_v24 = vld [vmem:[%s9365_s15 + $0x578] sm:$0xf0] }
 0x3e9   : > { %v5313_v10 = vpop.f32.mrf.mxu3  ;;  %v5276_v11 = vpop.f32.mrf.mxu0  ;;  %v7110_v56 = vor.u32 %v8206_v44, %v7109_v43  ;;  %v7909_v43 = vld [vmem:[%s9365_s15 + $0x888] sm:$0xf] }
 0x3ea   : > { %v5300_v5 = vpop.f32.mrf.mxu2  ;;  %v5289_v14 = vpop.f32.mrf.mxu1  ;;  %v8303_v11 = vld [vmem:[%s9365_s15 + $0x874] sm:$0xf]  ;;  %v8402_v44 = vld [vmem:[%s9365_s15 + $0xb84] sm:$0xf0] }
 0x3eb   : > { %v5301_v9 = vadd.f32 %v5300_v5, %v5288_v0  ;;  %v1688_v0 = vld.sshfl [vmem:[#allocation1 + $0x38] sm:$0xff pattern:$0x73625140] }
 0x3ed   : > { %5740 = vmatpush.bf16.xpose.msra.mxu0 %v7070_v42  ;;  %5753 = vmatpush.bf16.xpose.msra.mxu1 %v7074_v45  ;;  %v5314_v16 = vadd.f32 %v5313_v10, %v5301_v9  ;;  %v7874_v42 = vor.u32 %v8301_v34, %v7871_v35  ;;  %v8110_v45 = vld [vmem:[%s9365_s15 + $0x26c] sm:$0xf] }
 0x3ee   : > { %5766 = vmatpush.bf16.xpose.msra.mxu2 %v7078_v38  ;;  %v7878_v38 = vor.u32 %v8398_v26, %v7877_v25  ;;  %v7114_v59 = vor.u32 %v8110_v45, %v7111_v47  ;;  %v7117_v25 = vld [vmem:[%s9365_s15 + $0x270] sm:$0xf]  ;;  %v8306_v45 = vld [vmem:[%s9365_s15 + $0x88c] sm:$0xf] }
 0x3ef   : > { %5779 = vmatpush.bf16.xpose.msra.mxu3 %v7082_v41  ;;  %v8207_v26 = vld [vmem:[%s9365_s15 + $0x56c] sm:$0xf0]  ;;  %v1693_v35 = vld.sshfl [vmem:[#allocation1] sm:$0xff pattern:$0x73625140] }
 0x3f0   : > { %v7911_v47 = vld [vmem:[%s9365_s15 + $0xb88] sm:$0xf0] }
 0x3f1   : > { %v5315_v32 = vpop.f32.mrf.mxu3  ;;  %v5326_v33 = vpop.f32.mrf.mxu0 }
 0x3f2   : > { %v5302_v28 = vpop.f32.mrf.mxu2  ;;  %v5327_v36 = vadd.f32 %v5326_v33, %v5314_v16  ;;  %v5339_v37 = vpop.f32.mrf.mxu1  ;;  %v7898_v16 = vor.u32 %v8304_v4, %v7895_v6 }
 0x3f4   : > { %v5340_v41 = vadd.f32 %v5339_v37, %v5327_v36  ;;  %5741 = vmatmul.bf16.vlgmr.msra.gmra.mxu0 %v1681_v17  ;;  %5754 = vmatmul.bf16.vlgmr.msra.gmra.mxu1 %v1682_v20  ;;  %v7886_v17 = vor.u32 %v8399_v8, %v7885_v7  ;;  %v7125_v20 = vld [vmem:[%s9365_s15 + $0x278] sm:$0xf]  ;;  %v7118_v37 = vor.u32 %v8207_v26, %v7117_v25  ;;  %v8113_v7 = vld [vmem:[%s9365_s15 + $0x284] sm:$0xf]  ;;  %v7917_v25 = vld [vmem:[%s9365_s15 + $0x890] sm:$0xf] }
 0x3f5   : > { %5791 = vmatpush.bf16.xpose.msrb.mxu0 %v7854_v63  ;;  %5804 = vmatpush.bf16.xpose.msrb.mxu1 %v7858_v1  ;;  %v7106_v63 = vor.u32 %v8109_v53, %v7103_v54  ;;  %v1067_v1 = vld [vmem:[%s9363_s14 + $0x138] sm:$0xff]  ;;  %v7903_v53 = vld [vmem:[%s9365_s15 + $0xb80] sm:$0xf0] }
 0x3f6   : > { %5817 = vmatpush.bf16.xpose.msrb.mxu2 %v7862_v61  ;;  %5780 = vmatmul.bf16.vlgmr.msra.gmra.mxu3 %v1684_v23  ;;  %v1686_v61 = vld.sshfl [vmem:[#allocation1 + $0x28] sm:$0xff pattern:$0x73625140]  ;;  %v8403_v26 = vld [vmem:[%s9365_s15 + $0xb8c] sm:$0xf0] }
 0x3f7   : > { %5830 = vmatpush.bf16.xpose.msrb.mxu3 %v7866_v62  ;;  %5767 = vmatmul.bf16.vlgmr.msra.gmra.mxu2 %v1683_v21  ;;  %v1687_v62 = vld.sshfl [vmem:[#allocation1 + $0x30] sm:$0xff pattern:$0x73625140]  ;;  %v8208_v21 = vld [vmem:[%s9365_s15 + $0x574] sm:$0xf0] }
 0x3f8   : > { %1692 = vst [vmem:[#allocation1 + $0x20] ss:$4 sm:$0xff] %v1067_v1  ;;  %v7126_v33 = vor.u32 %v8208_v21, %v7125_v20  ;;  %v7143_v1 = vld [vmem:[%s9365_s15 + $0x588] sm:$0xf0]  ;;  %v7135_v8 = vld [vmem:[%s9365_s15 + $0x580] sm:$0xf0] }
 0x3f9   : > { %v5365_v51 = vpop.f32.mrf.mxu3  ;;  %v5328_v52 = vpop.f32.mrf.mxu0  ;;  %v7925_v20 = vld [vmem:[%s9365_s15 + $0x898] sm:$0xf] }
 0x3fa   : > { %v5352_v46 = vpop.f32.mrf.mxu2  ;;  %v5341_v55 = vpop.f32.mrf.mxu1  ;;  %v8305_v52 = vld [vmem:[%s9365_s15 + $0x884] sm:$0xf]  ;;  %v8404_v21 = vld [vmem:[%s9365_s15 + $0xb94] sm:$0xf0] }
 0x3fb   : > { %v5353_v50 = vadd.f32 %v5352_v46, %v5340_v41  ;;  %v1696_v41 = vld.sshfl [vmem:[#allocation1 + $0x18] sm:$0xff pattern:$0x73625140] }
 0x3fd   : > { %5792 = vmatpush.bf16.xpose.msrb.mxu0 %v7086_v19  ;;  %5805 = vmatpush.bf16.xpose.msrb.mxu1 %v7090_v22  ;;  %v5366_v57 = vadd.f32 %v5365_v51, %v5353_v50  ;;  %v7890_v19 = vor.u32 %v8303_v11, %v7887_v12  ;;  %v8112_v22 = vld [vmem:[%s9365_s15 + $0x27c] sm:$0xf] }
 0x3fe   : > { %5818 = vmatpush.bf16.xpose.msrb.mxu2 %v7094_v15  ;;  %v7894_v15 = vor.u32 %v8400_v3, %v7893_v2  ;;  %v7130_v36 = vor.u32 %v8112_v22, %v7127_v24  ;;  %v7133_v2 = vld [vmem:[%s9365_s15 + $0x280] sm:$0xf]  ;;  %v8308_v22 = vld [vmem:[%s9365_s15 + $0x89c] sm:$0xf] }
 0x3ff   : > { %5831 = vmatpush.bf16.xpose.msrb.mxu3 %v7098_v18  ;;  %v8209_v3 = vld [vmem:[%s9365_s15 + $0x57c] sm:$0xf0]  ;;  %v1697_v12 = vld.sshfl [vmem:[#allocation1 + $0x20] sm:$0xff pattern:$0x73625140] }
 0x400   : > { %v7927_v24 = vld [vmem:[%s9365_s15 + $0xb98] sm:$0xf0] }
 0x401   : > { %v5367_v9 = vpop.f32.mrf.mxu3  ;;  %v5378_v10 = vpop.f32.mrf.mxu0 }
 0x402   : > { %v5354_v5 = vpop.f32.mrf.mxu2  ;;  %v5379_v13 = vadd.f32 %v5378_v10, %v5366_v57  ;;  %v5391_v14 = vpop.f32.mrf.mxu1  ;;  %v7914_v57 = vor.u32 %v8306_v45, %v7911_v47 }
 0x404   : > { %v5392_v18 = vadd.f32 %v5391_v14, %v5379_v13  ;;  %5793 = vmatmul.bf16.vlgmr.msrb.gmra.mxu0 %v1685_v58  ;;  %5806 = vmatmul.bf16.vlgmr.msrb.gmra.mxu1 %v1686_v61  ;;  %v7902_v58 = vor.u32 %v8401_v49, %v7901_v48  ;;  %v7141_v61 = vld [vmem:[%s9365_s15 + $0x288] sm:$0xf]  ;;  %v7134_v14 = vor.u32 %v8209_v3, %v7133_v2  ;;  %v8115_v48 = vld [vmem:[%s9365_s15 + $0x294] sm:$0xf]  ;;  %v7933_v2 = vld [vmem:[%s9365_s15 + $0x8a0] sm:$0xf] }
 0x405   : > { %5843 = vmatpush.bf16.xpose.msra.mxu0 %v7870_v40  ;;  %5856 = vmatpush.bf16.xpose.msra.mxu1 %v7874_v42  ;;  %v7122_v40 = vor.u32 %v8111_v30, %v7119_v31  ;;  %v1068_v42 = vld [vmem:[%s9363_s14 + $0x140] sm:$0xff]  ;;  %v7919_v30 = vld [vmem:[%s9365_s15 + $0xb90] sm:$0xf0]  ;;  %v8405_v3 = vld [vmem:[%s9365_s15 + $0xb9c] sm:$0xf0] }
 0x406   : > { %5869 = vmatpush.bf16.xpose.msra.mxu2 %v7878_v38  ;;  %5832 = vmatmul.bf16.vlgmr.msrb.gmra.mxu3 %v1688_v0  ;;  %v1694_v38 = vld.sshfl [vmem:[#allocation1 + $0x8] sm:$0xff pattern:$0x73625140]  ;;  %v7151_v49 = vld [vmem:[%s9365_s15 + $0x590] sm:$0xf0] }
 0x407   : > { %5882 = vmatpush.bf16.xpose.msra.mxu3 %v7882_v39  ;;  %5819 = vmatmul.bf16.vlgmr.msrb.gmra.mxu2 %v1687_v62  ;;  %v1695_v39 = vld.sshfl [vmem:[#allocation1 + $0x10] sm:$0xff pattern:$0x73625140] }
 0x408   : > { %1702 = vst [vmem:[#allocation1] ss:$4 sm:$0xff] %v1068_v42  ;;  %v8210_v62 = vld [vmem:[%s9365_s15 + $0x584] sm:$0xf0]  ;;  %v7159_v42 = vld [vmem:[%s9365_s15 + $0x598] sm:$0xf0] }
 0x409   : > { %v5417_v28 = vpop.f32.mrf.mxu3  ;;  %v5380_v29 = vpop.f32.mrf.mxu0  ;;  %v7142_v10 = vor.u32 %v8210_v62, %v7141_v61  ;;  %v7941_v61 = vld [vmem:[%s9365_s15 + $0x8a8] sm:$0xf] }
 0x40a   : > { %v5404_v23 = vpop.f32.mrf.mxu2  ;;  %v5393_v32 = vpop.f32.mrf.mxu1  ;;  %v8307_v29 = vld [vmem:[%s9365_s15 + $0x894] sm:$0xf]  ;;  %v8406_v62 = vld [vmem:[%s9365_s15 + $0xba4] sm:$0xf0] }
 0x40b   : > { %v5405_v27 = vadd.f32 %v5404_v23, %v5392_v18  ;;  %v1700_v18 = vld.sshfl [vmem:[#allocation1 + $0x38] sm:$0xff pattern:$0x73625140] }
 0x40d   : > { %5844 = vmatpush.bf16.xpose.msra.mxu0 %v7102_v60  ;;  %5857 = vmatpush.bf16.xpose.msra.mxu1 %v7106_v63  ;;  %v5418_v34 = vadd.f32 %v5417_v28, %v5405_v27  ;;  %v7906_v60 = vor.u32 %v8305_v52, %v7903_v53  ;;  %v8114_v63 = vld [vmem:[%s9365_s15 + $0x28c] sm:$0xf] }
 0x40e   : > { %5870 = vmatpush.bf16.xpose.msra.mxu2 %v7110_v56  ;;  %v7910_v56 = vor.u32 %v8402_v44, %v7909_v43  ;;  %v7146_v13 = vor.u32 %v8114_v63, %v7143_v1  ;;  %v7149_v43 = vld [vmem:[%s9365_s15 + $0x290] sm:$0xf]  ;;  %v8310_v63 = vld [vmem:[%s9365_s15 + $0x8ac] sm:$0xf] }
 0x40f   : > { %5883 = vmatpush.bf16.xpose.msra.mxu3 %v7114_v59  ;;  %v8211_v44 = vld [vmem:[%s9365_s15 + $0x58c] sm:$0xf0]  ;;  %v1705_v53 = vld.sshfl [vmem:[#allocation1] sm:$0xff pattern:$0x73625140] }
 0x410   : > { %v7943_v1 = vld [vmem:[%s9365_s15 + $0xba8] sm:$0xf0] }
 0x411   : > { %v5419_v50 = vpop.f32.mrf.mxu3  ;;  %v5430_v51 = vpop.f32.mrf.mxu0 }
 0x412   : > { %v5406_v46 = vpop.f32.mrf.mxu2  ;;  %v5431_v54 = vadd.f32 %v5430_v51, %v5418_v34  ;;  %v5443_v55 = vpop.f32.mrf.mxu1  ;;  %v7930_v34 = vor.u32 %v8308_v22, %v7927_v24 }
 0x414   : > { %v5444_v59 = vadd.f32 %v5443_v55, %v5431_v54  ;;  %5845 = vmatmul.bf16.vlgmr.msra.gmra.mxu0 %v1693_v35  ;;  %5858 = vmatmul.bf16.vlgmr.msra.gmra.mxu1 %v1694_v38  ;;  %v7918_v35 = vor.u32 %v8403_v26, %v7917_v25  ;;  %v7157_v38 = vld [vmem:[%s9365_s15 + $0x298] sm:$0xf]  ;;  %v7150_v55 = vor.u32 %v8211_v44, %v7149_v43  ;;  %v8117_v25 = vld [vmem:[%s9365_s15 + $0x2a4] sm:$0xf]  ;;  %v7949_v43 = vld [vmem:[%s9365_s15 + $0x8b0] sm:$0xf] }
 0x415   : > { %5895 = vmatpush.bf16.xpose.msrb.mxu0 %v7886_v17  ;;  %5908 = vmatpush.bf16.xpose.msrb.mxu1 %v7890_v19  ;;  %v7138_v17 = vor.u32 %v8113_v7, %v7135_v8  ;;  %v1069_v19 = vld [vmem:[%s9363_s14 + $0x148] sm:$0xff]  ;;  %v8407_v44 = vld [vmem:[%s9365_s15 + $0xbac] sm:$0xf0] }
 0x416   : > { %5921 = vmatpush.bf16.xpose.msrb.mxu2 %v7894_v15  ;;  %5884 = vmatmul.bf16.vlgmr.msra.gmra.mxu3 %v1696_v41  ;;  %v1698_v15 = vld.sshfl [vmem:[#allocation1 + $0x28] sm:$0xff pattern:$0x73625140] }
 0x417   : > { %5934 = vmatpush.bf16.xpose.msrb.mxu3 %v7898_v16  ;;  %5871 = vmatmul.bf16.vlgmr.msra.gmra.mxu2 %v1695_v39  ;;  %v1699_v16 = vld.sshfl [vmem:[#allocation1 + $0x30] sm:$0xff pattern:$0x73625140]  ;;  %v8212_v39 = vld [vmem:[%s9365_s15 + $0x594] sm:$0xf0] }
 0x418   : > { %1704 = vst [vmem:[#allocation1 + $0x20] ss:$4 sm:$0xff] %v1069_v19  ;;  %v7158_v51 = vor.u32 %v8212_v39, %v7157_v38  ;;  %v7935_v7 = vld [vmem:[%s9365_s15 + $0xba0] sm:$0xf0]  ;;  %v7175_v19 = vld [vmem:[%s9365_s15 + $0x5a8] sm:$0xf0] }
 0x419   : > { %v5469_v5 = vpop.f32.mrf.mxu3  ;;  %v5432_v6 = vpop.f32.mrf.mxu0  ;;  %v7167_v26 = vld [vmem:[%s9365_s15 + $0x5a0] sm:$0xf0]  ;;  %v7957_v38 = vld [vmem:[%s9365_s15 + $0x8b8] sm:$0xf] }
 0x41a   : > { %v5456_v0 = vpop.f32.mrf.mxu2  ;;  %v5445_v9 = vpop.f32.mrf.mxu1  ;;  %v8309_v6 = vld [vmem:[%s9365_s15 + $0x8a4] sm:$0xf]  ;;  %v8408_v39 = vld [vmem:[%s9365_s15 + $0xbb4] sm:$0xf0] }
 0x41b   : > { %v5457_v4 = vadd.f32 %v5456_v0, %v5444_v59  ;;  %v1708_v59 = vld.sshfl [vmem:[#allocation1 + $0x18] sm:$0xff pattern:$0x73625140] }
 0x41d   : > { %5896 = vmatpush.bf16.xpose.msrb.mxu0 %v7118_v37  ;;  %5909 = vmatpush.bf16.xpose.msrb.mxu1 %v7122_v40  ;;  %v5470_v11 = vadd.f32 %v5469_v5, %v5457_v4  ;;  %v7922_v37 = vor.u32 %v8307_v29, %v7919_v30  ;;  %v8116_v40 = vld [vmem:[%s9365_s15 + $0x29c] sm:$0xf] }
 0x41e   : > { %5922 = vmatpush.bf16.xpose.msrb.mxu2 %v7126_v33  ;;  %v7926_v33 = vor.u32 %v8404_v21, %v7925_v20  ;;  %v7162_v54 = vor.u32 %v8116_v40, %v7159_v42  ;;  %v7165_v20 = vld [vmem:[%s9365_s15 + $0x2a0] sm:$0xf]  ;;  %v8312_v40 = vld [vmem:[%s9365_s15 + $0x8bc] sm:$0xf] }
 0x41f   : > { %5935 = vmatpush.bf16.xpose.msrb.mxu3 %v7130_v36  ;;  %v8213_v21 = vld [vmem:[%s9365_s15 + $0x59c] sm:$0xf0]  ;;  %v1709_v30 = vld.sshfl [vmem:[#allocation1 + $0x20] sm:$0xff pattern:$0x73625140] }
 0x420   : > { %v7959_v42 = vld [vmem:[%s9365_s15 + $0xbb8] sm:$0xf0] }
 0x421   : > { %v5471_v27 = vpop.f32.mrf.mxu3  ;;  %v5482_v28 = vpop.f32.mrf.mxu0 }
 0x422   : > { %v5458_v23 = vpop.f32.mrf.mxu2  ;;  %v5483_v31 = vadd.f32 %v5482_v28, %v5470_v11  ;;  %v5495_v32 = vpop.f32.mrf.mxu1  ;;  %v7946_v11 = vor.u32 %v8310_v63, %v7943_v1 }
 0x424   : > { %v5496_v36 = vadd.f32 %v5495_v32, %v5483_v31  ;;  %5897 = vmatmul.bf16.vlgmr.msrb.gmra.mxu0 %v1697_v12  ;;  %5910 = vmatmul.bf16.vlgmr.msrb.gmra.mxu1 %v1698_v15  ;;  %v7934_v12 = vor.u32 %v8405_v3, %v7933_v2  ;;  %v7173_v15 = vld [vmem:[%s9365_s15 + $0x2a8] sm:$0xf]  ;;  %v7166_v32 = vor.u32 %v8213_v21, %v7165_v20  ;;  %v8119_v2 = vld [vmem:[%s9365_s15 + $0x2b4] sm:$0xf]  ;;  %v7965_v20 = vld [vmem:[%s9365_s15 + $0x8c0] sm:$0xf] }
 0x425   : > { %5947 = vmatpush.bf16.xpose.msra.mxu0 %v7902_v58  ;;  %5960 = vmatpush.bf16.xpose.msra.mxu1 %v7906_v60  ;;  %v7154_v58 = vor.u32 %v8115_v48, %v7151_v49  ;;  %v1070_v60 = vld [vmem:[%s9363_s14 + $0x150] sm:$0xff]  ;;  %v7951_v48 = vld [vmem:[%s9365_s15 + $0xbb0] sm:$0xf0]  ;;  %v8409_v21 = vld [vmem:[%s9365_s15 + $0xbbc] sm:$0xf0] }
 0x426   : > { %5973 = vmatpush.bf16.xpose.msra.mxu2 %v7910_v56  ;;  %5936 = vmatmul.bf16.vlgmr.msrb.gmra.mxu3 %v1700_v18  ;;  %v1706_v56 = vld.sshfl [vmem:[#allocation1 + $0x8] sm:$0xff pattern:$0x73625140]  ;;  %v7183_v3 = vld [vmem:[%s9365_s15 + $0x5b0] sm:$0xf0] }
 0x427   : > { %5986 = vmatpush.bf16.xpose.msra.mxu3 %v7914_v57  ;;  %5923 = vmatmul.bf16.vlgmr.msrb.gmra.mxu2 %v1699_v16  ;;  %v1707_v57 = vld.sshfl [vmem:[#allocation1 + $0x10] sm:$0xff pattern:$0x73625140] }
 0x428   : > { %1714 = vst [vmem:[#allocation1] ss:$4 sm:$0xff] %v1070_v60  ;;  %v8214_v16 = vld [vmem:[%s9365_s15 + $0x5a4] sm:$0xf0]  ;;  %v7191_v60 = vld [vmem:[%s9365_s15 + $0x5b8] sm:$0xf0] }
 0x429   : > { %v5521_v46 = vpop.f32.mrf.mxu3  ;;  %v5484_v47 = vpop.f32.mrf.mxu0  ;;  %v7174_v28 = vor.u32 %v8214_v16, %v7173_v15  ;;  %v7973_v15 = vld [vmem:[%s9365_s15 + $0x8c8] sm:$0xf] }
 0x42a   : > { %v5508_v41 = vpop.f32.mrf.mxu2  ;;  %v5497_v50 = vpop.f32.mrf.mxu1  ;;  %v8311_v47 = vld [vmem:[%s9365_s15 + $0x8b4] sm:$0xf]  ;;  %v8410_v16 = vld [vmem:[%s9365_s15 + $0xbc4] sm:$0xf0] }
 0x42b   : > { %v5509_v45 = vadd.f32 %v5508_v41, %v5496_v36  ;;  %v1712_v36 = vld.sshfl [vmem:[#allocation1 + $0x38] sm:$0xff pattern:$0x73625140] }
 0x42d   : > { %5948 = vmatpush.bf16.xpose.msra.mxu0 %v7134_v14  ;;  %5961 = vmatpush.bf16.xpose.msra.mxu1 %v7138_v17  ;;  %v5522_v52 = vadd.f32 %v5521_v46, %v5509_v45  ;;  %v7938_v14 = vor.u32 %v8309_v6, %v7935_v7  ;;  %v8118_v17 = vld [vmem:[%s9365_s15 + $0x2ac] sm:$0xf] }
 0x42e   : > { %5974 = vmatpush.bf16.xpose.msra.mxu2 %v7142_v10  ;;  %v7942_v10 = vor.u32 %v8406_v62, %v7941_v61  ;;  %v7178_v31 = vor.u32 %v8118_v17, %v7175_v19  ;;  %v7181_v61 = vld [vmem:[%s9365_s15 + $0x2b0] sm:$0xf]  ;;  %v8314_v17 = vld [vmem:[%s9365_s15 + $0x8cc] sm:$0xf] }
 0x42f   : > { %5987 = vmatpush.bf16.xpose.msra.mxu3 %v7146_v13  ;;  %v8215_v62 = vld [vmem:[%s9365_s15 + $0x5ac] sm:$0xf0]  ;;  %v1717_v7 = vld.sshfl [vmem:[#allocation1] sm:$0xff pattern:$0x73625140] }
 0x430   : > { %v7975_v19 = vld [vmem:[%s9365_s15 + $0xbc8] sm:$0xf0] }
 0x431   : > { %v5523_v4 = vpop.f32.mrf.mxu3  ;;  %v5534_v5 = vpop.f32.mrf.mxu0 }
 0x432   : > { %v5510_v0 = vpop.f32.mrf.mxu2  ;;  %v5535_v8 = vadd.f32 %v5534_v5, %v5522_v52  ;;  %v5547_v9 = vpop.f32.mrf.mxu1  ;;  %v7962_v52 = vor.u32 %v8312_v40, %v7959_v42 }
 0x434   : > { %v5548_v13 = vadd.f32 %v5547_v9, %v5535_v8  ;;  %5949 = vmatmul.bf16.vlgmr.msra.gmra.mxu0 %v1705_v53  ;;  %5962 = vmatmul.bf16.vlgmr.msra.gmra.mxu1 %v1706_v56  ;;  %v7950_v53 = vor.u32 %v8407_v44, %v7949_v43  ;;  %v7189_v56 = vld [vmem:[%s9365_s15 + $0x2b8] sm:$0xf]  ;;  %v7182_v9 = vor.u32 %v8215_v62, %v7181_v61  ;;  %v8121_v43 = vld [vmem:[%s9365_s15 + $0x2c4] sm:$0xf]  ;;  %v7981_v61 = vld [vmem:[%s9365_s15 + $0x8d0] sm:$0xf] }
 0x435   : > { %5999 = vmatpush.bf16.xpose.msrb.mxu0 %v7918_v35  ;;  %6012 = vmatpush.bf16.xpose.msrb.mxu1 %v7922_v37  ;;  %v7170_v35 = vor.u32 %v8117_v25, %v7167_v26  ;;  %v1071_v37 = vld [vmem:[%s9363_s14 + $0x158] sm:$0xff]  ;;  %v7967_v25 = vld [vmem:[%s9365_s15 + $0xbc0] sm:$0xf0] }
 0x436   : > { %6025 = vmatpush.bf16.xpose.msrb.mxu2 %v7926_v33  ;;  %5988 = vmatmul.bf16.vlgmr.msra.gmra.mxu3 %v1708_v59  ;;  %v1710_v33 = vld.sshfl [vmem:[#allocation1 + $0x28] sm:$0xff pattern:$0x73625140]  ;;  %v8411_v62 = vld [vmem:[%s9365_s15 + $0xbcc] sm:$0xf0] }
 0x437   : > { %6038 = vmatpush.bf16.xpose.msrb.mxu3 %v7930_v34  ;;  %5975 = vmatmul.bf16.vlgmr.msra.gmra.mxu2 %v1707_v57  ;;  %v1711_v34 = vld.sshfl [vmem:[#allocation1 + $0x30] sm:$0xff pattern:$0x73625140]  ;;  %v8216_v57 = vld [vmem:[%s9365_s15 + $0x5b4] sm:$0xf0] }
 0x438   : > { %1716 = vst [vmem:[#allocation1 + $0x20] ss:$4 sm:$0xff] %v1071_v37  ;;  %v7190_v5 = vor.u32 %v8216_v57, %v7189_v56  ;;  %v7207_v37 = vld [vmem:[%s9365_s15 + $0x5c8] sm:$0xf0]  ;;  %v7199_v44 = vld [vmem:[%s9365_s15 + $0x5c0] sm:$0xf0] }
 0x439   : > { %v5573_v23 = vpop.f32.mrf.mxu3  ;;  %v5536_v24 = vpop.f32.mrf.mxu0  ;;  %v7989_v56 = vld [vmem:[%s9365_s15 + $0x8d8] sm:$0xf] }
 0x43a   : > { %v5560_v18 = vpop.f32.mrf.mxu2  ;;  %v5549_v27 = vpop.f32.mrf.mxu1  ;;  %v8313_v24 = vld [vmem:[%s9365_s15 + $0x8c4] sm:$0xf]  ;;  %v8412_v57 = vld [vmem:[%s9365_s15 + $0xbd4] sm:$0xf0] }
 0x43b   : > { %v5561_v22 = vadd.f32 %v5560_v18, %v5548_v13  ;;  %v1720_v13 = vld.sshfl [vmem:[#allocation1 + $0x18] sm:$0xff pattern:$0x73625140] }
 0x43d   : > { %6000 = vmatpush.bf16.xpose.msrb.mxu0 %v7150_v55  ;;  %6013 = vmatpush.bf16.xpose.msrb.mxu1 %v7154_v58  ;;  %v5574_v29 = vadd.f32 %v5573_v23, %v5561_v22  ;;  %v7954_v55 = vor.u32 %v8311_v47, %v7951_v48  ;;  %v8120_v58 = vld [vmem:[%s9365_s15 + $0x2bc] sm:$0xf] }
 0x43e   : > { %6026 = vmatpush.bf16.xpose.msrb.mxu2 %v7158_v51  ;;  %v7958_v51 = vor.u32 %v8408_v39, %v7957_v38  ;;  %v7194_v8 = vor.u32 %v8120_v58, %v7191_v60  ;;  %v7197_v38 = vld [vmem:[%s9365_s15 + $0x2c0] sm:$0xf]  ;;  %v8316_v58 = vld [vmem:[%s9365_s15 + $0x8dc] sm:$0xf] }
 0x43f   : > { %6039 = vmatpush.bf16.xpose.msrb.mxu3 %v7162_v54  ;;  %v8217_v39 = vld [vmem:[%s9365_s15 + $0x5bc] sm:$0xf0]  ;;  %v1721_v48 = vld.sshfl [vmem:[#allocation1 + $0x20] sm:$0xff pattern:$0x73625140] }
 0x440   : > { %v7991_v60 = vld [vmem:[%s9365_s15 + $0xbd8] sm:$0xf0] }
 0x441   : > { %v5575_v45 = vpop.f32.mrf.mxu3  ;;  %v5586_v46 = vpop.f32.mrf.mxu0 }
 0x442   : > { %v5562_v41 = vpop.f32.mrf.mxu2  ;;  %v5587_v49 = vadd.f32 %v5586_v46, %v5574_v29  ;;  %v5599_v50 = vpop.f32.mrf.mxu1  ;;  %v7978_v29 = vor.u32 %v8314_v17, %v7975_v19 }
 0x444   : > { %v5600_v54 = vadd.f32 %v5599_v50, %v5587_v49  ;;  %6001 = vmatmul.bf16.vlgmr.msrb.gmra.mxu0 %v1709_v30  ;;  %6014 = vmatmul.bf16.vlgmr.msrb.gmra.mxu1 %v1710_v33  ;;  %v7966_v30 = vor.u32 %v8409_v21, %v7965_v20  ;;  %v7205_v33 = vld [vmem:[%s9365_s15 + $0x2c8] sm:$0xf]  ;;  %v7198_v50 = vor.u32 %v8217_v39, %v7197_v38  ;;  %v8123_v20 = vld [vmem:[%s9365_s15 + $0x2d4] sm:$0xf]  ;;  %v7997_v38 = vld [vmem:[%s9365_s15 + $0x8e0] sm:$0xf] }
 0x445   : > { %6051 = vmatpush.bf16.xpose.msra.mxu0 %v7934_v12  ;;  %6064 = vmatpush.bf16.xpose.msra.mxu1 %v7938_v14  ;;  %v7186_v12 = vor.u32 %v8119_v2, %v7183_v3  ;;  %v1072_v14 = vld [vmem:[%s9363_s14 + $0x160] sm:$0xff]  ;;  %v7983_v2 = vld [vmem:[%s9365_s15 + $0xbd0] sm:$0xf0]  ;;  %v8413_v39 = vld [vmem:[%s9365_s15 + $0xbdc] sm:$0xf0] }
 0x446   : > { %6077 = vmatpush.bf16.xpose.msra.mxu2 %v7942_v10  ;;  %6040 = vmatmul.bf16.vlgmr.msrb.gmra.mxu3 %v1712_v36  ;;  %v1718_v10 = vld.sshfl [vmem:[#allocation1 + $0x8] sm:$0xff pattern:$0x73625140]  ;;  %v7215_v21 = vld [vmem:[%s9365_s15 + $0x5d0] sm:$0xf0] }
 0x447   : > { %6090 = vmatpush.bf16.xpose.msra.mxu3 %v7946_v11  ;;  %6027 = vmatmul.bf16.vlgmr.msrb.gmra.mxu2 %v1711_v34  ;;  %v1719_v11 = vld.sshfl [vmem:[#allocation1 + $0x10] sm:$0xff pattern:$0x73625140] }
 0x448   : > { %1726 = vst [vmem:[#allocation1] ss:$4 sm:$0xff] %v1072_v14  ;;  %v8218_v34 = vld [vmem:[%s9365_s15 + $0x5c4] sm:$0xf0]  ;;  %v7223_v14 = vld [vmem:[%s9365_s15 + $0x5d8] sm:$0xf0] }
 0x449   : > { %v5625_v0 = vpop.f32.mrf.mxu3  ;;  %v5588_v1 = vpop.f32.mrf.mxu0  ;;  %v7206_v46 = vor.u32 %v8218_v34, %v7205_v33  ;;  %v8005_v33 = vld [vmem:[%s9365_s15 + $0x8e8] sm:$0xf] }
 0x44a   : > { %v5612_v59 = vpop.f32.mrf.mxu2  ;;  %v5601_v4 = vpop.f32.mrf.mxu1  ;;  %v8315_v1 = vld [vmem:[%s9365_s15 + $0x8d4] sm:$0xf]  ;;  %v8414_v34 = vld [vmem:[%s9365_s15 + $0xbe4] sm:$0xf0] }
 0x44b   : > { %v5613_v63 = vadd.f32 %v5612_v59, %v5600_v54  ;;  %v1724_v54 = vld.sshfl [vmem:[#allocation1 + $0x38] sm:$0xff pattern:$0x73625140] }
 0x44d   : > { %6052 = vmatpush.bf16.xpose.msra.mxu0 %v7166_v32  ;;  %6065 = vmatpush.bf16.xpose.msra.mxu1 %v7170_v35  ;;  %v5626_v6 = vadd.f32 %v5625_v0, %v5613_v63  ;;  %v7970_v32 = vor.u32 %v8313_v24, %v7967_v25  ;;  %v8122_v35 = vld [vmem:[%s9365_s15 + $0x2cc] sm:$0xf] }
 0x44e   : > { %6078 = vmatpush.bf16.xpose.msra.mxu2 %v7174_v28  ;;  %v7974_v28 = vor.u32 %v8410_v16, %v7973_v15  ;;  %v7210_v49 = vor.u32 %v8122_v35, %v7207_v37  ;;  %v7213_v15 = vld [vmem:[%s9365_s15 + $0x2d0] sm:$0xf]  ;;  %v8318_v35 = vld [vmem:[%s9365_s15 + $0x8ec] sm:$0xf] }
 0x44f   : > { %6091 = vmatpush.bf16.xpose.msra.mxu3 %v7178_v31  ;;  %v8219_v16 = vld [vmem:[%s9365_s15 + $0x5cc] sm:$0xf0]  ;;  %v1729_v25 = vld.sshfl [vmem:[#allocation1] sm:$0xff pattern:$0x73625140] }
 0x450   : > { %v8007_v37 = vld [vmem:[%s9365_s15 + $0xbe8] sm:$0xf0] }
 0x451   : > { %v5627_v22 = vpop.f32.mrf.mxu3  ;;  %v5638_v23 = vpop.f32.mrf.mxu0 }
 0x452   : > { %v5614_v18 = vpop.f32.mrf.mxu2  ;;  %v5639_v26 = vadd.f32 %v5638_v23, %v5626_v6  ;;  %v5651_v27 = vpop.f32.mrf.mxu1  ;;  %v7994_v6 = vor.u32 %v8316_v58, %v7991_v60 }
 0x454   : > { %v5652_v31 = vadd.f32 %v5651_v27, %v5639_v26  ;;  %6053 = vmatmul.bf16.vlgmr.msra.gmra.mxu0 %v1717_v7  ;;  %6066 = vmatmul.bf16.vlgmr.msra.gmra.mxu1 %v1718_v10  ;;  %v7982_v7 = vor.u32 %v8411_v62, %v7981_v61  ;;  %v7221_v10 = vld [vmem:[%s9365_s15 + $0x2d8] sm:$0xf]  ;;  %v7214_v27 = vor.u32 %v8219_v16, %v7213_v15  ;;  %v8125_v61 = vld [vmem:[%s9365_s15 + $0x2e4] sm:$0xf]  ;;  %v8013_v15 = vld [vmem:[%s9365_s15 + $0x8f0] sm:$0xf] }
 0x455   : > { %6103 = vmatpush.bf16.xpose.msrb.mxu0 %v7950_v53  ;;  %6116 = vmatpush.bf16.xpose.msrb.mxu1 %v7954_v55  ;;  %v7202_v53 = vor.u32 %v8121_v43, %v7199_v44  ;;  %v1073_v55 = vld [vmem:[%s9363_s14 + $0x168] sm:$0xff]  ;;  %v8415_v16 = vld [vmem:[%s9365_s15 + $0xbec] sm:$0xf0] }
 0x456   : > { %6129 = vmatpush.bf16.xpose.msrb.mxu2 %v7958_v51  ;;  %6092 = vmatmul.bf16.vlgmr.msra.gmra.mxu3 %v1720_v13  ;;  %v1722_v51 = vld.sshfl [vmem:[#allocation1 + $0x28] sm:$0xff pattern:$0x73625140] }
 0x457   : > { %6142 = vmatpush.bf16.xpose.msrb.mxu3 %v7962_v52  ;;  %6079 = vmatmul.bf16.vlgmr.msra.gmra.mxu2 %v1719_v11  ;;  %v1723_v52 = vld.sshfl [vmem:[#allocation1 + $0x30] sm:$0xff pattern:$0x73625140]  ;;  %v8220_v11 = vld [vmem:[%s9365_s15 + $0x5d4] sm:$0xf0] }
 0x458   : > { %1728 = vst [vmem:[#allocation1 + $0x20] ss:$4 sm:$0xff] %v1073_v55  ;;  %v7222_v23 = vor.u32 %v8220_v11, %v7221_v10  ;;  %v7999_v43 = vld [vmem:[%s9365_s15 + $0xbe0] sm:$0xf0]  ;;  %v7239_v55 = vld [vmem:[%s9365_s15 + $0x5e8] sm:$0xf0] }
 0x459   : > { %v5677_v41 = vpop.f32.mrf.mxu3  ;;  %v5640_v42 = vpop.f32.mrf.mxu0  ;;  %v7231_v62 = vld [vmem:[%s9365_s15 + $0x5e0] sm:$0xf0]  ;;  %v8021_v10 = vld [vmem:[%s9365_s15 + $0x8f8] sm:$0xf] }
 0x45a   : > { %v5664_v36 = vpop.f32.mrf.mxu2  ;;  %v5653_v45 = vpop.f32.mrf.mxu1  ;;  %v8317_v42 = vld [vmem:[%s9365_s15 + $0x8e4] sm:$0xf]  ;;  %v8416_v11 = vld [vmem:[%s9365_s15 + $0xbf4] sm:$0xf0] }
 0x45b   : > { %v5665_v40 = vadd.f32 %v5664_v36, %v5652_v31  ;;  %v1732_v31 = vld.sshfl [vmem:[#allocation1 + $0x18] sm:$0xff pattern:$0x73625140] }
 0x45d   : > { %6104 = vmatpush.bf16.xpose.msrb.mxu0 %v7182_v9  ;;  %6117 = vmatpush.bf16.xpose.msrb.mxu1 %v7186_v12  ;;  %v5678_v47 = vadd.f32 %v5677_v41, %v5665_v40  ;;  %v7986_v9 = vor.u32 %v8315_v1, %v7983_v2  ;;  %v8124_v12 = vld [vmem:[%s9365_s15 + $0x2dc] sm:$0xf] }
 0x45e   : > { %6130 = vmatpush.bf16.xpose.msrb.mxu2 %v7190_v5  ;;  %v7990_v5 = vor.u32 %v8412_v57, %v7989_v56  ;;  %v7226_v26 = vor.u32 %v8124_v12, %v7223_v14  ;;  %v7229_v56 = vld [vmem:[%s9365_s15 + $0x2e0] sm:$0xf]  ;;  %v8320_v12 = vld [vmem:[%s9365_s15 + $0x8fc] sm:$0xf] }
 0x45f   : > { %6143 = vmatpush.bf16.xpose.msrb.mxu3 %v7194_v8  ;;  %v8221_v57 = vld [vmem:[%s9365_s15 + $0x5dc] sm:$0xf0]  ;;  %v1733_v2 = vld.sshfl [vmem:[#allocation1 + $0x20] sm:$0xff pattern:$0x73625140] }
 0x460   : > { %v8023_v14 = vld [vmem:[%s9365_s15 + $0xbf8] sm:$0xf0] }
 0x461   : > { %v5679_v63 = vpop.f32.mrf.mxu3  ;;  %v5690_v0 = vpop.f32.mrf.mxu0 }
 0x462   : > { %v5666_v59 = vpop.f32.mrf.mxu2  ;;  %v5691_v3 = vadd.f32 %v5690_v0, %v5678_v47  ;;  %v5703_v4 = vpop.f32.mrf.mxu1  ;;  %v8010_v47 = vor.u32 %v8318_v35, %v8007_v37 }
 0x464   : > { %v5704_v8 = vadd.f32 %v5703_v4, %v5691_v3  ;;  %6105 = vmatmul.bf16.vlgmr.msrb.gmra.mxu0 %v1721_v48  ;;  %6118 = vmatmul.bf16.vlgmr.msrb.gmra.mxu1 %v1722_v51  ;;  %v7998_v48 = vor.u32 %v8413_v39, %v7997_v38  ;;  %v7237_v51 = vld [vmem:[%s9365_s15 + $0x2e8] sm:$0xf]  ;;  %v7230_v4 = vor.u32 %v8221_v57, %v7229_v56  ;;  %v8127_v38 = vld [vmem:[%s9365_s15 + $0x2f4] sm:$0xf] }
 0x465   : > { %6155 = vmatpush.bf16.xpose.msra.mxu0 %v7966_v30  ;;  %6168 = vmatpush.bf16.xpose.msra.mxu1 %v7970_v32  ;;  %v7218_v30 = vor.u32 %v8123_v20, %v7215_v21  ;;  %v1074_v32 = vld [vmem:[%s9363_s14 + $0x170] sm:$0xff]  ;;  %v8015_v20 = vld [vmem:[%s9365_s15 + $0xbf0] sm:$0xf0] }
 0x466   : > { %6181 = vmatpush.bf16.xpose.msra.mxu2 %v7974_v28  ;;  %6144 = vmatmul.bf16.vlgmr.msrb.gmra.mxu3 %v1724_v54  ;;  %v1730_v28 = vld.sshfl [vmem:[#allocation1 + $0x8] sm:$0xff pattern:$0x73625140]  ;;  %v7247_v39 = vld [vmem:[%s9365_s15 + $0x5f0] sm:$0xf0] }
 0x467   : > { %6194 = vmatpush.bf16.xpose.msra.mxu3 %v7978_v29  ;;  %6131 = vmatmul.bf16.vlgmr.msrb.gmra.mxu2 %v1723_v52  ;;  %v1731_v29 = vld.sshfl [vmem:[#allocation1 + $0x10] sm:$0xff pattern:$0x73625140] }
 0x468   : > { %1738 = vst [vmem:[#allocation1] ss:$4 sm:$0xff] %v1074_v32  ;;  %v8222_v52 = vld [vmem:[%s9365_s15 + $0x5e4] sm:$0xf0]  ;;  %v7255_v32 = vld [vmem:[%s9365_s15 + $0x5f8] sm:$0xf0] }
 0x469   : > { %v5729_v18 = vpop.f32.mrf.mxu3  ;;  %v5692_v19 = vpop.f32.mrf.mxu0  ;;  %v7238_v0 = vor.u32 %v8222_v52, %v7237_v51 }
 0x46a   : > { %v5716_v13 = vpop.f32.mrf.mxu2  ;;  %v5705_v22 = vpop.f32.mrf.mxu1  ;;  %v8319_v19 = vld [vmem:[%s9365_s15 + $0x8f4] sm:$0xf] }
 0x46b   : > { %v5717_v17 = vadd.f32 %v5716_v13, %v5704_v8  ;;  %v1736_v8 = vld.sshfl [vmem:[#allocation1 + $0x38] sm:$0xff pattern:$0x73625140] }
 0x46d   : > { %6156 = vmatpush.bf16.xpose.msra.mxu0 %v7198_v50  ;;  %6169 = vmatpush.bf16.xpose.msra.mxu1 %v7202_v53  ;;  %v5730_v24 = vadd.f32 %v5729_v18, %v5717_v17  ;;  %v8002_v50 = vor.u32 %v8317_v42, %v7999_v43  ;;  %v8126_v53 = vld [vmem:[%s9365_s15 + $0x2ec] sm:$0xf] }
 0x46e   : > { %6182 = vmatpush.bf16.xpose.msra.mxu2 %v7206_v46  ;;  %v8006_v46 = vor.u32 %v8414_v34, %v8005_v33  ;;  %v7242_v3 = vor.u32 %v8126_v53, %v7239_v55  ;;  %v7245_v33 = vld [vmem:[%s9365_s15 + $0x2f0] sm:$0xf] }
 0x46f   : > { %6195 = vmatpush.bf16.xpose.msra.mxu3 %v7210_v49  ;;  %v8223_v34 = vld [vmem:[%s9365_s15 + $0x5ec] sm:$0xf0]  ;;  %v1742_v52 = vld.sshfl [vmem:[#allocation1 + $0x8] sm:$0xff pattern:$0x73625140] }
 0x470   : > { %v1743_v53 = vld.sshfl [vmem:[#allocation1 + $0x10] sm:$0xff pattern:$0x73625140] }
 0x471   : > { %v5731_v40 = vpop.f32.mrf.mxu3  ;;  %v5742_v41 = vpop.f32.mrf.mxu0 }
 0x472   : > { %v5718_v36 = vpop.f32.mrf.mxu2  ;;  %v5743_v44 = vadd.f32 %v5742_v41, %v5730_v24  ;;  %v5755_v45 = vpop.f32.mrf.mxu1  ;;  %v8026_v24 = vor.u32 %v8320_v12, %v8023_v14 }
 0x474   : > { %v5756_v49 = vadd.f32 %v5755_v45, %v5743_v44  ;;  %6157 = vmatmul.bf16.vlgmr.msra.gmra.mxu0 %v1729_v25  ;;  %6170 = vmatmul.bf16.vlgmr.msra.gmra.mxu1 %v1730_v28  ;;  %v8014_v25 = vor.u32 %v8415_v16, %v8013_v15  ;;  %v7253_v28 = vld [vmem:[%s9365_s15 + $0x2f8] sm:$0xf]  ;;  %v7246_v44 = vor.u32 %v8223_v34, %v7245_v33 }
 0x475   : > { %6207 = vmatpush.bf16.xpose.msrb.mxu0 %v7982_v7  ;;  %6220 = vmatpush.bf16.xpose.msrb.mxu1 %v7986_v9  ;;  %v7234_v7 = vor.u32 %v8125_v61, %v7231_v62  ;;  %v1075_v9 = vld [vmem:[%s9363_s14 + $0x178] sm:$0xff]  ;;  %v7250_v45 = vor.u32 %v8127_v38, %v7247_v39 }
 0x476   : > { %6233 = vmatpush.bf16.xpose.msrb.mxu2 %v7990_v5  ;;  %6196 = vmatmul.bf16.vlgmr.msra.gmra.mxu3 %v1732_v31  ;;  %v1734_v5 = vld.sshfl [vmem:[#allocation1 + $0x28] sm:$0xff pattern:$0x73625140] }
 0x477   : > { %6246 = vmatpush.bf16.xpose.msrb.mxu3 %v7994_v6  ;;  %6183 = vmatmul.bf16.vlgmr.msra.gmra.mxu2 %v1731_v29  ;;  %v1735_v6 = vld.sshfl [vmem:[#allocation1 + $0x30] sm:$0xff pattern:$0x73625140]  ;;  %v8224_v29 = vld [vmem:[%s9365_s15 + $0x5f4] sm:$0xf0] }
 0x478   : > { %1740 = vst [vmem:[#allocation1 + $0x20] ss:$4 sm:$0xff] %v1075_v9  ;;  %v7254_v41 = vor.u32 %v8224_v29, %v7253_v28 }
 0x479   : > { %v5781_v59 = vpop.f32.mrf.mxu3  ;;  %v5744_v60 = vpop.f32.mrf.mxu0 }
 0x47a   : > { %v5768_v54 = vpop.f32.mrf.mxu2  ;;  %v5757_v63 = vpop.f32.mrf.mxu1 }
 0x47b   : > { %v5769_v58 = vadd.f32 %v5768_v54, %v5756_v49  ;;  %v1741_v49 = vld.sshfl [vmem:[#allocation1] sm:$0xff pattern:$0x73625140]  ;;  %v1744_v54 = vld.sshfl [vmem:[#allocation1 + $0x18] sm:$0xff pattern:$0x73625140] }
 0x47d   : > { %6208 = vmatpush.bf16.xpose.msrb.mxu0 %v7214_v27  ;;  %6221 = vmatpush.bf16.xpose.msrb.mxu1 %v7218_v30  ;;  %v5782_v1 = vadd.f32 %v5781_v59, %v5769_v58  ;;  %v8018_v27 = vor.u32 %v8319_v19, %v8015_v20  ;;  %v8128_v30 = vld [vmem:[%s9365_s15 + $0x2fc] sm:$0xf] }
 0x47e   : > { %6234 = vmatpush.bf16.xpose.msrb.mxu2 %v7222_v23  ;;  %v8022_v23 = vor.u32 %v8416_v11, %v8021_v10  ;;  %v7258_v43 = vor.u32 %v8128_v30, %v7255_v32 }
 0x47f   : > { %6247 = vmatpush.bf16.xpose.msrb.mxu3 %v7226_v26 }
 0x481   : > { %v5783_v17 = vpop.f32.mrf.mxu3  ;;  %v5794_v18 = vpop.f32.mrf.mxu0 }
 0x482   : > { %v5770_v13 = vpop.f32.mrf.mxu2  ;;  %v5795_v21 = vadd.f32 %v5794_v18, %v5782_v1  ;;  %v5807_v22 = vpop.f32.mrf.mxu1  ;;  %v1745_v1 = vld.sshfl [vmem:[#allocation1 + $0x20] sm:$0xff pattern:$0x73625140] }
 0x484   : > { %v5808_v26 = vadd.f32 %v5807_v22, %v5795_v21  ;;  %6209 = vmatmul.bf16.vlgmr.msrb.gmra.mxu0 %v1733_v2  ;;  %6222 = vmatmul.bf16.vlgmr.msrb.gmra.mxu1 %v1734_v5  ;;  %v1747_v5 = vld.sshfl [vmem:[#allocation1 + $0x30] sm:$0xff pattern:$0x73625140] }
 0x485   : > { %6259 = vmatpush.bf16.xpose.msra.mxu0 %v7998_v48  ;;  %6272 = vmatpush.bf16.xpose.msra.mxu1 %v8002_v50 }
 0x486   : > { %6285 = vmatpush.bf16.xpose.msra.mxu2 %v8006_v46  ;;  %6248 = vmatmul.bf16.vlgmr.msrb.gmra.mxu3 %v1736_v8 }
 0x487   : > { %6298 = vmatpush.bf16.xpose.msra.mxu3 %v8010_v47  ;;  %6235 = vmatmul.bf16.vlgmr.msrb.gmra.mxu2 %v1735_v6  ;;  %v1748_v6 = vld.sshfl [vmem:[#allocation1 + $0x38] sm:$0xff pattern:$0x73625140] }
 0x489   : > { %v5833_v36 = vpop.f32.mrf.mxu3  ;;  %v5796_v37 = vpop.f32.mrf.mxu0 }
 0x48a   : > { %v5820_v31 = vpop.f32.mrf.mxu2  ;;  %v5809_v40 = vpop.f32.mrf.mxu1 }
 0x48b   : > { %v5821_v35 = vadd.f32 %v5820_v31, %v5808_v26 }
 0x48d   : > { %6260 = vmatpush.bf16.xpose.msra.mxu0 %v7230_v4  ;;  %6273 = vmatpush.bf16.xpose.msra.mxu1 %v7234_v7  ;;  %v5834_v42 = vadd.f32 %v5833_v36, %v5821_v35  ;;  %v1746_v4 = vld.sshfl [vmem:[#allocation1 + $0x28] sm:$0xff pattern:$0x73625140] }
 0x48e   : > { %6286 = vmatpush.bf16.xpose.msra.mxu2 %v7238_v0 }
 0x48f   : > { %6299 = vmatpush.bf16.xpose.msra.mxu3 %v7242_v3 }
 0x491   : > { %v5835_v47 = vpop.f32.mrf.mxu3  ;;  %v5846_v48 = vpop.f32.mrf.mxu0 }
 0x492   : > { %v5822_v46 = vpop.f32.mrf.mxu2  ;;  %v5847_v50 = vadd.f32 %v5846_v48, %v5834_v42  ;;  %v5859_v51 = vpop.f32.mrf.mxu1 }
 0x494   : > { %v5860_v55 = vadd.f32 %v5859_v51, %v5847_v50  ;;  %6261 = vmatmul.bf16.vlgmr.msra.gmra.mxu0 %v1741_v49  ;;  %6274 = vmatmul.bf16.vlgmr.msra.gmra.mxu1 %v1742_v52 }
 0x495   : > { %6311 = vmatpush.bf16.xpose.msrb.mxu0 %v8014_v25  ;;  %6324 = vmatpush.bf16.xpose.msrb.mxu1 %v8018_v27 }
 0x496   : > { %6337 = vmatpush.bf16.xpose.msrb.mxu2 %v8022_v23  ;;  %6300 = vmatmul.bf16.vlgmr.msra.gmra.mxu3 %v1744_v54 }
 0x497   : > { %6350 = vmatpush.bf16.xpose.msrb.mxu3 %v8026_v24  ;;  %6287 = vmatmul.bf16.vlgmr.msra.gmra.mxu2 %v1743_v53 }
 0x499   : > { %v5885_v58 = vpop.f32.mrf.mxu3  ;;  %v5848_v59 = vpop.f32.mrf.mxu0 }
 0x49a   : > { %v5872_v56 = vpop.f32.mrf.mxu2  ;;  %v5861_v60 = vpop.f32.mrf.mxu1 }
 0x49b   : > { %v5873_v57 = vadd.f32 %v5872_v56, %v5860_v55 }
 0x49d   : > { %6312 = vmatpush.bf16.xpose.msrb.mxu0 %v7246_v44  ;;  %6325 = vmatpush.bf16.xpose.msrb.mxu1 %v7250_v45  ;;  %v5886_v61 = vadd.f32 %v5885_v58, %v5873_v57 }
 0x49e   : > { %6338 = vmatpush.bf16.xpose.msrb.mxu2 %v7254_v41 }
 0x49f   : > { %6351 = vmatpush.bf16.xpose.msrb.mxu3 %v7258_v43 }
 0x4a1   : > { %v5887_v63 = vpop.f32.mrf.mxu3  ;;  %v5898_v0 = vpop.f32.mrf.mxu0 }
 0x4a2   : > { %v5874_v62 = vpop.f32.mrf.mxu2  ;;  %v5899_v2 = vadd.f32 %v5898_v0, %v5886_v61  ;;  %v5911_v3 = vpop.f32.mrf.mxu1 }
 0x4a4   : > { %v5912_v7 = vadd.f32 %v5911_v3, %v5899_v2  ;;  %6313 = vmatmul.bf16.vlgmr.msrb.gmra.mxu0 %v1745_v1  ;;  %6326 = vmatmul.bf16.vlgmr.msrb.gmra.mxu1 %v1746_v4 }
 0x4a6   : > { %6352 = vmatmul.bf16.vlgmr.msrb.gmra.mxu3 %v1748_v6 }
 0x4a7   : > { %6339 = vmatmul.bf16.vlgmr.msrb.gmra.mxu2 %v1747_v5 }
 0x4a9   : > { %v5937_v10 = vpop.f32.mrf.mxu3  ;;  %v5900_v11 = vpop.f32.mrf.mxu0 }
 0x4aa   : > { %v5924_v8 = vpop.f32.mrf.mxu2  ;;  %v5913_v12 = vpop.f32.mrf.mxu1 }
 0x4ab   : > { %v5925_v9 = vadd.f32 %v5924_v8, %v5912_v7 }
 0x4ad   : > { %v5938_v13 = vadd.f32 %v5937_v10, %v5925_v9 }
 0x4b1   : > { %v5939_v15 = vpop.f32.mrf.mxu3  ;;  %v5950_v16 = vpop.f32.mrf.mxu0 }
 0x4b2   : > { %v5926_v14 = vpop.f32.mrf.mxu2  ;;  %v5963_v17 = vpop.f32.mrf.mxu1  ;;  %v5951_v30 = vadd.f32 %v5950_v16, %v5938_v13 }
 0x4b4   : > { %v5964_v35 = vadd.f32 %v5963_v17, %v5951_v30 }
 0x4b9   : > { %v5989_v19 = vpop.f32.mrf.mxu3  ;;  %v5952_v20 = vpop.f32.mrf.mxu0 }
 0x4ba   : > { %v5976_v18 = vpop.f32.mrf.mxu2  ;;  %v5965_v21 = vpop.f32.mrf.mxu1 }
 0x4bb   : > { %v5977_v36 = vadd.f32 %v5976_v18, %v5964_v35 }
 0x4bd   : > { %v5990_v38 = vadd.f32 %v5989_v19, %v5977_v36 }
 0x4c1   : > { %v5991_v23 = vpop.f32.mrf.mxu3  ;;  %v6002_v24 = vpop.f32.mrf.mxu0 }
 0x4c2   : > { %v5978_v22 = vpop.f32.mrf.mxu2  ;;  %v6015_v25 = vpop.f32.mrf.mxu1  ;;  %v6003_v42 = vadd.f32 %v6002_v24, %v5990_v38 }
 0x4c4   : > { %v6016_v43 = vadd.f32 %v6015_v25, %v6003_v42 }
 0x4c9   : > { %v6041_v27 = vpop.f32.mrf.mxu3  ;;  %v6004_v28 = vpop.f32.mrf.mxu0 }
 0x4ca   : > { %v6028_v26 = vpop.f32.mrf.mxu2  ;;  %v6017_v29 = vpop.f32.mrf.mxu1 }
 0x4cb   : > { %v6029_v45 = vadd.f32 %v6028_v26, %v6016_v43 }
 0x4cd   : > { %v6042_v49 = vadd.f32 %v6041_v27, %v6029_v45 }
 0x4d1   : > { %v6043_v32 = vpop.f32.mrf.mxu3  ;;  %v6054_v33 = vpop.f32.mrf.mxu0 }
 0x4d2   : > { %v6030_v31 = vpop.f32.mrf.mxu2  ;;  %v6067_v34 = vpop.f32.mrf.mxu1  ;;  %v6055_v50 = vadd.f32 %v6054_v33, %v6042_v49 }
 0x4d4   : > { %v6068_v55 = vadd.f32 %v6067_v34, %v6055_v50 }
 0x4d9   : > { %v6093_v39 = vpop.f32.mrf.mxu3  ;;  %v6056_v40 = vpop.f32.mrf.mxu0 }
 0x4da   : > { %v6080_v37 = vpop.f32.mrf.mxu2  ;;  %v6069_v41 = vpop.f32.mrf.mxu1 }
 0x4db   : > { %v6081_v56 = vadd.f32 %v6080_v37, %v6068_v55 }
 0x4dd   : > { %v6094_v58 = vadd.f32 %v6093_v39, %v6081_v56 }
 0x4e1   : > { %v6095_v46 = vpop.f32.mrf.mxu3  ;;  %v6106_v47 = vpop.f32.mrf.mxu0 }
 0x4e2   : > { %v6082_v44 = vpop.f32.mrf.mxu2  ;;  %v6119_v48 = vpop.f32.mrf.mxu1  ;;  %v6107_v62 = vadd.f32 %v6106_v47, %v6094_v58 }
 0x4e3   : > { %v1027_v44 = vld [vmem:[#allocation3] sm:$0xf] }
 0x4e4   : > { %v6120_v63 = vadd.f32 %v6119_v48, %v6107_v62 }
 0x4e9   : > { %v6145_v52 = vpop.f32.mrf.mxu3  ;;  %v6108_v53 = vpop.f32.mrf.mxu0 }
 0x4ea   : > { %v6132_v51 = vpop.f32.mrf.mxu2  ;;  %v6121_v54 = vpop.f32.mrf.mxu1 }
 0x4eb   : > { %v6133_v1 = vadd.f32 %v6132_v51, %v6120_v63 }
 0x4ed   : > { %v6146_v5 = vadd.f32 %v6145_v52, %v6133_v1 }
 0x4f1   : > { %v6147_v59 = vpop.f32.mrf.mxu3  ;;  %v6158_v60 = vpop.f32.mrf.mxu0 }
 0x4f2   : > { %v6134_v57 = vpop.f32.mrf.mxu2  ;;  %v6171_v61 = vpop.f32.mrf.mxu1  ;;  %v6159_v6 = vadd.f32 %v6158_v60, %v6146_v5 }
 0x4f4   : > { %v6172_v11 = vadd.f32 %v6171_v61, %v6159_v6 }
 0x4f9   : > { %v6197_v2 = vpop.f32.mrf.mxu3  ;;  %v6160_v3 = vpop.f32.mrf.mxu0 }
 0x4fa   : > { %v6184_v0 = vpop.f32.mrf.mxu2  ;;  %v6173_v4 = vpop.f32.mrf.mxu1 }
 0x4fb   : > { %v6185_v12 = vadd.f32 %v6184_v0, %v6172_v11 }
 0x4fd   : > { %v6198_v14 = vadd.f32 %v6197_v2, %v6185_v12 }
 0x501   : > { %v6199_v8 = vpop.f32.mrf.mxu3  ;;  %v6210_v9 = vpop.f32.mrf.mxu0 }
 0x502   : > { %v6186_v7 = vpop.f32.mrf.mxu2  ;;  %v6223_v10 = vpop.f32.mrf.mxu1  ;;  %v6211_v18 = vadd.f32 %v6210_v9, %v6198_v14 }
 0x504   : > { %v6224_v19 = vadd.f32 %v6223_v10, %v6211_v18 }
 0x509   : > { %v6249_v15 = vpop.f32.mrf.mxu3  ;;  %v6212_v16 = vpop.f32.mrf.mxu0 }
 0x50a   : > { %v6236_v13 = vpop.f32.mrf.mxu2  ;;  %v6225_v17 = vpop.f32.mrf.mxu1 }
 0x50b   : > { %v6237_v21 = vadd.f32 %v6236_v13, %v6224_v19 }
 0x50d   : > { %v6250_v25 = vadd.f32 %v6249_v15, %v6237_v21 }
 0x511   : > { %v6251_v22 = vpop.f32.mrf.mxu3  ;;  %v6262_v23 = vpop.f32.mrf.mxu0 }
 0x512   : > { %v6238_v20 = vpop.f32.mrf.mxu2  ;;  %v6275_v24 = vpop.f32.mrf.mxu1  ;;  %v6263_v26 = vadd.f32 %v6262_v23, %v6250_v25 }
 0x514   : > { %v6276_v31 = vadd.f32 %v6275_v24, %v6263_v26 }
 0x519   : > { %v6301_v28 = vpop.f32.mrf.mxu3  ;;  %v6264_v29 = vpop.f32.mrf.mxu0 }
 0x51a   : > { %v6288_v27 = vpop.f32.mrf.mxu2  ;;  %v6277_v30 = vpop.f32.mrf.mxu1 }
 0x51b   : > { %v6289_v32 = vadd.f32 %v6288_v27, %v6276_v31 }
 0x51d   : > { %v6302_v34 = vadd.f32 %v6301_v28, %v6289_v32 }
 0x521   : > { %v6303_v35 = vpop.f32.mrf.mxu3  ;;  %v6314_v36 = vpop.f32.mrf.mxu0 }
 0x522   : > { %v6290_v33 = vpop.f32.mrf.mxu2  ;;  %v6327_v37 = vpop.f32.mrf.mxu1  ;;  %v6315_v38 = vadd.f32 %v6314_v36, %v6302_v34 }
 0x524   : > { %v6328_v39 = vadd.f32 %v6327_v37, %v6315_v38 }
 0x529   : > { %v6353_v42 = vpop.f32.mrf.mxu3  ;;  %v6316_v43 = vpop.f32.mrf.mxu0 }
 0x52a   : > { %v6340_v40 = vpop.f32.mrf.mxu2  ;;  %v6329_v45 = vpop.f32.mrf.mxu1 }
 0x52b   : > { %v6341_v41 = vadd.f32 %v6340_v40, %v6328_v39 }
 0x52d   : > { %v6354_v46 = vadd.f32 %v6353_v42, %v6341_v41 }
 0x52e   : > { %6363 = sbr.rel (%p8027_p10) target bundleno = 1400 (0x578), region = 71 }
 0x52f   : > { %v6357_v47 = vadd.f32 %v6354_v46, %v1027_v44 }
 0x531   : > { %6359 = vst.msk [vmem:[#allocation3] sm:$0xf] %vm6358_vm1, %v6357_v47  ;;  %v6355_v49 = vpop.f32.mrf.mxu3 }
 0x532   : > { %v6342_v48 = vpop.f32.mrf.mxu2 }
 0x533   : > { %v8452_v51 = vld [vmem:[%s10214_s2] ss:$0 sm:$0xff]  ;;  %v8516_v53 = vmov 4.0  }
 0x534   : > { %8455 = vrcp.f32 %v8516_v53  ;;  %v8453_v21 = vld [vmem:[%s10215_s3] ss:$0 sm:$0xff] }
 0x535   : > { %v8454_v24 = vld [vmem:[%s10216_s4] ss:$0 sm:$0xff] }
 0x538   : > { %v6364_v50 = vld [vmem:[#allocation3] sm:$0xf] }
 0x539   : > { %v6369_v52 = vadd.f32 %v8452_v51, %v6364_v50 }
 0x53a   : > { %v8456_v57 = vpop.eup %8455 }
 0x53b   : > { %v6370_v54 = vsel %vm6358_vm1, %v6369_v52, 0.0  ;;  %v6378_v59 = vmul.f32 4.0, %v8456_v57  ;;  %vm6382_vm2 = vweird.f32 %v8456_v57 }
 0x53c   : > { %v6371_v55 = vrot.slane %v6370_v54, 4 }
 0x53d   : > { %v6379_v61 = vsub.f32 1.0, %v6378_v59 }
 0x53e   : > { %v6372_v56 = vadd.f32 %v6371_v55, %v6370_v54 }
 0x53f   : > { %v6380_v63 = vmul.f32 %v8456_v57, %v6379_v61 }
 0x540   : > { %v6373_v58 = vrot.slane %v6372_v56, 2 }
 0x541   : > { %v6381_v1 = vadd.f32 %v8456_v57, %v6380_v63 }
 0x542   : > { %v6374_v60 = vadd.f32 %v6373_v58, %v6372_v56 }
 0x543   : > { %v6383_v2 = vsel %vm6382_vm2, %v8456_v57, %v6381_v1 }
 0x544   : > { %v6375_v62 = vrot.slane %v6374_v60, 1 }
 0x546   : > { %v6376_v0 = vadd.f32 %v6375_v62, %v6374_v60 }
 0x548   : > { %v6384_v3 = vmul.f32 %v6383_v2, %v6376_v0 }
 0x54a   : > { %v6385_v4 = vsub.f32 %v6369_v52, %v6384_v3 }
 0x54c   : > { %v6386_v5 = vmul.f32 %v6385_v4, %v6385_v4 }
 0x54e   : > { %v6387_v6 = vsel %vm6358_vm1, %v6386_v5, 0.0 }
 0x54f   : > { %v6388_v7 = vrot.slane %v6387_v6, 4 }
 0x551   : > { %v6389_v8 = vadd.f32 %v6388_v7, %v6387_v6 }
 0x553   : > { %v6390_v9 = vrot.slane %v6389_v8, 2 }
 0x555   : > { %v6391_v10 = vadd.f32 %v6390_v9, %v6389_v8 }
 0x557   : > { %v6392_v11 = vrot.slane %v6391_v10, 1 }
 0x559   : > { %v6393_v12 = vadd.f32 %v6392_v11, %v6391_v10 }
 0x55b   : > { %v6394_v13 = vmul.f32 %v6393_v12, %v6383_v2 }
 0x55d   : > { %v6395_v14 = vadd.f32 1e-05, %v6394_v13 }
 0x55f   : > { %8457 = vrsqrt.f32 %v6395_v14  ;;  %vm6402_vm3 = vweird.f32 %v6395_v14 }
 0x565   : > { %v8458_v15 = vpop.eup %8457 }
 0x566   : > { %v6397_v16 = vmul.f32 %v8458_v15, %v6395_v14  ;;  %vm6403_vm4 = vweird.f32 %v8458_v15 }
 0x567   : > { %vm6404_vm5 = vmor %vm6402_vm3, %vm6403_vm4 }
 0x568   : > { %v6398_v17 = vmul.f32 %v8458_v15, %v6397_v16 }
 0x56a   : > { %v6399_v18 = vmul.f32 0.5, %v6398_v17 }
 0x56c   : > { %v6400_v19 = vsub.f32 1.5, %v6399_v18 }
 0x56e   : > { %v6401_v20 = vmul.f32 %v8458_v15, %v6400_v19 }
 0x570   : > { %v6405_v22 = vsel %vm6404_vm5, %v8458_v15, %v6401_v20 }
 0x571   : > { %v6406_v23 = vmul.f32 %v6405_v22, %v6385_v4 }
 0x573   : > { %v6411_v25 = vmul.f32 %v8453_v21, %v6406_v23 }
 0x575   : > { %v6416_v26 = vadd.f32 %v8454_v24, %v6411_v25 }
 0x577   : > { %6417 = vst.msk [vmem:[#allocation3] sm:$0xf] %vm6358_vm1, %v6416_v26 }
 0x578 PF: > { %p8423_p11 = scmp.eq.s32.totalorder %s8564_s21, 1  ;;  %s8517_s26 = smov [#allocation3]  }
 0x579   : > { %s6424_s27 = sshll.u32 %s8517_s26, 4  ;;  %s6426_s30 = sshll.u32 %s10217_s5, 4  ;;  %s6425_s27 = int_to_ptr.vmem [resolvable:$true] %s6424_s27  ;;  %s6427_s30 = int_to_ptr.hbm [resolvable:$true] %s6426_s30 }
 0x57a   : > { %8420 = dma.vmem_to_hbm [thread:$0]  (%p8423_p11), %s6425_s27, 64, %s6427_s30, [#allocation4]  }
 0x57b   : > { %8500 = dma.done.wait (%p8423_p11), [#allocation4], 64  }
 0x57c   : > { %8502 = vsyncadd (%p8423_p11), [#allocation4], 4294967232 }
 0x57d PF: > { %p13_p12 = scmp.ge.s32.totalorder %s8567_s22, 4   ;;  %s10218_s18 = smov %s8509_s19 }
 0x57e   : > { %s10219_s19 = smov %s8576_s25  ;;  %s10220_s20 = smov %s8567_s22 }
 0x57f   :  { %15 = sbr.rel (!%p13_p12) target bundleno = 2 (0x2), region = 107 }
 0x584   :  { %6440 = vsyncpa [#allocation4], 1 }
 0x585   :  { %6442 = vsyncpa [#allocation4 + $0x1], 1 }

</bundles_post_ra>
